<compile_context>
chip_gen: v7x
topology: tpu7x:2x2x1
jax: 0.10.0
libtpu: 0.0.40
codegen_flags: <defaults>
</compile_context>

<pallas_src>
import jax
import jax.numpy as jnp
from jax import lax
from jax.experimental import pallas as pl
from jax.experimental.pallas import tpu as pltpu

C_IN = 128
C_MID = 128
C_REG = 9 * 4            # 36
C_CLS = 9 * 2            # 18
C_OUT = 128              # lane-dense fused-head output width (36 | 18 | pad)
C_K = 3 * C_IN           # K-packed input width: 3 dx taps * 128 channels


def _rpn_kernel(xm_ref, xh_ref, w_ref, b_ref, out_ref, win_ref):
    # xm_ref : (1, L, 384) bf16     main rows of this tile (flat padded image)
    # xh_ref : (1, 2*WP, 384) bf16  two halo rows directly below the tile
    # w_ref  : (3, 384, 128) bf16   folded (conv o heads) weights, dy-major,
    #                               K = 3 dx taps * 128 input channels
    # b_ref  : (1, 128) f32         folded bias
    # out_ref: (1, L, 128) bf16     lane-dense fused output slab (reg|cls|pad)
    # win_ref: (L + 2*WP, 384) bf16 haloed window scratch
    L = out_ref.shape[1]
    WP = xh_ref.shape[1] // 2

    # Assemble the haloed window; both stores are sublane-aligned
    # (L and WP are multiples of 8).
    win_ref[:L, :] = xm_ref[0]
    win_ref[L:, :] = xh_ref[0]

    # One bf16 MXU matmul per dy tap (dx taps are pre-packed along K by the
    # wrapper), accumulated as a single running f32 sum and stored once.
    acc = jnp.dot(win_ref[0:L, :], w_ref[0],
                  preferred_element_type=jnp.float32)
    acc = acc + jnp.dot(win_ref[WP:WP + L, :], w_ref[1],
                        preferred_element_type=jnp.float32)
    acc = acc + jnp.dot(win_ref[2 * WP:2 * WP + L, :], w_ref[2],
                        preferred_element_type=jnp.float32)

    out_ref[0] = (acc + b_ref[...]).astype(out_ref.dtype)


def region_proposal_pallas(x_nchw, params, tile_h=None):
    """x_nchw: (N, 128, H, W). Returns (reg, cls) in NCHW, dtype of x."""
    w3, b3, wr, br, wc, bc = (params["w3"], params["b3"], params["wr"],
                              params["br"], params["wc"], params["bc"])
    N, C, H, W = x_nchw.shape
    assert C == C_IN

    WP = pl.cdiv(W + 2, 8) * 8         # padded width, multiple of 8, >= W+2
    assert WP % 8 == 0 and WP >= W + 2

    if tile_h is None:
        # Whole image per step for small maps; cap per-step slab size so very
        # wide maps do not blow VMEM.  Must stay even (halo index_map).
        tile_h = H + (H % 2) if H <= 32 else 32
        while tile_h > 2 and tile_h * WP * C_K * 2 > (3 << 20):
            tile_h -= 2
    assert tile_h % 2 == 0 and tile_h >= 2

    HT = pl.cdiv(H, tile_h)            # number of row tiles
    HR = HT * tile_h                   # padded number of output rows
    HP = HR + 2                        # padded input rows (top + bottom halo)
    L = tile_h * WP                    # flat rows per output tile
    LW = L + 2 * WP                    # flat rows per haloed input window

    # NCHW -> NHWC bf16, zero-pad to (HP, WP), K-pack the 3 dx shifts along
    # channels, flatten rows.  XLA fuses this into a single copy pass.
    x_nhwc = jnp.transpose(x_nchw, (0, 2, 3, 1)).astype(jnp.bfloat16)
    x_pad = jnp.pad(x_nhwc, ((0, 0), (1, HP - H - 1), (1, WP - W - 1), (0, 0)))
    x_sh1 = jnp.pad(x_pad[:, :, 1:, :], ((0, 0), (0, 0), (0, 1), (0, 0)))
    x_sh2 = jnp.pad(x_pad[:, :, 2:, :], ((0, 0), (0, 0), (0, 2), (0, 0)))
    x_cat = jnp.concatenate([x_pad, x_sh1, x_sh2], axis=-1)   # (N, HP, WP, 384)
    x_flat = x_cat.reshape(N, HP * WP, C_K)

    # Fuse the two 1x1 heads into one lane-dense (128,128) weight, then fold
    # them through the 3x3 conv (exact: the module has no activation between
    # conv and heads).  Repack dy-major with K = (dx, cin).
    pad_lanes = C_OUT - C_REG - C_CLS
    wh = jnp.concatenate(
        [wr, wc, jnp.zeros((C_MID, pad_lanes), wr.dtype)], axis=1)
    bh = jnp.concatenate(
        [br, bc, jnp.zeros((1, pad_lanes), br.dtype)], axis=1)
    w_eff = jnp.einsum("tik,ko->tio", w3, wh)            # (9, 128, 128) f32
    w_big = w_eff.reshape(3, 3, C_IN, C_OUT).reshape(3, C_K, C_OUT)
    w_big = w_big.astype(jnp.bfloat16)                   # (3, 384, 128)
    b_eff = (jnp.dot(b3, wh) + bh).astype(jnp.float32)   # (1, 128)

    # VMEM budget from the actual buffers (double-buffered in/out blocks,
    # weights, window scratch) + headroom; safe on v7x's 64 MiB VMEM.
    vmem_bytes = (2 * (L + 2 * WP) * C_K * 2             # input blocks (bf16)
                  + 2 * L * C_OUT * 2                    # output blocks (bf16)
                  + 2 * (3 * C_K * C_OUT * 2 + C_OUT * 4)  # weights + bias
                  + LW * C_K * 2)                        # window scratch
    vmem_limit = int(vmem_bytes) + (8 << 20)

    slab = pl.pallas_call(
        _rpn_kernel,
        out_shape=jax.ShapeDtypeStruct((N, HT * L, C_OUT), jnp.bfloat16),
        grid_spec=pltpu.PrefetchScalarGridSpec(
            num_scalar_prefetch=0,
            grid=(N, HT),
            in_specs=[
                # main rows of this tile
                pl.BlockSpec((1, L, C_K), lambda n, t: (n, t, 0)),
                # 2 halo rows directly below the tile (same array, small block)
                pl.BlockSpec((1, 2 * WP, C_K),
                             lambda n, t: (n, (t + 1) * (tile_h // 2), 0)),
                pl.BlockSpec((3, C_K, C_OUT), lambda n, t: (0, 0, 0)),
                pl.BlockSpec((1, C_OUT), lambda n, t: (0, 0)),
            ],
            out_specs=pl.BlockSpec((1, L, C_OUT), lambda n, t: (n, t, 0)),
            scratch_shapes=[
                pltpu.VMEM((LW, C_K), jnp.bfloat16),     # haloed window
            ],
        ),
        compiler_params=pltpu.CompilerParams(
            dimension_semantics=("parallel", "parallel"),
            vmem_limit_bytes=vmem_limit,
        ),
    )(x_flat, x_flat, w_big, b_eff)

    # (N, HT*L, 128) -> (N, HR, WP, 128) -> crop valid region, split the fused
    # heads, go back to NCHW and restore the caller's dtype (fused by XLA).
    slab = slab.reshape(N, HR, WP, C_OUT)
    reg = jnp.transpose(slab[:, :H, :W, :C_REG],
                        (0, 3, 1, 2)).astype(x_nchw.dtype)
    cls = jnp.transpose(slab[:, :H, :W, C_REG:C_REG + C_CLS],
                        (0, 3, 1, 2)).astype(x_nchw.dtype)
    return reg, cls


def init_params(key):
    """Deterministic synthetic parameters matching the nn.Module shapes.

    PyTorch conv weight layout is (Cout, Cin, kh, kw); here the 3x3 weight is
    stored tap-major as (9, Cin, Cout) [tap = dy*3 + dx] and the 1x1 weights as
    (Cin, Cout) so the wrapper/kernel can matmul directly.
    """
    k1, k2, k3, k4, k5, k6 = jax.random.split(key, 6)
    scale3 = 1.0 / jnp.sqrt(C_IN * 9.0)
    scale1 = 1.0 / jnp.sqrt(C_IN * 1.0)
    return {
        "w3": (jax.random.normal(k1, (9, C_IN, C_MID), jnp.float32) * scale3),
        "b3": (jax.random.normal(k2, (1, C_MID), jnp.float32) * scale3),
        "wr": (jax.random.normal(k3, (C_MID, C_REG), jnp.float32) * scale1),
        "br": (jax.random.normal(k4, (1, C_REG), jnp.float32) * scale1),
        "wc": (jax.random.normal(k5, (C_MID, C_CLS), jnp.float32) * scale1),
        "bc": (jax.random.normal(k6, (1, C_CLS), jnp.float32) * scale1),
    }


def region_proposal_reference(x_nchw, params):
    """Pure-JAX f32 reference using lax.conv (NCHW), mirroring the PyTorch module."""
    w3 = jnp.transpose(params["w3"].reshape(3, 3, C_IN, C_MID), (3, 2, 0, 1))
    wr = jnp.transpose(params["wr"], (1, 0))[:, :, None, None]  # (36,128,1,1)
    wc = jnp.transpose(params["wc"], (1, 0))[:, :, None, None]  # (18,128,1,1)
    dn = ("NCHW", "OIHW", "NCHW")
    feat = lax.conv_general_dilated(x_nchw, w3, (1, 1), ((1, 1), (1, 1)),
                                    dimension_numbers=dn)
    feat = feat + params["b3"].reshape(1, C_MID, 1, 1)
    reg = lax.conv_general_dilated(feat, wr, (1, 1), ((0, 0), (0, 0)),
                                   dimension_numbers=dn)
    reg = reg + params["br"].reshape(1, C_REG, 1, 1)
    cls = lax.conv_general_dilated(feat, wc, (1, 1), ((0, 0), (0, 0)),
                                   dimension_numbers=dn)
    cls = cls + params["bc"].reshape(1, C_CLS, 1, 1)
    return reg, cls


if __name__ == "__main__":
    key = jax.random.PRNGKey(0)
    kx, kp = jax.random.split(key)

    N, H, W = 2, 16, 16
    x = jax.random.normal(kx, (N, C_IN, H, W), jnp.float32)
    params = init_params(kp)

    reg, cls = region_proposal_pallas(x, params)
    reg = jax.block_until_ready(reg)
    cls = jax.block_until_ready(cls)

    assert reg.shape == (N, C_REG, H, W), reg.shape
    assert cls.shape == (N, C_CLS, H, W), cls.shape

    reg_ref, cls_ref = region_proposal_reference(x, params)
    # bf16 MXU path (bf16 inputs/weights/outputs, f32 accumulation) ->
    # loosened tolerance vs the pure-f32 reference.
    assert jnp.allclose(reg, reg_ref, atol=5e-2, rtol=5e-2), (
        float(jnp.max(jnp.abs(reg - reg_ref))))
    assert jnp.allclose(cls, cls_ref, atol=5e-2, rtol=5e-2), (
        float(jnp.max(jnp.abs(cls - cls_ref))))

    print("KERNEL_OK")
</pallas_src>

<mosaic_0001>
module attributes {stable_mosaic.version = 11 : i64} {
  func.func @_rpn_kernel(%arg0: i32, %arg1: i32, %arg2: memref<1x384x384xbf16, #tpu.memory_space<vmem>>, %arg3: memref<1x48x384xbf16, #tpu.memory_space<vmem>>, %arg4: memref<3x384x128xbf16, #tpu.memory_space<vmem>>, %arg5: memref<1x128xf32, #tpu.memory_space<vmem>>, %arg6: memref<1x384x128xbf16, #tpu.memory_space<vmem>>, %arg7: memref<432x384xbf16, #tpu.memory_space<vmem>>) attributes {dimension_semantics = [#tpu.dimension_semantics<parallel>, #tpu.dimension_semantics<parallel>], iteration_bounds = array<i64: 2, 1>, scalar_prefetch = 0 : i64, scratch_operands = 1 : i64, tpu.core_type = #tpu.core_type<tc>, window_params = [{transform_indices = @transform_0, window_bounds = array<i64: 1, 384, 384>}, {transform_indices = @transform_1, window_bounds = array<i64: 1, 48, 384>}, {pipeline_mode = #tpu.pipeline_mode<synchronous>, transform_indices = @transform_2, window_bounds = array<i64: 3, 384, 128>}, {pipeline_mode = #tpu.pipeline_mode<synchronous>, transform_indices = @transform_3, window_bounds = array<i64: 1, 128>}, {transform_indices = @transform_4, window_bounds = array<i64: 1, 384, 128>}]} {
    %c0 = arith.constant 0 : index
    %c0_0 = arith.constant 0 : index
    %c0_1 = arith.constant 0 : index
    %0 = vector.load %arg2[%c0, %c0_0, %c0_1] : memref<1x384x384xbf16, #tpu.memory_space<vmem>>, vector<1x384x384xbf16>
    %1 = vector.shape_cast %0 : vector<1x384x384xbf16> to vector<384x384xbf16>
    %c0_2 = arith.constant 0 : index
    %c0_3 = arith.constant 0 : index
    %2 = vector.load %arg7[%c0_2, %c0_3] : memref<432x384xbf16, #tpu.memory_space<vmem>>, vector<384x384xbf16>
    tpu.vector_store %arg7[%c0_2, %c0_3], %1 {strides = array<i32>} : memref<432x384xbf16, #tpu.memory_space<vmem>>, vector<384x384xbf16>,
    %c0_4 = arith.constant 0 : index
    %c0_5 = arith.constant 0 : index
    %c0_6 = arith.constant 0 : index
    %3 = vector.load %arg3[%c0_4, %c0_5, %c0_6] : memref<1x48x384xbf16, #tpu.memory_space<vmem>>, vector<1x48x384xbf16>
    %4 = vector.shape_cast %3 : vector<1x48x384xbf16> to vector<48x384xbf16>
    %c384 = arith.constant 384 : index
    %c0_7 = arith.constant 0 : index
    %5 = vector.load %arg7[%c384, %c0_7] : memref<432x384xbf16, #tpu.memory_space<vmem>>, vector<48x384xbf16>
    tpu.vector_store %arg7[%c384, %c0_7], %4 {strides = array<i32>} : memref<432x384xbf16, #tpu.memory_space<vmem>>, vector<48x384xbf16>,
    %c0_8 = arith.constant 0 : index
    %c0_9 = arith.constant 0 : index
    %6 = vector.load %arg7[%c0_8, %c0_9] : memref<432x384xbf16, #tpu.memory_space<vmem>>, vector<384x384xbf16>
    %c0_10 = arith.constant 0 : index
    %c0_11 = arith.constant 0 : index
    %c0_12 = arith.constant 0 : index
    %7 = vector.load %arg4[%c0_10, %c0_11, %c0_12] : memref<3x384x128xbf16, #tpu.memory_space<vmem>>, vector<1x384x128xbf16>
    %8 = vector.shape_cast %7 : vector<1x384x128xbf16> to vector<384x128xbf16>
    %cst = arith.constant dense<0.000000e+00> : vector<384x128xf32>
    %9 = tpu.matmul %6, %8, %cst {dimension_numbers = #tpu.dot_dimension_numbers<[1], [0], [0], [1], [0, 0, 1, 1], [], []>} : vector<384x384xbf16>, vector<384x128xbf16>, vector<384x128xf32> -> vector<384x128xf32>
    %c24 = arith.constant 24 : index
    %c0_13 = arith.constant 0 : index
    %10 = vector.load %arg7[%c24, %c0_13] : memref<432x384xbf16, #tpu.memory_space<vmem>>, vector<384x384xbf16>
    %c1 = arith.constant 1 : index
    %c0_14 = arith.constant 0 : index
    %c0_15 = arith.constant 0 : index
    %11 = vector.load %arg4[%c1, %c0_14, %c0_15] : memref<3x384x128xbf16, #tpu.memory_space<vmem>>, vector<1x384x128xbf16>
    %12 = vector.shape_cast %11 : vector<1x384x128xbf16> to vector<384x128xbf16>
    %cst_16 = arith.constant dense<0.000000e+00> : vector<384x128xf32>
    %13 = tpu.matmul %10, %12, %cst_16 {dimension_numbers = #tpu.dot_dimension_numbers<[1], [0], [0], [1], [0, 0, 1, 1], [], []>} : vector<384x384xbf16>, vector<384x128xbf16>, vector<384x128xf32> -> vector<384x128xf32>
    %14 = arith.addf %9, %13 : vector<384x128xf32>
    %c48 = arith.constant 48 : index
    %c0_17 = arith.constant 0 : index
    %15 = vector.load %arg7[%c48, %c0_17] : memref<432x384xbf16, #tpu.memory_space<vmem>>, vector<384x384xbf16>
    %c2 = arith.constant 2 : index
    %c0_18 = arith.constant 0 : index
    %c0_19 = arith.constant 0 : index
    %16 = vector.load %arg4[%c2, %c0_18, %c0_19] : memref<3x384x128xbf16, #tpu.memory_space<vmem>>, vector<1x384x128xbf16>
    %17 = vector.shape_cast %16 : vector<1x384x128xbf16> to vector<384x128xbf16>
    %cst_20 = arith.constant dense<0.000000e+00> : vector<384x128xf32>
    %18 = tpu.matmul %15, %17, %cst_20 {dimension_numbers = #tpu.dot_dimension_numbers<[1], [0], [0], [1], [0, 0, 1, 1], [], []>} : vector<384x384xbf16>, vector<384x128xbf16>, vector<384x128xf32> -> vector<384x128xf32>
    %19 = arith.addf %14, %18 : vector<384x128xf32>
    %c0_21 = arith.constant 0 : index
    %c0_22 = arith.constant 0 : index
    %20 = vector.load %arg5[%c0_21, %c0_22] : memref<1x128xf32, #tpu.memory_space<vmem>>, vector<1x128xf32>
    %21 = vector.broadcast %20 : vector<1x128xf32> to vector<384x128xf32>
    %22 = arith.addf %19, %21 : vector<384x128xf32>
    %23 = arith.truncf %22 : vector<384x128xf32> to vector<384x128xbf16>
    %c0_23 = arith.constant 0 : index
    %c0_24 = arith.constant 0 : index
    %c0_25 = arith.constant 0 : index
    %24 = vector.load %arg6[%c0_23, %c0_24, %c0_25] : memref<1x384x128xbf16, #tpu.memory_space<vmem>>, vector<1x384x128xbf16>
    %25 = vector.shape_cast %24 : vector<1x384x128xbf16> to vector<384x128xbf16>
    %26 = vector.shape_cast %23 : vector<384x128xbf16> to vector<1x384x128xbf16>
    tpu.vector_store %arg6[%c0_23, %c0_24, %c0_25], %26 {strides = array<i32>} : memref<1x384x128xbf16, #tpu.memory_space<vmem>>, vector<1x384x128xbf16>,
    return
  }
  func.func @transform_0(%arg0: i32, %arg1: i32) -> (i32, i32, i32) {
    %c0_i32 = arith.constant 0 : i32
    %c0_i32_0 = arith.constant 0 : i32
    return %arg0, %arg1, %c0_i32 : i32, i32, i32
  }
  func.func @transform_1(%arg0: i32, %arg1: i32) -> (i32, i32, i32) {
    %c1_i32 = arith.constant 1 : i32
    %0 = arith.addi %arg1, %c1_i32 : i32
    %c8_i32 = arith.constant 8 : i32
    %1 = arith.muli %0, %c8_i32 : i32
    %c0_i32 = arith.constant 0 : i32
    %c0_i32_0 = arith.constant 0 : i32
    return %arg0, %1, %c0_i32 : i32, i32, i32
  }
  func.func @transform_2(%arg0: i32, %arg1: i32) -> (i32, i32, i32) {
    %c0_i32 = arith.constant 0 : i32
    %c0_i32_0 = arith.constant 0 : i32
    %c0_i32_1 = arith.constant 0 : i32
    %c0_i32_2 = arith.constant 0 : i32
    return %c0_i32, %c0_i32_0, %c0_i32_1 : i32, i32, i32
  }
  func.func @transform_3(%arg0: i32, %arg1: i32) -> (i32, i32) {
    %c0_i32 = arith.constant 0 : i32
    %c0_i32_0 = arith.constant 0 : i32
    %c0_i32_1 = arith.constant 0 : i32
    return %c0_i32, %c0_i32_0 : i32, i32
  }
  func.func @transform_4(%arg0: i32, %arg1: i32) -> (i32, i32, i32) {
    %c0_i32 = arith.constant 0 : i32
    %c0_i32_0 = arith.constant 0 : i32
    return %arg0, %arg1, %c0_i32 : i32, i32, i32
  }
}

</mosaic_0001>

<bundles_post_ra>
// kernel: tpu_custom_call.1
= control target key start
LH: loop header
LB: loop body
LE: loop exit
PB: predicated region body
PF: predicated region fallthrough
CT: control target
= control target key end

     0   :  { %s6600_s0 = inlined_call_operand.hbm [shape: bf16[2,432,384], index: 0, kind: input, shape index: {}]   ;;  %s6601_s1 = inlined_call_operand.hbm [shape: bf16[2,432,384], index: 1, kind: input, shape index: {}]   ;;  %s6602_s2 = inlined_call_operand.hbm [shape: bf16[3,384,128], index: 2, kind: input, shape index: {}]   ;;  %s6603_s3 = inlined_call_operand.vmem [shape: f32[1,128], index: 3, kind: input, shape index: {}]   ;;  %s6604_s4 = inlined_call_operand.hbm [shape: bf16[2,384,128], index: 4, kind: output, shape index: {}]  }
   0x1   :  { %6610 = sst [smem:[#allocation40_spill]] %s6600_s0 }
   0x2   :  { %6611 = sst [smem:[#allocation41_spill]] %s6602_s2 }
   0x3   :  { %9 = vsyncpa [#allocation4], 0 }
   0x4   :  { %11 = vsyncpa [#allocation4 + $0x1], 0 }
   0x5   :  { %12 = vsyncpa [#allocation7], 0 }
   0x6   :  { %14 = vsyncpa [#allocation7 + $0x1], 0 }
   0x7   :  { %15 = vsyncpa [#allocation5], 0 }
   0x8   :  { %17 = vsyncpa [#allocation5 + $0x1], 0  ;;  %s5010_s15 = smov 0   ;;  %s5012_s16 = smov 0  }
   0x9   :  { %s5014_s17 = smov 0   ;;  %s5016_s18 = smov 0  }
   0xa   :  { %s5018_s19 = smov 0   ;;  %s5020_s20 = smov 0  }
   0xb LB: > { %6612 = sst [smem:[#allocation14_spill]] %s4960_s17  ;;  %s5041_s21 = sadd.s32 4294967295, %s4972_s20   ;;  %s4972_s20 = sphi %s5020_s20, %s23_s20   ;;  %s4968_s19 = sphi %s5018_s19, %s6731_s19   ;;  %s4964_s18 = sphi %s5016_s18, %s6730_s18   ;;  %s4960_s17 = sphi %s5014_s17, %s6726_s17   ;;  %s4956_s16 = sphi %s5012_s16, %s6729_s16   ;;  %s4952_s15 = sphi %s5010_s15, %s6728_s15  }
   0xc   : > { %s3798_s22 = sadd.s32 4294967294, %s4972_s20   ;;  %p57_p0 = scmp.ne.s32.totalorder %s4956_s16, %s4952_s15 }
   0xd   : > { %p6605_p1 = scmp.eq.s32.totalorder %s5041_s21, 0  ;;  %p163_p3 = scmp.eq.s32.totalorder %s3798_s22, 1 }
   0xe   : > { %p3799_p5 = scmp.ge.s32.totalorder %s4972_s20, 1  ;;  %p170_p7 = scmp.lt.s32.totalorder %s4972_s20, 3 }
   0xf   : > { %p5050_p4 = por %p6605_p1, %p57_p0  ;;  %p5055_p6 = por %p163_p3, %p57_p0 }
  0x10   : > { %p5060_p8 = pnand %p3799_p5, %p170_p7  ;;  %s4974_s26 = smov [#allocation8]  }
  0x11   : > { %s6613_s23 = scalar_select %p5050_p4, 1, 0 }
  0x12   : > { %s6614_s24 = scalar_select %p5055_p6, 1, 0 }
  0x13   : > { %s6615_s25 = scalar_select %p5060_p8, 1, 0 }
  0x14   : > { %s182_s27 = sshll.u32 %s4974_s26, 4  ;;  %p4523_p9 = pneg %p5060_p8  ;;  %s183_s27 = int_to_ptr.vmem [resolvable:$true] %s182_s27 }
  0x15   : > { %s35_s29 = sadd.s32 1, %s4968_s19  ;;  %s6617_s2 = sld [smem:[#allocation41_spill]] }
  0x16   : > { %p5069_p11 = pnand %p4523_p9, %p6605_p1 }
  0x18   : > { %p4795_p13 = pneg %p5069_p11 }
  0x1b   : > { %s4793_s6 = scalar_lea.hbm %s6617_s2, 9216 }
  0x1c   : > { %p4794_p12 = scmp.ne.s32.totalorder %s6617_s2, %s4793_s6  ;;  %p4800_p5 = scmp.lt.u32.totalorder %s4793_s6, %s6617_s2 }
  0x1e   : > { %p4796_p0 = pnand %p4795_p13, %p4794_p12 }
  0x20   : > { %p4797_p3 = pneg %p4796_p0 }
  0x22   : > { %p4802_p7 = pnand %p4800_p5, %p4797_p3 }
  0x24   : > { %4805 = shalt.err (!%p4802_p7)
}
  0x25   : > { %s4806_s11 = scalar_lea.vmem %s183_s27, 9216  ;;  %p4814_p2 = scmp.lt.s32.totalorder %s183_s27, %s183_s27 }
  0x26   : > { %p4807_p9 = scmp.ne.s32.totalorder %s183_s27, %s4806_s11  ;;  %p4815_p6 = scmp.lt.s32.totalorder %s4806_s11, %s4806_s11 }
  0x28   : > { %p4809_p10 = pnand %p4807_p9, %p4795_p13  ;;  %p4816_p4 = por %p4815_p6, %p4814_p2 }
  0x2a   : > { %p4810_p1 = pneg %p4809_p10 }
  0x2c   : > { %p4817_p8 = pnand %p4816_p4, %p4810_p1 }
  0x2e   : > { %4820 = shalt.err (!%p4817_p8)
}
  0x2f   : > { %s4975_s12 = smov 64   ;;  %s4976_s13 = smov 4  }
  0x30   : > { %4526 = dma.hbm_to_vmem [thread:$0]  (!%p5069_p11), %s6617_s2, 9216, %s183_s27, [#allocation7], %s4975_s12, %s4975_s12, %s4976_s13  }
  0x31   : > { %p37_p1 = scmp.ge.s32.totalorder %s35_s29, 2  ;;  %s44_s26 = sadd.s32 1, %s4960_s17 }
  0x32   : > { %p51_p2 = scmp.ne.s32.totalorder %s4960_s17, %s4956_s16  ;;  %p52_p4 = scmp.eq.s32.totalorder %s4972_s20, 0 }
  0x33   : > { %s6733_s29 = smov (%p37_p1, %s35_s29), 0  ;;  %p6619_p8 = scmp.eq.s32.totalorder %s5041_s21, 1 }
  0x34   : > { %6618 = sst [smem:[#allocation15_spill]] %s6733_s29  ;;  %p53_p6 = por %p52_p4, %p51_p2 }
  0x35   : > { %p5098_p10 = por %p6619_p8, %p51_p2  ;;  %s39_s28 = ssub.s32 %s4968_s19, %s6733_s29 }
  0x36   : > { %p4539_p12 = scmp.lt.s32.totalorder %s4972_s20, 2  ;;  %p42_p13 = scmp.eq.s32.totalorder %s39_s28, 0 }
  0x37   : > { %s5106_s5 = sand.u32 1, %s4960_s17   ;;  %s4507_s7 = smul.u32 10368, %s4968_s19 }
  0x38   : > { %s4506_s27 = smul.u32 576, %s5106_s5  ;;  %p5113_p11 = pnand %p4539_p12, %p53_p6 }
  0x39   : > { %s5110_s6 = scalar_select %p42_p13, %s4960_s17, %s44_s26  }
  0x3a   : > { %s203_s8 = scalar_lea.vmem [#allocation3], %s4506_s27  ;;  %s6623_s0 = sld [smem:[#allocation40_spill]] }
  0x3b   : > { %6621 = sst [smem:[#allocation16_spill]] %s5110_s6  ;;  %s220_s9 = sshll.u32 %s203_s8, 4  ;;  %s5124_s9 = int_to_ptr.vmem [resolvable:$true] %s220_s9 }
  0x3c   : > { %s200_s22 = scalar_lea.sflag [#allocation4], %s5106_s5  ;;  %p4823_p3 = pneg %p5113_p11 }
  0x40   : > { %s5122_s13 = scalar_lea.hbm %s6623_s0, %s4507_s7  ;;  %s4826_s8 = scalar_lea.hbm %s6623_s0, 20736 }
  0x41   : > { %s4821_s26 = scalar_lea.hbm %s5122_s13, 9216  ;;  %p4827_p9 = scmp.lt.u32.totalorder %s5122_s13, %s6623_s0 }
  0x42   : > { %p4822_p0 = scmp.ne.s32.totalorder %s5122_s13, %s4821_s26  ;;  %p4828_p1 = scmp.lt.u32.totalorder %s4826_s8, %s4821_s26 }
  0x43   : > { %p4830_p4 = scmp.lt.u32.totalorder %s4821_s26, %s5122_s13 }
  0x44   : > { %p4824_p5 = pnand %p4823_p3, %p4822_p0  ;;  %p4829_p2 = por %p4828_p1, %p4827_p9 }
  0x46   : > { %p4825_p7 = pneg %p4824_p5  ;;  %p4831_p6 = por %p4830_p4, %p4829_p2 }
  0x48   : > { %p4832_p8 = pnand %p4831_p6, %p4825_p7 }
  0x4a   : > { %4835 = shalt.err (!%p4832_p8)
}
  0x4b   : > { %s4836_s14 = scalar_lea.vmem %s5124_s9, 9216  ;;  %s4977_s28 = smov [#allocation3]  }
  0x4c   : > { %p4837_p12 = scmp.ne.s32.totalorder %s5124_s9, %s4836_s14  ;;  %s4841_s27 = sshll.u32 %s4977_s28, 4  ;;  %s4842_s27 = int_to_ptr.vmem [resolvable:$false] %s4841_s27 }
  0x4d   : > { %s4843_s11 = scalar_lea.vmem %s4842_s27, 18432  ;;  %p4844_p5 = scmp.lt.s32.totalorder %s5124_s9, %s4842_s27 }
  0x4e   : > { %p4839_p13 = pnand %p4837_p12, %p4823_p3  ;;  %p4845_p9 = scmp.lt.s32.totalorder %s4843_s11, %s4836_s14 }
  0x50   : > { %p4840_p0 = pneg %p4839_p13  ;;  %p4846_p1 = por %p4845_p9, %p4844_p5 }
  0x52   : > { %p4847_p2 = pnand %p4846_p1, %p4840_p0 }
  0x54   : > { %4850 = shalt.err (!%p4847_p2)
}
  0x55   : > { %s4978_s26 = smov 192   ;;  %s4979_s8 = smov 12  }
  0x56   : > { %4530 = dma.hbm_to_vmem [thread:$0]  (!%p5113_p11), %s5122_s13, 9216, %s5124_s9, %s200_s22, %s4978_s26, %s4978_s26, %s4979_s8  }
  0x57   : > { %s4508_s14 = smul.u32 72, %s5106_s5  ;;  %s3719_s27 = scalar_lea.hbm %s6601_s1, %s4507_s7 }
  0x58   : > { %s5164_s11 = scalar_lea.hbm %s3719_s27, 9216  ;;  %s6624_s29 = sand.u32 1, %s4972_s20  }
  0x59   : > { %s234_s0 = scalar_lea.vmem [#allocation6], %s4508_s14  ;;  %s5170_s6 = scalar_lea.sflag [#allocation7], %s6624_s29 }
  0x5a   : > { %s246_s2 = sshll.u32 %s234_s0, 4  ;;  %s4881_s17 = scalar_lea.hbm %s3719_s27, 10368  ;;  %s5166_s2 = int_to_ptr.vmem [resolvable:$true] %s246_s2 }
  0x5b   : > { %p4852_p7 = scmp.ne.s32.totalorder %s5164_s11, %s4881_s17  ;;  %s4856_s9 = scalar_lea.hbm %s6601_s1, 20736 }
  0x5c   : > { %p4857_p8 = scmp.lt.u32.totalorder %s5164_s11, %s6601_s1  ;;  %p4858_p12 = scmp.lt.u32.totalorder %s4856_s9, %s4881_s17 }
  0x5d   : > { %p4854_p4 = pnand %p4852_p7, %p4823_p3  ;;  %p4860_p0 = scmp.lt.u32.totalorder %s4881_s17, %s5164_s11 }
  0x5e   : > { %p4859_p13 = por %p4858_p12, %p4857_p8 }
  0x5f   : > { %p4855_p6 = pneg %p4854_p4 }
  0x60   : > { %p4861_p5 = por %p4860_p0, %p4859_p13 }
  0x62   : > { %p4862_p9 = pnand %p4861_p5, %p4855_p6 }
  0x64   : > { %4865 = shalt.err (!%p4862_p9)
}
  0x65   : > { %s4866_s0 = scalar_lea.vmem %s5166_s2, 1152  ;;  %s4980_s29 = smov [#allocation6]  }
  0x66   : > { %p4867_p1 = scmp.ne.s32.totalorder %s5166_s2, %s4866_s0  ;;  %s4871_s14 = sshll.u32 %s4980_s29, 4  ;;  %s4872_s14 = int_to_ptr.vmem [resolvable:$false] %s4871_s14 }
  0x67   : > { %s4873_s12 = scalar_lea.vmem %s4872_s14, 2304  ;;  %p4874_p4 = scmp.lt.s32.totalorder %s5166_s2, %s4872_s14 }
  0x68   : > { %p4869_p2 = pnand %p4867_p1, %p4823_p3  ;;  %p4875_p8 = scmp.lt.s32.totalorder %s4873_s12, %s4866_s0 }
  0x6a   : > { %p4870_p7 = pneg %p4869_p2  ;;  %p4876_p12 = por %p4875_p8, %p4874_p4 }
  0x6c   : > { %p4877_p13 = pnand %p4876_p12, %p4870_p7 }
  0x6e   : > { %4880 = shalt.err (!%p4877_p13)
}
  0x6f   : > { %4533 = dma.hbm_to_vmem [thread:$0]  (!%p5113_p11), %s5164_s11, 1152, %s5166_s2, %s5170_s6, %s4978_s26, %s4978_s26, %s4979_s8  }
  0x70   : > { %p6625_p3 = scmp.ne.s32.totalorder %s6615_s25, 0 }
  0x72   : > { %258 = sbr.rel (%p6625_p3) target bundleno = 845 (0x34d), region = 36 }
  0x79   : > { %s5201_s17 = sand.u32 1, %s4956_s16   ;;  %p6626_p6 = scmp.ne.s32.totalorder %s6613_s23, 0 }
  0x7a   : > { %s4509_s28 = smul.u32 576, %s5201_s17  ;;  %s261_s27 = scalar_lea.sflag [#allocation4], %s5201_s17 }
  0x7c   : > { %s5205_s5 = scalar_lea.vmem [#allocation3], %s4509_s28 }
  0x7d   : > { %4935 = dma.done.wait (%p6626_p6), %s261_s27, 9216  }
  0x7e   : > { %4937 = vsyncadd (%p6626_p6), %s261_s27, 4294958080  ;;  %s269_s2 = sand.u32 1, %s5041_s21   ;;  %s4510_s25 = smul.u32 72, %s5201_s17 }
  0x7f   : > { %s270_s6 = scalar_lea.sflag [#allocation7], %s269_s2 }
  0x80   : > { %s5213_s10 = scalar_lea.vmem [#allocation6], %s4510_s25 }
  0x81   : > { %4939 = dma.done.wait (%p6626_p6), %s270_s6, 1152  }
  0x82   : > { %4941 = vsyncadd (%p6626_p6), %s270_s6, 4294966144  ;;  %p6627_p11 = scmp.eq.s32.totalorder %s5041_s21, 0 }
  0x84   : > { %4943 = dma.done.wait (%p6627_p11), [#allocation7], 9216   ;;  %p6628_p0 = pmov %p6627_p11 }
  0x85   : > { %v4981_v0 = vmov 0   ;;  %v4598_v1 = vld [vmem:[#allocation8 + $0xc0] sm:$0xff]   ;;  %v4600_v3 = vld [vmem:[#allocation8 + $0xc8] sm:$0xff]   ;;  %v5232_v5 = vld [vmem:[#allocation8 + $0x150] sm:$0xff]   ;;  %vm1192_vm0 = vcmask 1043456   ;;  %s4511_s26 = smul.u32 192, %s5201_s17 }
  0x86   : > { %4945 = vsyncadd (%p6628_p0), [#allocation7], 4294958080  ;;  %1556 = vmatprep.subr.bf16.mxu0 %v4981_v0  ;;  %v5224_v2 = vld [vmem:[#allocation8 + $0x140] sm:$0xff]   ;;  %v5228_v4 = vld [vmem:[#allocation8 + $0x148] sm:$0xff]   ;;  %s4512_s11 = smul.u32 3072, %s4964_s18  ;;  %s3659_s18 = scalar_lea.sflag [#allocation5], %s5201_s17 }
  0x87   : > { %1557 = vmatpush1.bf16.msra.mxu0 %v4598_v1  ;;  %4490 = vmatprep.subr.bf16.mxu1 %v5224_v2  ;;  %v4602_v6 = vld [vmem:[#allocation8 + $0xd0] sm:$0xff]   ;;  %v5237_v7 = vld [vmem:[#allocation8 + $0x158] sm:$0xff]   ;;  %v5242_v9 = vld [vmem:[#allocation8 + $0x160] sm:$0xff]   ;;  %s6376_s8 = scalar_lea.vmem [#allocation9], %s4511_s26  ;;  %s4982_s29 = smov [#allocation9]  }
  0x88   : > { %1558 = vmatprep.subr.bf16.mxu0 %v4981_v0  ;;  %4498 = vmatpush3.bf16.msra.mxu1 %v5224_v2  ;;  %v4604_v8 = vld [vmem:[#allocation8 + $0xd8] sm:$0xff]   ;;  %v4606_v10 = vld [vmem:[#allocation8 + $0xe0] sm:$0xff]   ;;  %v5245_v11 = vld [vmem:[#allocation8 + $0x168] sm:$0xff]   ;;  %s3674_s7 = sshll.u32 %s6376_s8, 4  ;;  %s6547_s22 = scalar_lea.hbm %s6604_s4, %s4512_s11  ;;  %s6549_s7 = int_to_ptr.vmem [resolvable:$true] %s3674_s7 }
  0x89   : > { %4491 = vmatprep.subr.bf16.mxu1 %v5228_v4  ;;  %v5250_v12 = vld [vmem:[%s5205_s5 + $0xe0] ss:$12 sps:$4 sm:$0xff]   ;;  %v4615_v13 = vld [vmem:[%s5205_s5 + $0xf8] ss:$12 sps:$4 sm:$0xff]   ;;  %v4617_v17 = vld [vmem:[%s5205_s5 + $0x110] ss:$12 sps:$4 sm:$0xff]  }
  0x8a   : > { %v4608_v14 = vld [vmem:[#allocation8 + $0xe8] sm:$0xff]   ;;  %827 = vst [vmem:[#allocation2 + $0xe8] sm:$0xff] %v5250_v12  ;;  %830 = vst [vmem:[#allocation2 + $0x100] sm:$0xff] %v4615_v13  ;;  %v1242_v15 = vrot.slane %v5250_v12, 4  ;;  %v1248_v16 = vrot.slane %v4615_v13, 4  ;;  %v5259_v18 = vld [vmem:[#allocation8 + $0x170] sm:$0xff]  }
  0x8b   : > { %1559 = vmatpush1.bf16.msra.mxu0 %v4600_v3  ;;  %v4610_v20 = vld [vmem:[#allocation8 + $0xf0] sm:$0xff]   ;;  %833 = vst [vmem:[#allocation2 + $0x118] sm:$0xff] %v4617_v17  ;;  %v4621_v21 = vld [vmem:[%s5205_s5 + $0x128] ss:$12 sps:$4 sm:$0xff]   ;;  %v1254_v25 = vrot.slane %v4617_v17, 4  ;;  %v4619_v33 = vld [vmem:[#allocation8 + $0x108] sm:$0xff]  }
  0x8c   : > { %1560 = vmatprep.subr.bf16.mxu0 %v4981_v0  ;;  %4499 = vmatpush3.bf16.msra.mxu1 %v5228_v4  ;;  %v1249_v19 = vsel %vm1192_vm0, %v1242_v15, %v1248_v16  ;;  %v5268_v22 = vld [vmem:[#allocation8 + $0x178] sm:$0xff]   ;;  %836 = vst [vmem:[#allocation2 + $0x130] sm:$0xff] %v4621_v21  ;;  %v4616_v26 = vld [vmem:[#allocation8 + $0x100] sm:$0xff]   ;;  %v1260_v27 = vrot.slane %v4621_v21, 4  ;;  %v4627_v28 = vld [vmem:[%s5205_s5 + $0x158] ss:$12 sps:$4 sm:$0xff]  }
  0x8d   : > { %4492 = vmatprep.subr.bf16.mxu1 %v5232_v5  ;;  %4330 = vmatprep.mubr.bf16.mxu1 %v1249_v19  ;;  %v4612_v23 = vld [vmem:[#allocation8 + $0xf8] sm:$0xff]   ;;  %v1255_v29 = vsel %vm1192_vm0, %v1248_v16, %v1254_v25  ;;  %v4618_v30 = vld [vmem:[#allocation8] sm:$0xff]   ;;  %842 = vst [vmem:[#allocation2 + $0x160] sm:$0xff] %v4627_v28  ;;  %v4620_v34 = vld [vmem:[#allocation8 + $0x8] sm:$0xff]   ;;  %v1272_v37 = vrot.slane %v4627_v28, 4  ;;  %s4882_s0 = scalar_lea.vmem %s6549_s7, 3072 }
  0x8e   : > { %v4623_v24 = vld [vmem:[%s5205_s5 + $0x140] ss:$12 sps:$4 sm:$0xff]   ;;  %v4629_v31 = vld [vmem:[%s5205_s5 + $0x170] ss:$12 sps:$4 sm:$0xff]   ;;  %v1261_v32 = vsel %vm1192_vm0, %v1254_v25, %v1260_v27  ;;  %v5283_v36 = vld [vmem:[%s5205_s5 + $0x188] ss:$12 sps:$4 sm:$0xff]   ;;  %p4883_p5 = scmp.ne.s32.totalorder %s6549_s7, %s4882_s0 }
  0x8f   : > { %1561 = vmatpush1.bf16.msra.mxu0 %v4602_v6  ;;  %839 = vst [vmem:[#allocation2 + $0x148] sm:$0xff] %v4623_v24  ;;  %845 = vst [vmem:[#allocation2 + $0x178] sm:$0xff] %v4629_v31  ;;  %v1266_v35 = vrot.slane %v4623_v24, 4  ;;  %v4622_v38 = vld [vmem:[#allocation8 + $0x110] sm:$0xff]   ;;  %v4625_v42 = vld [vmem:[#allocation8 + $0x118] sm:$0xff]   ;;  %v1278_v45 = vrot.slane %v4629_v31, 4 }
  0x90   : > { %1562 = vmatprep.subr.bf16.mxu0 %v4981_v0  ;;  %4500 = vmatpush3.bf16.msra.mxu1 %v5232_v5  ;;  %848 = vst [vmem:[#allocation2 + $0x190] sm:$0xff] %v5283_v36  ;;  %v5288_v39 = vld [vmem:[%s5205_s5 + $0x1a0] ss:$12 sps:$4 sm:$0xff]   ;;  %v5296_v46 = vld [vmem:[%s5205_s5 + $0x1c] ss:$12 sps:$4 sm:$0xff]   ;;  %v4628_v51 = vld [vmem:[#allocation8 + $0x120] sm:$0xff]   ;;  %p4884_p9 = pnand %p4883_p5, %p5098_p10 }
  0x91   : > { %4493 = vmatprep.subr.bf16.mxu1 %v5237_v7  ;;  %v1267_v40 = vsel %vm1192_vm0, %v1260_v27, %v1266_v35  ;;  %v4624_v41 = vld [vmem:[#allocation8 + $0x10] sm:$0xff]   ;;  %851 = vst [vmem:[#allocation2 + $0x1a8] sm:$0xff] %v5288_v39  ;;  %v1273_v43 = vsel %vm1192_vm0, %v1266_v35, %v1272_v37  ;;  %v4626_v44 = vld [vmem:[#allocation8 + $0x18] sm:$0xff]   ;;  %v5306_v49 = vld [vmem:[%s5205_s5 + $0x30] ss:$12 sps:$4 sm:$0xff]   ;;  %v1284_v52 = vrot.slane %v5283_v36, 4  ;;  %v1279_v55 = vsel %vm1192_vm0, %v1272_v37, %v1278_v45 }
  0x92   : > { %v5300_v47 = vld [vmem:[%s5205_s5 + $0x34] ss:$12 sps:$4 sm:$0xff]   ;;  %v5303_v48 = vld [vmem:[%s5205_s5 + $0x18] ss:$12 sps:$4 sm:$0xff]   ;;  %802 = vst [vmem:[#allocation2 + $0x20] sm:$0xff] %v5296_v46  ;;  %v1290_v1 = vrot.slane %v5288_v39, 4  ;;  %p4885_p1 = pneg %p4884_p9 }
  0x93   : > { %1563 = vmatpush1.bf16.msra.mxu0 %v4604_v8  ;;  %v5310_v50 = vld [vmem:[%s5205_s5 + $0x1b8] ss:$12 sps:$4 sm:$0xff]   ;;  %801 = vst [vmem:[#allocation2 + $0x18] sm:$0xff] %v5303_v48  ;;  %v4630_v53 = vld [vmem:[#allocation8 + $0x20] sm:$0xff]   ;;  %v1197_v57 = vrot.slane %v5300_v47, 4  ;;  %v1285_v58 = vsel %vm1192_vm0, %v1278_v45, %v1284_v52  ;;  %v4637_v21 = vld [vmem:[#allocation8 + $0x138] sm:$0xff]  }
  0x94   : > { %1564 = vmatprep.subr.bf16.mxu0 %v4981_v0  ;;  %4501 = vmatpush3.bf16.msra.mxu1 %v5237_v7  ;;  %854 = vst [vmem:[#allocation2 + $0x1c0] sm:$0xff] %v5310_v50  ;;  %v5317_v54 = vld [vmem:[%s5205_s5 + $0x1d0] ss:$12 sps:$4 sm:$0xff]   ;;  %v5326_v59 = vld [vmem:[%s5205_s5 + $0x4c] ss:$12 sps:$4 sm:$0xff]   ;;  %v4634_v8 = vld [vmem:[#allocation8 + $0x130] sm:$0xff]   ;;  %v1291_v19 = vsel %vm1192_vm0, %v1284_v52, %v1290_v1 }
  0x95   : > { %4494 = vmatprep.subr.bf16.mxu1 %v5242_v9  ;;  %v4631_v56 = vld [vmem:[#allocation8 + $0x128] sm:$0xff]   ;;  %857 = vst [vmem:[#allocation2 + $0x1d8] sm:$0xff] %v5317_v54  ;;  %v5329_v60 = vld [vmem:[%s5205_s5 + $0x48] ss:$12 sps:$4 sm:$0xff]   ;;  %808 = vst [vmem:[#allocation2 + $0x50] sm:$0xff] %v5326_v59  ;;  %v1302_v28 = vrot.slane %v5317_v54, 4 }
  0x96   : > { %v5332_v61 = vld [vmem:[%s5205_s5 + $0x1e8] ss:$12 sps:$4 sm:$0xff]   ;;  %807 = vst [vmem:[#allocation2 + $0x48] sm:$0xff] %v5329_v60  ;;  %v4632_v63 = vld [vmem:[#allocation8 + $0x28] sm:$0xff]   ;;  %v5340_v6 = vld [vmem:[%s5205_s5 + $0x200] ss:$12 sps:$4 sm:$0xff]  }
  0x97   : > { %1565 = vmatpush1.bf16.msra.mxu0 %v4606_v10  ;;  %860 = vst [vmem:[#allocation2 + $0x1f0] sm:$0xff] %v5332_v61  ;;  %v1296_v10 = vrot.slane %v5310_v50, 4  ;;  %v4636_v13 = vld [vmem:[#allocation8 + $0x30] sm:$0xff]   ;;  %863 = vst [vmem:[#allocation2 + $0x208] sm:$0xff] %v5340_v6  ;;  %v1308_v31 = vrot.slane %v5332_v61, 4  ;;  %v4647_v39 = vld [vmem:[#allocation8 + $0x40] sm:$0xff]  }
  0x98   : > { %1566 = vmatprep.subr.bf16.mxu0 %v4981_v0  ;;  %4502 = vmatpush3.bf16.msra.mxu1 %v5242_v9  ;;  %v5348_v17 = vld [vmem:[%s5205_s5 + $0x64] ss:$12 sps:$4 sm:$0xff]   ;;  %v4667_v37 = vld [vmem:[%s5213_s10 + $0x20] ss:$12 sps:$4 sm:$0xff]   ;;  %v4648_v45 = vld [vmem:[#allocation8 + $0x48] sm:$0xff]   ;;  %v1314_v50 = vrot.slane %v5340_v6, 4 }
  0x99   : > { %4495 = vmatprep.subr.bf16.mxu1 %v5245_v11  ;;  %v1060_v62 = vld [vmem:[#allocation2 + $0x20] sm:$0xf0]  ;;  %v1297_v24 = vsel %vm1192_vm0, %v1290_v1, %v1296_v10  ;;  %811 = vst [vmem:[#allocation2 + $0x68] sm:$0xff] %v5348_v17  ;;  %v5359_v25 = vld [vmem:[%s5205_s5 + $0x218] ss:$12 sps:$4 sm:$0xff]   ;;  %935 = vst [vmem:[#allocation2 + $0x268] sm:$0xff] %v4667_v37 }
  0x9a   : > { %v1196_v3 = vrot.slane %v1060_v62, 4  ;;  %v1059_v16 = vld [vmem:[#allocation2 + $0x18] sm:$0xf0]  ;;  %866 = vst [vmem:[#allocation2 + $0x220] sm:$0xff] %v5359_v25  ;;  %v1320_v52 = vrot.slane %v5359_v25, 4  ;;  %s4886_s14 = sshll.u32 %s4982_s29, 4  ;;  %s4887_s14 = int_to_ptr.vmem [resolvable:$false] %s4886_s14 }
  0x9b   : > { %1567 = vmatpush1.bf16.msra.mxu0 %v4608_v14  ;;  %v1193_v27 = vrot.slane %v1059_v16, 4  ;;  %v5380_v35 = vld [vmem:[%s5213_s10 + $0x8] ss:$12 sps:$4 sm:$0xff]   ;;  %v5415_v54 = vld [vmem:[%s5205_s5 + $0xac] ss:$12 sps:$4 sm:$0xff]   ;;  %s4888_s12 = scalar_lea.vmem %s4887_s14, 6144  ;;  %p4889_p2 = scmp.lt.s32.totalorder %s6549_s7, %s4887_s14 }
  0x9c   : > { %1568 = vmatprep.subr.bf16.mxu0 %v4981_v0  ;;  %4503 = vmatpush3.bf16.msra.mxu1 %v5245_v11  ;;  %v1198_v14 = vsel %vm1192_vm0, %v1196_v3, %v1197_v57  ;;  %932 = vst [vmem:[#allocation2 + $0x250] sm:$0xff] %v5380_v35  ;;  %820 = vst [vmem:[#allocation2 + $0xb0] sm:$0xff] %v5415_v54  ;;  %v5428_v61 = vld [vmem:[%s5205_s5 + $0xc4] ss:$12 sps:$4 sm:$0xff]   ;;  %v5431_v62 = vld [vmem:[%s5205_s5 + $0xc0] ss:$12 sps:$4 sm:$0xff]   ;;  %p4890_p7 = scmp.lt.s32.totalorder %s4888_s12, %s4882_s0 }
  0x9d   : > { %4496 = vmatprep.subr.bf16.mxu1 %v5259_v18  ;;  %1588 = vmatprep.mubr.bf16.mxu0 %v1198_v14  ;;  %v5436_v1 = vld [vmem:[%s5205_s5 + $0xdc] ss:$12 sps:$4 sm:$0xff]   ;;  %v5439_v3 = vld [vmem:[%s5205_s5 + $0xd8] ss:$12 sps:$4 sm:$0xff]   ;;  %823 = vst [vmem:[#allocation2 + $0xc8] sm:$0xff] %v5428_v61  ;;  %822 = vst [vmem:[#allocation2 + $0xc0] sm:$0xff] %v5431_v62 }
  0x9e   : > { %826 = vst [vmem:[#allocation2 + $0xe0] sm:$0xff] %v5436_v1  ;;  %825 = vst [vmem:[#allocation2 + $0xd8] sm:$0xff] %v5439_v3  ;;  %v5454_v14 = vld [vmem:[%s5205_s5 + $0xf0] ss:$12 sps:$4 sm:$0xff]   ;;  %v5467_v25 = vld [vmem:[%s5205_s5 + $0x108] ss:$12 sps:$4 sm:$0xff]   ;;  %p4891_p4 = por %p4890_p7, %p4889_p2 }
  0x9f   : > { %1569 = vmatpush1.bf16.msra.mxu0 %v4610_v20  ;;  %v5352_v20 = vld [vmem:[%s5205_s5 + $0x60] ss:$12 sps:$4 sm:$0xff]   ;;  %828 = vst [vmem:[#allocation2 + $0xf0] sm:$0xff] %v5454_v14  ;;  %831 = vst [vmem:[#allocation2 + $0x108] sm:$0xff] %v5467_v25  ;;  %v4766_v12 = vld [vmem:[#allocation8 + $0x200] sm:$0xff]  }
  0xa0   : > { %1570 = vmatprep.subr.bf16.mxu0 %v4981_v0  ;;  %4504 = vmatpush3.bf16.msra.mxu1 %v5259_v18  ;;  %810 = vst [vmem:[#allocation2 + $0x60] sm:$0xff] %v5352_v20  ;;  %p4892_p8 = pnand %p4891_p4, %p4885_p1 }
  0xa1   : > { %4497 = vmatprep.subr.bf16.mxu1 %v5268_v22 }
  0xa3   : > { %1571 = vmatpush1.bf16.msra.mxu0 %v4612_v23  ;;  %v1194_v23 = vrot.slane %v5306_v49, 4 }
  0xa4   : > { %1572 = vmatprep.subr.bf16.mxu0 %v4981_v0  ;;  %4505 = vmatpush3.bf16.msra.mxu1 %v5268_v22 }
  0xa5   : > { %2150 = vmatprep.subr.bf16.mxu1 %v4981_v0 }
  0xa7   : > { %1573 = vmatpush1.bf16.msra.mxu0 %v4616_v26  ;;  %4331 = vmatmul.mubr.bf16.vlgmr.msra.gmra.mrb[0].mxu1 %v1255_v29  ;;  %v4638_v26 = vld [vmem:[#allocation8 + $0x38] sm:$0xff]   ;;  %v5364_v29 = vld [vmem:[%s5205_s5 + $0x230] ss:$12 sps:$4 sm:$0xff]  }
  0xa8   : > { %1574 = vmatprep.subr.bf16.mxu0 %v4981_v0  ;;  %2151 = vmatpush1.bf16.msra.mxu1 %v4618_v30  ;;  %v1204_v30 = vrot.slane %v5326_v59, 4  ;;  %869 = vst [vmem:[#allocation2 + $0x238] sm:$0xff] %v5364_v29 }
  0xa9   : > { %4334 = vmatprep.mubr.bf16.mxu1 %v1261_v32  ;;  %2152 = vmatprep.subr.bf16.mxu1 %v4981_v0  ;;  %v5373_v32 = vld [vmem:[%s5205_s5 + $0x7c] ss:$12 sps:$4 sm:$0xff]  }
  0xaa   : > { %v1205_v36 = vsel %vm1192_vm0, %v1197_v57, %v1204_v30  ;;  %814 = vst [vmem:[#allocation2 + $0x80] sm:$0xff] %v5373_v32  ;;  %v1315_v57 = vsel %vm1192_vm0, %v1308_v31, %v1314_v50  ;;  %v1216_v6 = vrot.slane %v5373_v32, 4 }
  0xab   : > { %1575 = vmatpush1.bf16.msra.mxu0 %v4619_v33  ;;  %v5376_v33 = vld [vmem:[%s5205_s5 + $0x78] ss:$12 sps:$4 sm:$0xff]  }
  0xac   : > { %1576 = vmatprep.subr.bf16.mxu0 %v4981_v0  ;;  %2153 = vmatpush1.bf16.msra.mxu1 %v4620_v34  ;;  %v1195_v34 = vsel %vm1192_vm0, %v1193_v27, %v1194_v23  ;;  %813 = vst [vmem:[#allocation2 + $0x78] sm:$0xff] %v5376_v33  ;;  %v1067_v27 = vld [vmem:[#allocation2 + $0x268] sm:$0xf] }
  0xad   : > { %2154 = vmatprep.subr.bf16.mxu1 %v4981_v0 }
  0xaf   : > { %1577 = vmatpush1.bf16.msra.mxu0 %v4622_v38  ;;  %4335 = vmatmul.mubr.bf16.gmra.mrb[4].mxu1 %v1267_v40  ;;  %v1303_v38 = vsel %vm1192_vm0, %v1296_v10, %v1302_v28  ;;  %v1309_v40 = vsel %vm1192_vm0, %v1302_v28, %v1308_v31  ;;  %v1332_v10 = vrot.slane %v5380_v35, 4  ;;  %v5476_v28 = vld [vmem:[%s5205_s5 + $0x120] ss:$12 sps:$4 sm:$0xff]   ;;  %v5488_v35 = vld [vmem:[%s5205_s5 + $0x138] ss:$12 sps:$4 sm:$0xff]  }
  0xb0   : > { %1578 = vmatprep.subr.bf16.mxu0 %v4981_v0  ;;  %2155 = vmatpush1.bf16.msra.mxu1 %v4624_v41  ;;  %v1202_v41 = vrot.slane %v5329_v60, 4  ;;  %834 = vst [vmem:[#allocation2 + $0x120] sm:$0xff] %v5476_v28  ;;  %837 = vst [vmem:[#allocation2 + $0x138] sm:$0xff] %v5488_v35 }
  0xb1   : > { %4338 = vmatprep.mubr.bf16.mxu1 %v1273_v43  ;;  %2156 = vmatprep.subr.bf16.mxu1 %v4981_v0  ;;  %v1210_v43 = vrot.slane %v5348_v17, 4 }
  0xb3   : > { %1579 = vmatpush1.bf16.msra.mxu0 %v4625_v42  ;;  %v5394_v42 = vld [vmem:[%s5205_s5 + $0x94] ss:$12 sps:$4 sm:$0xff]  }
  0xb4   : > { %1580 = vmatprep.subr.bf16.mxu0 %v4981_v0  ;;  %2157 = vmatpush1.bf16.msra.mxu1 %v4626_v44  ;;  %v5399_v44 = vld [vmem:[%s5205_s5 + $0x90] ss:$12 sps:$4 sm:$0xff]   ;;  %817 = vst [vmem:[#allocation2 + $0x98] sm:$0xff] %v5394_v42  ;;  %v1222_v31 = vrot.slane %v5394_v42, 4 }
  0xb5   : > { %2158 = vmatprep.subr.bf16.mxu1 %v4981_v0  ;;  %816 = vst [vmem:[#allocation2 + $0x90] sm:$0xff] %v5399_v44 }
  0xb7   : > { %1581 = vmatpush1.bf16.msra.mxu0 %v4628_v51  ;;  %4339 = vmatmul.mubr.bf16.gmra.mrb[8].mxu1 %v1279_v55  ;;  %v5407_v51 = vld [vmem:[%s5205_s5 + $0x4] ss:$12 sps:$4 sm:$0xff]   ;;  %v5418_v55 = vld [vmem:[%s5205_s5 + $0xa8] ss:$12 sps:$4 sm:$0xff]  }
  0xb8   : > { %1582 = vmatprep.subr.bf16.mxu0 %v4981_v0  ;;  %2159 = vmatpush1.bf16.msra.mxu1 %v4630_v53  ;;  %v1203_v53 = vsel %vm1192_vm0, %v1194_v23, %v1202_v41  ;;  %819 = vst [vmem:[#allocation2 + $0xa8] sm:$0xff] %v5418_v55  ;;  %v5462_v23 = vld [vmem:[%s5205_s5 + $0x10c] ss:$12 sps:$4 sm:$0xff]  }
  0xb9   : > { %4342 = vmatprep.mubr.bf16.mxu1 %v1285_v58  ;;  %2160 = vmatprep.subr.bf16.mxu1 %v4981_v0  ;;  %v4654_v58 = vld [vmem:[#allocation8 + $0x50] sm:$0xff]   ;;  %832 = vst [vmem:[#allocation2 + $0x110] sm:$0xff] %v5462_v23 }
  0xbb   : > { %1583 = vmatpush1.bf16.msra.mxu0 %v4631_v56  ;;  %v1211_v56 = vsel %vm1192_vm0, %v1204_v30, %v1210_v43  ;;  %v4662_v30 = vld [vmem:[#allocation8 + $0x68] sm:$0xff]  }
  0xbc   : > { %1584 = vmatprep.subr.bf16.mxu0 %v4981_v0  ;;  %2161 = vmatpush1.bf16.msra.mxu1 %v4632_v63  ;;  %v1208_v63 = vrot.slane %v5352_v20, 4 }
  0xbd   : > { %2162 = vmatprep.subr.bf16.mxu1 %v4981_v0 }
  0xbe   : > { %v1209_v16 = vsel %vm1192_vm0, %v1202_v41, %v1208_v63  ;;  %v1223_v41 = vsel %vm1192_vm0, %v1216_v6, %v1222_v31 }
  0xbf   : > { %1585 = vmatpush1.bf16.msra.mxu0 %v4634_v8  ;;  %4343 = vmatmul.mubr.bf16.gmra.mrb[12].mxu1 %v1291_v19  ;;  %v4655_v8 = vld [vmem:[#allocation8 + $0x58] sm:$0xff]   ;;  %v4661_v19 = vld [vmem:[#allocation8 + $0x60] sm:$0xff]  }
  0xc0   : > { %1586 = vmatprep.subr.bf16.mxu0 %v4981_v0  ;;  %2163 = vmatpush1.bf16.msra.mxu1 %v4636_v13  ;;  %v5451_v13 = vld [vmem:[%s5205_s5 + $0xf4] ss:$12 sps:$4 sm:$0xff]  }
  0xc1   : > { %4346 = vmatprep.mubr.bf16.mxu1 %v1297_v24  ;;  %2164 = vmatprep.subr.bf16.mxu1 %v4981_v0  ;;  %829 = vst [vmem:[#allocation2 + $0xf8] sm:$0xff] %v5451_v13 }
  0xc3   : > { %1587 = vmatpush1.bf16.msra.mxu0 %v4637_v21  ;;  %v1217_v21 = vsel %vm1192_vm0, %v1210_v43, %v1216_v6  ;;  %v5508_v43 = vld [vmem:[%s5205_s5 + $0x168] ss:$12 sps:$4 sm:$0xff]  }
  0xc4   : > { %4298 = vmatprep.subr.bf16.mxu0 %v5224_v2  ;;  %2165 = vmatpush1.bf16.msra.mxu1 %v4638_v26  ;;  %v5470_v26 = vld [vmem:[%s5205_s5 + $0x124] ss:$12 sps:$4 sm:$0xff]   ;;  %843 = vst [vmem:[#allocation2 + $0x168] sm:$0xff] %v5508_v43 }
  0xc5   : > { %2166 = vmatprep.subr.bf16.mxu1 %v4981_v0  ;;  %835 = vst [vmem:[#allocation2 + $0x128] sm:$0xff] %v5470_v26 }
  0xc6   : > { %1589 = vmatmul.mubr.bf16.vlgmr.msra.gmra.mrb[0].mxu0 %v1195_v34  ;;  %v5485_v34 = vld [vmem:[%s5205_s5 + $0x13c] ss:$12 sps:$4 sm:$0xff]  }
  0xc7   : > { %4299 = vmatpush3.bf16.msra.mxu0 %v5224_v2  ;;  %1596 = vmatprep.mubr.bf16.mxu0 %v1205_v36  ;;  %v5404_v2 = vld [vmem:[%s5205_s5] ss:$12 sps:$4 sm:$0xff]   ;;  %v1338_v36 = vrot.slane %v1067_v27, 4  ;;  %838 = vst [vmem:[#allocation2 + $0x140] sm:$0xff] %v5485_v34  ;;  %v5583_v27 = vld [vmem:[%s5205_s5 + $0x210] ss:$12 sps:$4 sm:$0xff]  }
  0xc8   : > { %4347 = vmatmul.mubr.bf16.gmra.mrb[16].mxu1 %v1303_v38  ;;  %4300 = vmatprep.subr.bf16.mxu0 %v5228_v4  ;;  %v5499_v38 = vld [vmem:[%s5205_s5 + $0x150] ss:$12 sps:$4 sm:$0xff]   ;;  %864 = vst [vmem:[#allocation2 + $0x210] sm:$0xff] %v5583_v27 }
  0xc9   : > { %2167 = vmatpush1.bf16.msra.mxu1 %v4647_v39  ;;  %4350 = vmatprep.mubr.bf16.mxu1 %v1309_v40  ;;  %v5502_v39 = vld [vmem:[%s5205_s5 + $0x16c] ss:$12 sps:$4 sm:$0xff]   ;;  %v4668_v40 = vld [vmem:[#allocation8 + $0x70] sm:$0xff]   ;;  %840 = vst [vmem:[#allocation2 + $0x150] sm:$0xff] %v5499_v38 }
  0xca   : > { %2168 = vmatprep.subr.bf16.mxu1 %v4981_v0  ;;  %844 = vst [vmem:[#allocation2 + $0x170] sm:$0xff] %v5502_v39 }
  0xcb   : > { %4301 = vmatpush3.bf16.msra.mxu0 %v5228_v4  ;;  %v1321_v4 = vsel %vm1192_vm0, %v1314_v50, %v1320_v52  ;;  %v5520_v50 = vld [vmem:[%s5205_s5 + $0x180] ss:$12 sps:$4 sm:$0xff]  }
  0xcc   : > { %4302 = vmatprep.subr.bf16.mxu0 %v5232_v5  ;;  %846 = vst [vmem:[#allocation2 + $0x180] sm:$0xff] %v5520_v50 }
  0xcd   : > { %2169 = vmatpush1.bf16.msra.mxu1 %v4648_v45  ;;  %v1339_v45 = vsel %vm1192_vm0, %v1332_v10, %v1338_v36  ;;  %v5593_v36 = vld [vmem:[%s5205_s5 + $0x228] ss:$12 sps:$4 sm:$0xff]  }
  0xce   : > { %1597 = vmatmul.mubr.bf16.gmra.mrb[4].mxu0 %v1203_v53  ;;  %2170 = vmatprep.subr.bf16.mxu1 %v4981_v0  ;;  %v1220_v53 = vrot.slane %v5399_v44, 4  ;;  %867 = vst [vmem:[#allocation2 + $0x228] sm:$0xff] %v5593_v36 }
  0xcf   : > { %1604 = vmatprep.mubr.bf16.mxu0 %v1211_v56  ;;  %4303 = vmatpush3.bf16.msra.mxu0 %v5232_v5  ;;  %v1326_v5 = vrot.slane %v5364_v29, 4  ;;  %v1214_v29 = vrot.slane %v5376_v33, 4  ;;  %v1228_v56 = vrot.slane %v5415_v54, 4 }
  0xd0   : > { %4351 = vmatmul.mubr.bf16.gmra.mrb[20].mxu1 %v1315_v57  ;;  %4304 = vmatprep.subr.bf16.mxu0 %v5237_v7  ;;  %v5528_v57 = vld [vmem:[%s5205_s5 + $0x19c] ss:$12 sps:$4 sm:$0xff]  }
  0xd1   : > { %2171 = vmatpush1.bf16.msra.mxu1 %v4654_v58  ;;  %4354 = vmatprep.mubr.bf16.mxu1 %v1321_v4  ;;  %v1327_v24 = vsel %vm1192_vm0, %v1320_v52, %v1326_v5  ;;  %v1215_v37 = vsel %vm1192_vm0, %v1208_v63, %v1214_v29  ;;  %v4669_v52 = vld [vmem:[#allocation8 + $0x78] sm:$0xff]   ;;  %v5533_v58 = vld [vmem:[%s5205_s5 + $0x198] ss:$12 sps:$4 sm:$0xff]   ;;  %v5536_v4 = vld [vmem:[%s5205_s5 + $0x1b4] ss:$12 sps:$4 sm:$0xff]   ;;  %850 = vst [vmem:[#allocation2 + $0x1a0] sm:$0xff] %v5528_v57 }
  0xd2   : > { %2172 = vmatprep.subr.bf16.mxu1 %v4981_v0  ;;  %v1221_v63 = vsel %vm1192_vm0, %v1214_v29, %v1220_v53  ;;  %849 = vst [vmem:[#allocation2 + $0x198] sm:$0xff] %v5533_v58  ;;  %853 = vst [vmem:[#allocation2 + $0x1b8] sm:$0xff] %v5536_v4  ;;  %v1229_v6 = vsel %vm1192_vm0, %v1222_v31, %v1228_v56 }
  0xd3   : > { %4305 = vmatpush3.bf16.msra.mxu0 %v5237_v7  ;;  %v1333_v7 = vsel %vm1192_vm0, %v1326_v5, %v1332_v10  ;;  %v5553_v5 = vld [vmem:[%s5205_s5 + $0x1c8] ss:$12 sps:$4 sm:$0xff]   ;;  %v5559_v10 = vld [vmem:[%s5205_s5 + $0x1e4] ss:$12 sps:$4 sm:$0xff]  }
  0xd4   : > { %4306 = vmatprep.subr.bf16.mxu0 %v5242_v9  ;;  %855 = vst [vmem:[#allocation2 + $0x1c8] sm:$0xff] %v5553_v5  ;;  %859 = vst [vmem:[#allocation2 + $0x1e8] sm:$0xff] %v5559_v10 }
  0xd5   : > { %2173 = vmatpush1.bf16.msra.mxu1 %v4655_v8  ;;  %v5550_v8 = vld [vmem:[%s5205_s5 + $0x1cc] ss:$12 sps:$4 sm:$0xff]  }
  0xd6   : > { %1605 = vmatmul.mubr.bf16.gmra.mrb[8].mxu0 %v1209_v16  ;;  %2174 = vmatprep.subr.bf16.mxu1 %v4981_v0  ;;  %856 = vst [vmem:[#allocation2 + $0x1d0] sm:$0xff] %v5550_v8  ;;  %v5563_v16 = vld [vmem:[%s5205_s5 + $0x1e0] ss:$12 sps:$4 sm:$0xff]  }
  0xd7   : > { %1612 = vmatprep.mubr.bf16.mxu0 %v1217_v21  ;;  %4307 = vmatpush3.bf16.msra.mxu0 %v5242_v9  ;;  %v5495_v9 = vld [vmem:[%s5205_s5 + $0x154] ss:$12 sps:$4 sm:$0xff]   ;;  %v4680_v21 = vld [vmem:[#allocation8 + $0x188] sm:$0xff]   ;;  %858 = vst [vmem:[#allocation2 + $0x1e0] sm:$0xff] %v5563_v16 }
  0xd8   : > { %4355 = vmatmul.mubr.bf16.gmra.mrb[24].mxu1 %v1327_v24  ;;  %4308 = vmatprep.subr.bf16.mxu0 %v5245_v11  ;;  %841 = vst [vmem:[#allocation2 + $0x158] sm:$0xff] %v5495_v9  ;;  %v1234_v24 = vrot.slane %v5428_v61, 4 }
  0xd9   : > { %2175 = vmatpush1.bf16.msra.mxu1 %v4661_v19  ;;  %4358 = vmatprep.mubr.bf16.mxu1 %v1333_v7  ;;  %v5566_v19 = vld [vmem:[%s5205_s5 + $0x1fc] ss:$12 sps:$4 sm:$0xff]   ;;  %v5572_v7 = vld [vmem:[%s5205_s5 + $0x1f8] ss:$12 sps:$4 sm:$0xff]  }
  0xda   : > { %2176 = vmatprep.subr.bf16.mxu1 %v4981_v0  ;;  %862 = vst [vmem:[#allocation2 + $0x200] sm:$0xff] %v5566_v19  ;;  %861 = vst [vmem:[#allocation2 + $0x1f8] sm:$0xff] %v5572_v7  ;;  %v1235_v31 = vsel %vm1192_vm0, %v1228_v56, %v1234_v24  ;;  %v1238_v56 = vrot.slane %v5439_v3, 4 }
  0xdb   : > { %4309 = vmatpush3.bf16.msra.mxu0 %v5245_v11  ;;  %v5517_v11 = vld [vmem:[%s5205_s5 + $0x184] ss:$12 sps:$4 sm:$0xff]  }
  0xdc   : > { %4310 = vmatprep.subr.bf16.mxu0 %v5259_v18  ;;  %847 = vst [vmem:[#allocation2 + $0x188] sm:$0xff] %v5517_v11 }
  0xdd   : > { %2177 = vmatpush1.bf16.msra.mxu1 %v4662_v30  ;;  %v4687_v30 = vld [vmem:[#allocation8 + $0x190] sm:$0xff]  }
  0xde   : > { %1613 = vmatmul.mubr.bf16.gmra.mrb[12].mxu0 %v1215_v37  ;;  %2178 = vmatprep.subr.bf16.mxu1 %v4981_v0  ;;  %v1232_v37 = vrot.slane %v5431_v62, 4 }
  0xdf   : > { %1620 = vmatprep.mubr.bf16.mxu0 %v1223_v41  ;;  %4311 = vmatpush3.bf16.msra.mxu0 %v5259_v18  ;;  %v5541_v18 = vld [vmem:[%s5205_s5 + $0x1b0] ss:$12 sps:$4 sm:$0xff]   ;;  %v4691_v41 = vld [vmem:[#allocation8 + $0x198] sm:$0xff]  }
  0xe0   : > { %4359 = vmatmul.mubr.bf16.gmra.mrb[28].mxu1 %v1339_v45  ;;  %4312 = vmatprep.subr.bf16.mxu0 %v5268_v22  ;;  %852 = vst [vmem:[#allocation2 + $0x1b0] sm:$0xff] %v5541_v18  ;;  %v5602_v45 = vld [vmem:[%s5213_s10 + $0x4] ss:$12 sps:$4 sm:$0xff]  }
  0xe1   : > { %2179 = vmatpush1.bf16.msra.mxu1 %v4668_v40  ;;  %2182 = vmatprep.mubr.bf16.mxu1 %v5407_v51  ;;  %v4676_v51 = vld [vmem:[#allocation8 + $0x180] sm:$0xff]   ;;  %v1240_v40 = vrot.slane %v5436_v1, 4  ;;  %931 = vst [vmem:[#allocation2 + $0x248] sm:$0xff] %v5602_v45 }
  0xe2   : > { %2180 = vmatprep.subr.bf16.mxu1 %v4981_v0 }
  0xe3   : > { %4313 = vmatpush3.bf16.msra.mxu0 %v5268_v22  ;;  %v1226_v22 = vrot.slane %v5418_v55, 4 }
  0xe5   : > { %2181 = vmatpush1.bf16.msra.mxu1 %v4669_v52  ;;  %v1227_v29 = vsel %vm1192_vm0, %v1220_v53, %v1226_v22  ;;  %v5605_v52 = vld [vmem:[%s5213_s10] ss:$12 sps:$4 sm:$0xff]   ;;  %v4743_v53 = vld [vmem:[%s5213_s10 + $0x1c] ss:$12 sps:$4 sm:$0xff]  }
  0xe6   : > { %1621 = vmatmul.mubr.bf16.gmra.mrb[16].mxu0 %v1221_v63  ;;  %2865 = vmatprep.subr.bf16.mxu1 %v4981_v0  ;;  %930 = vst [vmem:[#allocation2 + $0x240] sm:$0xff] %v5605_v52  ;;  %v4745_v63 = vld [vmem:[%s5213_s10 + $0x18] ss:$12 sps:$4 sm:$0xff]   ;;  %934 = vst [vmem:[#allocation2 + $0x260] sm:$0xff] %v4743_v53 }
  0xe7   : > { %1628 = vmatprep.mubr.bf16.mxu0 %v1229_v6  ;;  %v1241_v6 = vsel %vm1192_vm0, %v1234_v24, %v1240_v40  ;;  %933 = vst [vmem:[#allocation2 + $0x258] sm:$0xff] %v4745_v63  ;;  %v1244_v24 = vrot.slane %v5454_v14, 4  ;;  %v1250_v63 = vrot.slane %v5467_v25, 4 }
  0xe8   : > { %2183 = vmatmul.mubr.bf16.vlgmr.msra.gmra.mrb[32].mxu1 %v5404_v2  ;;  %v5580_v2 = vld [vmem:[%s5205_s5 + $0x214] ss:$12 sps:$4 sm:$0xff]  }
  0xe9   : > { %2866 = vmatpush1.bf16.msra.mxu1 %v4676_v51  ;;  %2190 = vmatprep.mubr.bf16.mxu1 %v5296_v46  ;;  %865 = vst [vmem:[#allocation2 + $0x218] sm:$0xff] %v5580_v2  ;;  %v5590_v46 = vld [vmem:[%s5205_s5 + $0x22c] ss:$12 sps:$4 sm:$0xff]   ;;  %v4698_v51 = vld [vmem:[#allocation8 + $0x1a0] sm:$0xff]  }
  0xea   : > { %2867 = vmatprep.subr.bf16.mxu1 %v4981_v0  ;;  %868 = vst [vmem:[#allocation2 + $0x230] sm:$0xff] %v5590_v46 }
  0xed   : > { %2868 = vmatpush1.bf16.msra.mxu1 %v4680_v21  ;;  %v4702_v21 = vld [vmem:[#allocation8 + $0x1a8] sm:$0xff]  }
  0xee   : > { %1629 = vmatmul.mubr.bf16.gmra.mrb[20].mxu0 %v1227_v29  ;;  %2869 = vmatprep.subr.bf16.mxu1 %v4981_v0  ;;  %v5621_v29 = vld [vmem:[%s5205_s5 + $0x20] ss:$12 sps:$4 sm:$0xff]  }
  0xef   : > { %1636 = vmatprep.mubr.bf16.mxu0 %v1235_v31  ;;  %803 = vst [vmem:[#allocation2 + $0x28] sm:$0xff] %v5621_v29  ;;  %v4709_v31 = vld [vmem:[#allocation8 + $0x1b0] sm:$0xff]  }
  0xf0   : > { %2191 = vmatmul.mubr.bf16.gmra.mrb[36].mxu1 %v5303_v48  ;;  %v1233_v48 = vsel %vm1192_vm0, %v1226_v22, %v1232_v37  ;;  %v1239_v22 = vsel %vm1192_vm0, %v1232_v37, %v1238_v56  ;;  %v5633_v37 = vld [vmem:[%s5205_s5 + $0x38] ss:$12 sps:$4 sm:$0xff]  }
  0xf1   : > { %2198 = vmatprep.mubr.bf16.mxu1 %v5300_v47  ;;  %2870 = vmatpush1.bf16.msra.mxu1 %v4687_v30  ;;  %v1246_v47 = vrot.slane %v5451_v13, 4  ;;  %v1252_v30 = vrot.slane %v5462_v23, 4 }
  0xf2   : > { %2871 = vmatprep.subr.bf16.mxu1 %v4981_v0 }
  0xf3   : > { %v1253_v53 = vsel %vm1192_vm0, %v1246_v47, %v1252_v30 }
  0xf5   : > { %2872 = vmatpush1.bf16.msra.mxu1 %v4691_v41  ;;  %v5637_v41 = vld [vmem:[%s5205_s5 + $0x50] ss:$12 sps:$4 sm:$0xff]  }
  0xf6   : > { %1637 = vmatmul.mubr.bf16.gmra.mrb[24].mxu0 %v1233_v48  ;;  %2873 = vmatprep.subr.bf16.mxu1 %v4981_v0  ;;  %v4720_v48 = vld [vmem:[#allocation8 + $0x1c0] sm:$0xff]  }
  0xf7   : > { %1644 = vmatprep.mubr.bf16.mxu0 %v1241_v6  ;;  %v5654_v6 = vld [vmem:[%s5205_s5 + $0x80] ss:$12 sps:$4 sm:$0xff]  }
  0xf8   : > { %2199 = vmatmul.mubr.bf16.gmra.mrb[40].mxu1 %v5306_v49  ;;  %v1247_v49 = vsel %vm1192_vm0, %v1240_v40, %v1246_v47  ;;  %v1245_v40 = vsel %vm1192_vm0, %v1238_v56, %v1244_v24  ;;  %v4724_v56 = vld [vmem:[#allocation8 + $0x1c8] sm:$0xff]   ;;  %v1251_v47 = vsel %vm1192_vm0, %v1244_v24, %v1250_v63 }
  0xf9   : > { %2206 = vmatprep.mubr.bf16.mxu1 %v5326_v59  ;;  %2874 = vmatpush1.bf16.msra.mxu1 %v4698_v51  ;;  %v4713_v59 = vld [vmem:[#allocation8 + $0x1b8] sm:$0xff]   ;;  %v5668_v24 = vld [vmem:[%s5205_s5 + $0xb0] ss:$12 sps:$4 sm:$0xff]  }
  0xfa   : > { %2875 = vmatprep.subr.bf16.mxu1 %v4981_v0  ;;  %v5650_v51 = vld [vmem:[%s5205_s5 + $0x68] ss:$12 sps:$4 sm:$0xff]  }
  0xfd   : > { %2876 = vmatpush1.bf16.msra.mxu1 %v4702_v21 }
  0xfe   : > { %1645 = vmatmul.mubr.bf16.gmra.mrb[28].mxu0 %v1239_v22  ;;  %2877 = vmatprep.subr.bf16.mxu1 %v4981_v0  ;;  %v1264_v22 = vrot.slane %v5485_v34, 4 }
  0xff   : > { %1652 = vmatprep.mubr.bf16.mxu0 %v1247_v49  ;;  %v4735_v49 = vld [vmem:[#allocation8 + $0x1d8] sm:$0xff]  }
 0x100   : > { %2207 = vmatmul.mubr.bf16.gmra.mrb[44].mxu1 %v5329_v60  ;;  %v5642_v60 = vld [vmem:[#allocation8 + $0x80] sm:$0xff]  }
 0x101   : > { %2214 = vmatprep.mubr.bf16.mxu1 %v5348_v17  ;;  %2878 = vmatpush1.bf16.msra.mxu1 %v4709_v31  ;;  %v1258_v17 = vrot.slane %v5470_v26, 4  ;;  %v5664_v31 = vld [vmem:[%s5205_s5 + $0x98] ss:$12 sps:$4 sm:$0xff]  }
 0x102   : > { %2879 = vmatprep.subr.bf16.mxu1 %v4981_v0  ;;  %4362 = vmatprep.subr.bf16.mxu0 %v5642_v60 }
 0x103   : > { %v1259_v21 = vsel %vm1192_vm0, %v1252_v30, %v1258_v17 }
 0x105   : > { %2880 = vmatpush1.bf16.msra.mxu1 %v4713_v59  ;;  %v1265_v59 = vsel %vm1192_vm0, %v1258_v17, %v1264_v22 }
 0x106   : > { %1653 = vmatmul.mubr.bf16.gmra.mrb[32].mxu0 %v1245_v40  ;;  %2881 = vmatprep.subr.bf16.mxu1 %v4981_v0  ;;  %v4742_v40 = vld [vmem:[#allocation8 + $0x1e0] sm:$0xff]  }
 0x107   : > { %1660 = vmatprep.mubr.bf16.mxu0 %v1253_v53  ;;  %v4746_v53 = vld [vmem:[#allocation8 + $0x1e8] sm:$0xff]  }
 0x108   : > { %2215 = vmatmul.mubr.bf16.gmra.mrb[48].mxu1 %v5352_v20  ;;  %v4731_v20 = vld [vmem:[#allocation8 + $0x1d0] sm:$0xff]  }
 0x109   : > { %2222 = vmatprep.mubr.bf16.mxu1 %v5373_v32  ;;  %2882 = vmatpush1.bf16.msra.mxu1 %v4720_v48  ;;  %v1256_v32 = vrot.slane %v5476_v28, 4  ;;  %v5678_v48 = vld [vmem:[%s5205_s5 + $0xc8] ss:$12 sps:$4 sm:$0xff]  }
 0x10a   : > { %2883 = vmatprep.subr.bf16.mxu1 %v4981_v0 }
 0x10b   : > { %v1257_v30 = vsel %vm1192_vm0, %v1250_v63, %v1256_v32 }
 0x10d   : > { %2884 = vmatpush1.bf16.msra.mxu1 %v4724_v56  ;;  %v4755_v56 = vld [vmem:[#allocation8 + $0x1f0] sm:$0xff]  }
 0x10e   : > { %1661 = vmatmul.mubr.bf16.gmra.mrb[36].mxu0 %v1251_v47  ;;  %2885 = vmatprep.subr.bf16.mxu1 %v4981_v0  ;;  %v4761_v47 = vld [vmem:[#allocation8 + $0x1f8] sm:$0xff]  }
 0x10f   : > { %1668 = vmatprep.mubr.bf16.mxu0 %v1259_v21 }
 0x110   : > { %2223 = vmatmul.mubr.bf16.gmra.mrb[52].mxu1 %v5376_v33  ;;  %v1262_v33 = vrot.slane %v5488_v35, 4 }
 0x111   : > { %2230 = vmatprep.mubr.bf16.mxu1 %v5394_v42  ;;  %2886 = vmatpush1.bf16.msra.mxu1 %v4731_v20  ;;  %v1270_v42 = vrot.slane %v5495_v9, 4 }
 0x112   : > { %2887 = vmatprep.subr.bf16.mxu1 %v4981_v0  ;;  %v1263_v63 = vsel %vm1192_vm0, %v1256_v32, %v1262_v33  ;;  %v5692_v32 = vld [vmem:[%s5205_s5 + $0x8] ss:$12 sps:$4 sm:$0xff]  }
 0x113   : > { %v1271_v17 = vsel %vm1192_vm0, %v1264_v22, %v1270_v42  ;;  %v1274_v22 = vrot.slane %v5508_v43, 4 }
 0x115   : > { %2888 = vmatpush1.bf16.msra.mxu1 %v4735_v49  ;;  %v1280_v49 = vrot.slane %v5520_v50, 4 }
 0x116   : > { %1669 = vmatmul.mubr.bf16.gmra.mrb[40].mxu0 %v1257_v30  ;;  %2889 = vmatprep.subr.bf16.mxu1 %v4981_v0  ;;  %v1288_v30 = vrot.slane %v5528_v57, 4 }
 0x117   : > { %1676 = vmatprep.mubr.bf16.mxu0 %v1265_v59 }
 0x118   : > { %2231 = vmatmul.mubr.bf16.gmra.mrb[56].mxu1 %v5399_v44  ;;  %v1268_v44 = vrot.slane %v5499_v38, 4 }
 0x119   : > { %2238 = vmatprep.mubr.bf16.mxu1 %v5415_v54  ;;  %2890 = vmatpush1.bf16.msra.mxu1 %v4742_v40  ;;  %v1276_v54 = vrot.slane %v5502_v39, 4  ;;  %v1294_v40 = vrot.slane %v5536_v4, 4 }
 0x11a   : > { %2891 = vmatprep.subr.bf16.mxu1 %v4981_v0  ;;  %v1269_v21 = vsel %vm1192_vm0, %v1262_v33, %v1268_v44 }
 0x11b   : > { %v1277_v20 = vsel %vm1192_vm0, %v1270_v42, %v1276_v54  ;;  %v1295_v33 = vsel %vm1192_vm0, %v1288_v30, %v1294_v40  ;;  %v1300_v42 = vrot.slane %v5550_v8, 4 }
 0x11d   : > { %2892 = vmatpush1.bf16.msra.mxu1 %v4746_v53  ;;  %v1301_v53 = vsel %vm1192_vm0, %v1294_v40, %v1300_v42 }
 0x11e   : > { %1677 = vmatmul.mubr.bf16.gmra.mrb[44].mxu0 %v1263_v63  ;;  %2893 = vmatprep.subr.bf16.mxu1 %v4981_v0  ;;  %v1306_v63 = vrot.slane %v5559_v10, 4 }
 0x11f   : > { %1684 = vmatprep.mubr.bf16.mxu0 %v1271_v17 }
 0x120   : > { %2239 = vmatmul.mubr.bf16.gmra.mrb[60].mxu1 %v5418_v55  ;;  %v1282_v55 = vrot.slane %v5517_v11, 4  ;;  %v1307_v17 = vsel %vm1192_vm0, %v1300_v42, %v1306_v63 }
 0x121   : > { %2246 = vmatprep.mubr.bf16.mxu1 %v5428_v61  ;;  %2894 = vmatpush1.bf16.msra.mxu1 %v4755_v56  ;;  %v1275_v61 = vsel %vm1192_vm0, %v1268_v44, %v1274_v22  ;;  %v1312_v56 = vrot.slane %v5566_v19, 4 }
 0x122   : > { %2895 = vmatprep.subr.bf16.mxu1 %v4981_v0  ;;  %v1283_v0 = vsel %vm1192_vm0, %v1276_v54, %v1282_v55  ;;  %v1289_v59 = vsel %vm1192_vm0, %v1282_v55, %v1288_v30  ;;  %v1318_v54 = vrot.slane %v5580_v2, 4 }
 0x123   : > { %v1313_v44 = vsel %vm1192_vm0, %v1306_v63, %v1312_v56 }
 0x125   : > { %2896 = vmatpush1.bf16.msra.mxu1 %v4761_v47  ;;  %v1319_v47 = vsel %vm1192_vm0, %v1312_v56, %v1318_v54 }
 0x126   : > { %1685 = vmatmul.mubr.bf16.gmra.mrb[48].mxu0 %v1269_v21  ;;  %v1324_v21 = vrot.slane %v5590_v46, 4 }
 0x127   : > { %1692 = vmatprep.mubr.bf16.mxu0 %v1277_v20 }
 0x128   : > { %2247 = vmatmul.mubr.bf16.gmra.mrb[64].mxu1 %v5431_v62  ;;  %v1281_v62 = vsel %vm1192_vm0, %v1274_v22, %v1280_v49  ;;  %v1325_v20 = vsel %vm1192_vm0, %v1318_v54, %v1324_v21  ;;  %v1330_v22 = vrot.slane %v5602_v45, 4  ;;  %v1236_v54 = vrot.slane %v5678_v48, 4 }
 0x129   : > { %2254 = vmatprep.mubr.bf16.mxu1 %v5436_v1  ;;  %v1286_v1 = vrot.slane %v5533_v58, 4 }
 0x12a   : > { %v1331_v55 = vsel %vm1192_vm0, %v1324_v21, %v1330_v22  ;;  %v4760_v21 = vld [vmem:[#allocation8 + $0xa8] sm:$0xff]  }
 0x12e   : > { %1693 = vmatmul.mubr.bf16.gmra.mrb[52].mxu0 %v1275_v61  ;;  %v1066_v61 = vld [vmem:[#allocation2 + $0x260] sm:$0xf] }
 0x12f   : > { %1700 = vmatprep.mubr.bf16.mxu0 %v1283_v0  ;;  %v1336_v0 = vrot.slane %v1066_v61, 4  ;;  %v1243_v61 = vsel %vm1192_vm0, %v1236_v54, %v1242_v15 }
 0x130   : > { %2255 = vmatmul.mubr.bf16.gmra.mrb[68].mxu1 %v5439_v3  ;;  %v1287_v3 = vsel %vm1192_vm0, %v1280_v49, %v1286_v1  ;;  %v1065_v49 = vld [vmem:[#allocation2 + $0x258] sm:$0xf] }
 0x131   : > { %2262 = vmatprep.mubr.bf16.mxu1 %v5451_v13  ;;  %v1292_v13 = vrot.slane %v5541_v18, 4  ;;  %v1337_v45 = vsel %vm1192_vm0, %v1330_v22, %v1336_v0  ;;  %v1334_v30 = vrot.slane %v1065_v49, 4 }
 0x136   : > { %1701 = vmatmul.mubr.bf16.gmra.mrb[56].mxu0 %v1281_v62 }
 0x137   : > { %1708 = vmatprep.mubr.bf16.mxu0 %v1289_v59  ;;  %v1200_v59 = vrot.slane %v5633_v37, 4 }
 0x138   : > { %2263 = vmatmul.mubr.bf16.gmra.mrb[72].mxu1 %v5454_v14  ;;  %v1293_v14 = vsel %vm1192_vm0, %v1286_v1, %v1292_v13 }
 0x139   : > { %2270 = vmatprep.mubr.bf16.mxu1 %v5462_v23  ;;  %v1298_v23 = vrot.slane %v5553_v5, 4 }
 0x13e   : > { %1709 = vmatmul.mubr.bf16.gmra.mrb[60].mxu0 %v1287_v3 }
 0x13f   : > { %1716 = vmatprep.mubr.bf16.mxu0 %v1295_v33 }
 0x140   : > { %2271 = vmatmul.mubr.bf16.gmra.mrb[76].mxu1 %v5467_v25  ;;  %v1299_v25 = vsel %vm1192_vm0, %v1292_v13, %v1298_v23 }
 0x141   : > { %2278 = vmatprep.mubr.bf16.mxu1 %v5470_v26  ;;  %v1304_v26 = vrot.slane %v5563_v16, 4 }
 0x146   : > { %1717 = vmatmul.mubr.bf16.gmra.mrb[64].mxu0 %v1293_v14  ;;  %v4751_v14 = vld [vmem:[#allocation8 + $0x88] sm:$0xff]  }
 0x147   : > { %1724 = vmatprep.mubr.bf16.mxu0 %v1301_v53 }
 0x148   : > { %2279 = vmatmul.mubr.bf16.gmra.mrb[80].mxu1 %v5476_v28  ;;  %v1305_v28 = vsel %vm1192_vm0, %v1298_v23, %v1304_v26 }
 0x149   : > { %2286 = vmatprep.mubr.bf16.mxu1 %v5485_v34  ;;  %v1310_v34 = vrot.slane %v5572_v7, 4 }
 0x14e   : > { %1725 = vmatmul.mubr.bf16.gmra.mrb[68].mxu0 %v1299_v25  ;;  %v1224_v25 = vrot.slane %v5664_v31, 4 }
 0x14f   : > { %1732 = vmatprep.mubr.bf16.mxu0 %v1307_v17 }
 0x150   : > { %2287 = vmatmul.mubr.bf16.gmra.mrb[84].mxu1 %v5488_v35  ;;  %v1311_v35 = vsel %vm1192_vm0, %v1304_v26, %v1310_v34 }
 0x151   : > { %2294 = vmatprep.mubr.bf16.mxu1 %v5495_v9  ;;  %v1316_v9 = vrot.slane %v5583_v27, 4 }
 0x156   : > { %1733 = vmatmul.mubr.bf16.gmra.mrb[72].mxu0 %v1305_v28 }
 0x157   : > { %1740 = vmatprep.mubr.bf16.mxu0 %v1313_v44 }
 0x158   : > { %2295 = vmatmul.mubr.bf16.gmra.mrb[88].mxu1 %v5499_v38  ;;  %v1317_v38 = vsel %vm1192_vm0, %v1310_v34, %v1316_v9  ;;  %v4759_v34 = vld [vmem:[#allocation8 + $0xa0] sm:$0xff]  }
 0x159   : > { %2302 = vmatprep.mubr.bf16.mxu1 %v5502_v39  ;;  %v1322_v39 = vrot.slane %v5593_v36, 4 }
 0x15e   : > { %1741 = vmatmul.mubr.bf16.gmra.mrb[76].mxu0 %v1311_v35 }
 0x15f   : > { %1748 = vmatprep.mubr.bf16.mxu0 %v1319_v47 }
 0x160   : > { %2303 = vmatmul.mubr.bf16.gmra.mrb[92].mxu1 %v5508_v43  ;;  %v1323_v43 = vsel %vm1192_vm0, %v1316_v9, %v1322_v39 }
 0x161   : > { %2310 = vmatprep.mubr.bf16.mxu1 %v5517_v11  ;;  %v1328_v11 = vrot.slane %v5605_v52, 4 }
 0x166   : > { %1749 = vmatmul.mubr.bf16.gmra.mrb[80].mxu0 %v1317_v38 }
 0x167   : > { %1756 = vmatprep.mubr.bf16.mxu0 %v1325_v20 }
 0x168   : > { %2311 = vmatmul.mubr.bf16.gmra.mrb[96].mxu1 %v5520_v50  ;;  %v1329_v50 = vsel %vm1192_vm0, %v1322_v39, %v1328_v11 }
 0x169   : > { %2318 = vmatprep.mubr.bf16.mxu1 %v5528_v57  ;;  %v1061_v57 = vld [vmem:[#allocation2 + $0x28] sm:$0xf0] }
 0x16a   : > { %v1199_v62 = vrot.slane %v1061_v57, 4 }
 0x16c   : > { %v1201_v1 = vsel %vm1192_vm0, %v1199_v62, %v1200_v59 }
 0x16e   : > { %1757 = vmatmul.mubr.bf16.gmra.mrb[84].mxu0 %v1323_v43 }
 0x16f   : > { %1764 = vmatprep.mubr.bf16.mxu0 %v1331_v55 }
 0x170   : > { %2319 = vmatmul.mubr.bf16.gmra.mrb[100].mxu1 %v5533_v58 }
 0x171   : > { %2326 = vmatprep.mubr.bf16.mxu1 %v5536_v4  ;;  %v1335_v4 = vsel %vm1192_vm0, %v1328_v11, %v1334_v30 }
 0x176   : > { %1765 = vmatmul.mubr.bf16.gmra.mrb[88].mxu0 %v1329_v50 }
 0x177   : > { %1772 = vmatprep.mubr.bf16.mxu0 %v1337_v45 }
 0x178   : > { %2327 = vmatmul.mubr.bf16.gmra.mrb[104].mxu1 %v5541_v18  ;;  %v1206_v18 = vrot.slane %v5637_v41, 4 }
 0x179   : > { %2334 = vmatprep.mubr.bf16.mxu1 %v5550_v8  ;;  %v1212_v8 = vrot.slane %v5650_v51, 4 }
 0x17a   : > { %v5756_v58 = vpop.f32.mrb[0].mxu1  ;;  %v1207_v13 = vsel %vm1192_vm0, %v1200_v59, %v1206_v18 }
 0x17b   : > { %v5759_v52 = vpop.f32.mrb[1].mxu1  ;;  %v1213_v53 = vsel %vm1192_vm0, %v1206_v18, %v1212_v8  ;;  %v2604_v18 = vld [vmem:[#allocation2 + $0x68] sm:$0xff] }
 0x17c   : > { %v5762_v40 = vpop.f32.mrb[2].mxu1 }
 0x17d   : > { %v5764_v3 = vpop.f32.mrb[3].mxu1 }
 0x17e   : > { %1773 = vmatmul.mubr.bf16.gmra.mrb[92].mxu0 %v1335_v4  ;;  %v4767_v4 = vld [vmem:[#allocation8 + $0x208] sm:$0xff]  }
 0x17f   : > { %4314 = vmatprep.mubr.bf16.mxu0 %v1201_v1 }
 0x180   : > { %2335 = vmatmul.mubr.bf16.gmra.mrb[108].mxu1 %v5553_v5  ;;  %v1218_v5 = vrot.slane %v5654_v6, 4 }
 0x181   : > { %2342 = vmatprep.mubr.bf16.mxu1 %v5559_v10  ;;  %v4754_v10 = vld [vmem:[#allocation8 + $0x90] sm:$0xff]  }
 0x182   : > { %v5770_v33 = vpop.f32.mrb[4].mxu1  ;;  %v1219_v26 = vsel %vm1192_vm0, %v1212_v8, %v1218_v5  ;;  %v1225_v28 = vsel %vm1192_vm0, %v1218_v5, %v1224_v25  ;;  %v4768_v8 = vld [vmem:[#allocation8 + $0x210] sm:$0xff]  }
 0x183   : > { %v5773_v42 = vpop.f32.mrb[5].mxu1 }
 0x184   : > { %v5776_v23 = vpop.f32.mrb[6].mxu1 }
 0x185   : > { %v5778_v63 = vpop.f32.mrb[7].mxu1 }
 0x186   : > { %4315 = vmatmul.mubr.bf16.vlgmr.msra.gmra.mrb[96].mxu0 %v1207_v13 }
 0x187   : > { %4363 = vmatpush3.bf16.msra.mxu0 %v5642_v60  ;;  %4318 = vmatprep.mubr.bf16.mxu0 %v1213_v53  ;;  %v4756_v60 = vld [vmem:[#allocation8 + $0x98] sm:$0xff]  }
 0x188   : > { %2343 = vmatmul.mubr.bf16.gmra.mrb[112].mxu1 %v5563_v16  ;;  %4364 = vmatprep.subr.bf16.mxu0 %v4751_v14 }
 0x189   : > { %2350 = vmatprep.mubr.bf16.mxu1 %v5566_v19  ;;  %v1230_v19 = vrot.slane %v5668_v24, 4 }
 0x18a   : > { %v5785_v17 = vpop.f32.mrb[8].mxu1 }
 0x18b   : > { %4365 = vmatpush3.bf16.msra.mxu0 %v4751_v14  ;;  %v5788_v56 = vpop.f32.mrb[9].mxu1  ;;  %v1231_v47 = vsel %vm1192_vm0, %v1224_v25, %v1230_v19  ;;  %v1237_v38 = vsel %vm1192_vm0, %v1230_v19, %v1236_v54  ;;  %v4770_v19 = vld [vmem:[#allocation8 + $0x220] sm:$0xff]  }
 0x18c   : > { %4366 = vmatprep.subr.bf16.mxu0 %v4754_v10  ;;  %v5791_v44 = vpop.f32.mrb[10].mxu1 }
 0x18d   : > { %v5793_v16 = vpop.f32.mrb[11].mxu1 }
 0x18e   : > { %4319 = vmatmul.mubr.bf16.gmra.mrb[100].mxu0 %v1219_v26 }
 0x18f   : > { %4367 = vmatpush3.bf16.msra.mxu0 %v4754_v10  ;;  %4322 = vmatprep.mubr.bf16.mxu0 %v1225_v28  ;;  %v2607_v28 = vld [vmem:[#allocation2 + $0x80] sm:$0xff] }
 0x190   : > { %2351 = vmatmul.mubr.bf16.gmra.mrb[116].mxu1 %v5572_v7  ;;  %4368 = vmatprep.subr.bf16.mxu0 %v4756_v60 }
 0x191   : > { %2358 = vmatprep.mubr.bf16.mxu1 %v5580_v2  ;;  %v4763_v2 = vld [vmem:[#allocation8 + $0xb0] sm:$0xff]  }
 0x192   : > { %v5799_v35 = vpop.f32.mrb[12].mxu1 }
 0x193   : > { %4369 = vmatpush3.bf16.msra.mxu0 %v4756_v60  ;;  %v5802_v9 = vpop.f32.mrb[13].mxu1 }
 0x194   : > { %4370 = vmatprep.subr.bf16.mxu0 %v4759_v34  ;;  %v5805_v20 = vpop.f32.mrb[14].mxu1 }
 0x195   : > { %v5807_v7 = vpop.f32.mrb[15].mxu1 }
 0x196   : > { %4323 = vmatmul.mubr.bf16.gmra.mrb[104].mxu0 %v1231_v47 }
 0x197   : > { %4371 = vmatpush3.bf16.msra.mxu0 %v4759_v34  ;;  %4326 = vmatprep.mubr.bf16.mxu0 %v1237_v38 }
 0x198   : > { %2359 = vmatmul.mubr.bf16.gmra.mrb[120].mxu1 %v5583_v27  ;;  %4372 = vmatprep.subr.bf16.mxu0 %v4760_v21  ;;  %v4764_v27 = vld [vmem:[#allocation8 + $0xb8] sm:$0xff]  }
 0x199   : > { %v5810_v39 = vpop.f32.mrb[0].mxu0  ;;  %2366 = vmatprep.mubr.bf16.mxu1 %v5590_v46  ;;  %v2601_v46 = vld [vmem:[#allocation2 + $0x50] sm:$0xff] }
 0x19a   : > { %v1592_v22 = vpop.f32.mrb[1].mxu0 }
 0x19b   : > { %v5813_v43 = vpop.f32.mrb[16].mxu1  ;;  %v5815_v55 = vpop.f32.mrb[2].mxu0  ;;  %4373 = vmatpush3.bf16.msra.mxu0 %v4760_v21  ;;  %v4771_v22 = vld [vmem:[#allocation8 + $0x228] sm:$0xff]  }
 0x19c   : > { %v5820_v11 = vpop.f32.mrb[17].mxu1  ;;  %v1595_v0 = vpop.f32.mrb[3].mxu0  ;;  %4374 = vmatprep.subr.bf16.mxu0 %v4763_v2 }
 0x19d   : > { %v5822_v50 = vpop.f32.mrb[18].mxu1  ;;  %v2606_v0 = vld [vmem:[#allocation2 + $0x78] sm:$0xff] }
 0x19e   : > { %v5824_v45 = vpop.f32.mrb[19].mxu1  ;;  %4327 = vmatmul.mubr.bf16.gmra.mrb[108].mxu0 %v1243_v61 }
 0x19f   : > { %4375 = vmatpush3.bf16.msra.mxu0 %v4763_v2  ;;  %4378 = vmatprep.mubr.bf16.mxu0 %v5692_v32  ;;  %v2600_v32 = vld [vmem:[#allocation2 + $0x48] sm:$0xff] }
 0x1a0   : > { %2367 = vmatmul.mubr.bf16.gmra.mrb[124].mxu1 %v5593_v36  ;;  %4376 = vmatprep.subr.bf16.mxu0 %v4764_v27 }
 0x1a1   : > { %v5828_v49 = vpop.f32.mrb[4].mxu0  ;;  %2897 = vmatprep.mubr.bf16.mxu1 %v2601_v46  ;;  %v2610_v46 = vld [vmem:[#allocation2 + $0x98] sm:$0xff] }
 0x1a2   : > { %v1600_v15 = vpop.f32.mrb[5].mxu0 }
 0x1a3   : > { %v5830_v57 = vpop.f32.mrb[20].mxu1  ;;  %v5832_v30 = vpop.f32.mrb[6].mxu0  ;;  %4377 = vmatpush3.bf16.msra.mxu0 %v4764_v27 }
 0x1a4   : > { %v5834_v62 = vpop.f32.mrb[21].mxu1  ;;  %v1603_v59 = vpop.f32.mrb[7].mxu0  ;;  %4426 = vmatprep.subr.bf16.mxu0 %v4766_v12 }
 0x1a5   : > { %v5836_v1 = vpop.f32.mrb[22].mxu1 }
 0x1a6   : > { %v5838_v36 = vpop.f32.mrb[23].mxu1  ;;  %4379 = vmatmul.mubr.bf16.vlgmr.msra.gmra.mrb[112].mxu0 %v5621_v29  ;;  %v4769_v29 = vld [vmem:[#allocation8 + $0x218] sm:$0xff]  }
 0x1a7   : > { %4427 = vmatpush3.bf16.msra.mxu0 %v4766_v12  ;;  %4382 = vmatprep.mubr.bf16.mxu0 %v5633_v37  ;;  %v2603_v37 = vld [vmem:[#allocation2 + $0x60] sm:$0xff]  ;;  %v4772_v12 = vld [vmem:[#allocation8 + $0x230] sm:$0xff]  }
 0x1a8   : > { %2898 = vmatmul.mubr.bf16.vlgmr.msra.gmra.mrb[128].mxu1 %v2600_v32  ;;  %4428 = vmatprep.subr.bf16.mxu0 %v4767_v4 }
 0x1a9   : > { %v5842_v13 = vpop.f32.mrb[8].mxu0  ;;  %2905 = vmatprep.mubr.bf16.mxu1 %v2604_v18 }
 0x1aa   : > { %6629 = vst [vmem:[#allocation17_spill] sm:$0xff] %v5842_v13  ;;  %v1608_v14 = vpop.f32.mrb[9].mxu0 }
 0x1ab   : > { %v5844_v53 = vpop.f32.mrb[24].mxu1  ;;  %v5846_v5 = vpop.f32.mrb[10].mxu0  ;;  %4429 = vmatpush3.bf16.msra.mxu0 %v4767_v4  ;;  %v4773_v14 = vld [vmem:[#allocation8 + $0x238] sm:$0xff]  }
 0x1ac   : > { %6630 = vst [vmem:[#allocation18_spill] sm:$0xff] %v5846_v5  ;;  %v5848_v10 = vpop.f32.mrb[25].mxu1  ;;  %v1611_v25 = vpop.f32.mrb[11].mxu0  ;;  %4430 = vmatprep.subr.bf16.mxu0 %v4768_v8  ;;  %v4781_v5 = vld [vmem:[#allocation2 + $0x130] sm:$0xff] }
 0x1ad   : > { %v5850_v26 = vpop.f32.mrb[26].mxu1 }
 0x1ae   : > { %v5852_v60 = vpop.f32.mrb[27].mxu1  ;;  %4383 = vmatmul.mubr.bf16.gmra.mrb[116].mxu0 %v5637_v41 }
 0x1af   : > { %4386 = vmatprep.mubr.bf16.mxu0 %v5650_v51  ;;  %4431 = vmatpush3.bf16.msra.mxu0 %v4768_v8 }
 0x1b0   : > { %2906 = vmatmul.mubr.bf16.gmra.mrb[132].mxu1 %v2603_v37  ;;  %4432 = vmatprep.subr.bf16.mxu0 %v4769_v29 }
 0x1b1   : > { %v5856_v34 = vpop.f32.mrb[12].mxu0  ;;  %2913 = vmatprep.mubr.bf16.mxu1 %v2607_v28  ;;  %v2613_v28 = vld [vmem:[#allocation2 + $0xb0] sm:$0xff] }
 0x1b2   : > { %v1616_v54 = vpop.f32.mrb[13].mxu0 }
 0x1b3   : > { %v5858_v47 = vpop.f32.mrb[28].mxu1  ;;  %v5860_v21 = vpop.f32.mrb[14].mxu0  ;;  %4433 = vmatpush3.bf16.msra.mxu0 %v4769_v29  ;;  %v2609_v29 = vld [vmem:[#allocation2 + $0x90] sm:$0xff] }
 0x1b4   : > { %6631 = vst [vmem:[#allocation19_spill] sm:$0xff] %v5860_v21  ;;  %v5862_v38 = vpop.f32.mrb[29].mxu1  ;;  %v1619_v2 = vpop.f32.mrb[15].mxu0  ;;  %4434 = vmatprep.subr.bf16.mxu0 %v4770_v19  ;;  %v2624_v21 = vld [vmem:[#allocation2 + $0x108] sm:$0xff] }
 0x1b5   : > { %v5864_v61 = vpop.f32.mrb[30].mxu1 }
 0x1b6   : > { %v5866_v27 = vpop.f32.mrb[31].mxu1  ;;  %4387 = vmatmul.mubr.bf16.gmra.mrb[120].mxu0 %v5654_v6 }
 0x1b7   : > { %4390 = vmatprep.mubr.bf16.mxu0 %v5664_v31  ;;  %4435 = vmatpush3.bf16.msra.mxu0 %v4770_v19 }
 0x1b8   : > { %2914 = vmatmul.mubr.bf16.gmra.mrb[136].mxu1 %v2606_v0  ;;  %4436 = vmatprep.subr.bf16.mxu0 %v4771_v22 }
 0x1b9   : > { %v5870_v15 = vpop.f32.mrb[16].mxu0  ;;  %2921 = vmatprep.mubr.bf16.mxu1 %v2610_v46 }
 0x1ba   : > { %6632 = vst [vmem:[#allocation20_spill] sm:$0xff] %v5870_v15  ;;  %v1624_v59 = vpop.f32.mrb[17].mxu0  ;;  %v2615_v15 = vld [vmem:[#allocation2 + $0xc0] sm:$0xff] }
 0x1bb   : > { %v5872_v4 = vpop.f32.mrb[32].mxu1  ;;  %v5874_v32 = vpop.f32.mrb[18].mxu0  ;;  %4437 = vmatpush3.bf16.msra.mxu0 %v4771_v22 }
 0x1bc   : > { %6633 = vst [vmem:[#allocation21_spill] sm:$0xff] %v5874_v32  ;;  %v2186_v18 = vpop.f32.mrb[33].mxu1  ;;  %v1627_v8 = vpop.f32.mrb[19].mxu0  ;;  %4438 = vmatprep.subr.bf16.mxu0 %v4772_v12 }
 0x1bd   : > { %v5876_v25 = vpop.f32.mrb[34].mxu1  ;;  %v2612_v18 = vld [vmem:[#allocation2 + $0xa8] sm:$0xff] }
 0x1be   : > { %v2189_v37 = vpop.f32.mrb[35].mxu1  ;;  %4391 = vmatmul.mubr.bf16.gmra.mrb[124].mxu0 %v5668_v24 }
 0x1bf   : > { %4394 = vmatprep.mubr.bf16.mxu0 %v5678_v48  ;;  %4439 = vmatpush3.bf16.msra.mxu0 %v4772_v12  ;;  %v4778_v37 = vld [vmem:[#allocation2 + $0xe8] sm:$0xff] }
 0x1c0   : > { %2922 = vmatmul.mubr.bf16.gmra.mrb[140].mxu1 %v2609_v29  ;;  %4440 = vmatprep.subr.bf16.mxu0 %v4773_v14  ;;  %v2616_v12 = vld [vmem:[#allocation2 + $0xc8] sm:$0xff]  ;;  %v4779_v29 = vld [vmem:[#allocation2 + $0x100] sm:$0xff] }
 0x1c1   : > { %v5880_v19 = vpop.f32.mrb[20].mxu0  ;;  %2929 = vmatprep.mubr.bf16.mxu1 %v2613_v28 }
 0x1c2   : > { %6634 = vst [vmem:[#allocation22_spill] sm:$0xff] %v5880_v19  ;;  %v1632_v54 = vpop.f32.mrb[21].mxu0  ;;  %v4780_v19 = vld [vmem:[#allocation2 + $0x118] sm:$0xff] }
 0x1c3   : > { %v5882_v2 = vpop.f32.mrb[36].mxu1  ;;  %v5884_v22 = vpop.f32.mrb[22].mxu0  ;;  %4441 = vmatpush3.bf16.msra.mxu0 %v4773_v14 }
 0x1c4   : > { %6635 = vst [vmem:[#allocation23_spill] sm:$0xff] %v5884_v22  ;;  %v2194_v0 = vpop.f32.mrb[37].mxu1  ;;  %v1635_v46 = vpop.f32.mrb[23].mxu0 }
 0x1c5   : > { %v5886_v59 = vpop.f32.mrb[38].mxu1 }
 0x1c6   : > { %v2197_v8 = vpop.f32.mrb[39].mxu1  ;;  %4395 = vmatmul.mubr.bf16.gmra.mrb[128].mxu0 %v4778_v37  ;;  %v2619_v37 = vld [vmem:[#allocation2 + $0xe0] sm:$0xff] }
 0x1c7   : > { %4398 = vmatprep.mubr.bf16.mxu0 %v4779_v29 }
 0x1c8   : > { %2930 = vmatmul.mubr.bf16.gmra.mrb[144].mxu1 %v2612_v18 }
 0x1c9   : > { %v5888_v32 = vpop.f32.mrb[24].mxu0  ;;  %2937 = vmatprep.mubr.bf16.mxu1 %v2616_v12 }
 0x1ca   : > { %6636 = vst [vmem:[#allocation24_spill] sm:$0xff] %v5888_v32  ;;  %v1640_v28 = vpop.f32.mrb[25].mxu0  ;;  %v2618_v32 = vld [vmem:[#allocation2 + $0xd8] sm:$0xff] }
 0x1cb   : > { %v5890_v54 = vpop.f32.mrb[40].mxu1  ;;  %v5892_v22 = vpop.f32.mrb[26].mxu0 }
 0x1cc   : > { %6637 = vst [vmem:[#allocation25_spill] sm:$0xff] %v5890_v54  ;;  %6638 = vst [vmem:[#allocation26_spill] sm:$0xff] %v5892_v22  ;;  %v2202_v14 = vpop.f32.mrb[41].mxu1  ;;  %v1643_v0 = vpop.f32.mrb[27].mxu0  ;;  %v4784_v54 = vld [vmem:[#allocation2 + $0x178] sm:$0xff] }
 0x1cd   : > { %v5894_v46 = vpop.f32.mrb[42].mxu1 }
 0x1ce   : > { %6639 = vst [vmem:[#allocation27_spill] sm:$0xff] %v5894_v46  ;;  %v2205_v8 = vpop.f32.mrb[43].mxu1  ;;  %4399 = vmatmul.mubr.bf16.gmra.mrb[132].mxu0 %v4780_v19  ;;  %v4782_v46 = vld [vmem:[#allocation2 + $0x148] sm:$0xff]  ;;  %v2622_v19 = vld [vmem:[#allocation2 + $0xf8] sm:$0xff] }
 0x1cf   : > { %4402 = vmatprep.mubr.bf16.mxu0 %v4781_v5  ;;  %v4783_v5 = vld [vmem:[#allocation2 + $0x160] sm:$0xff] }
 0x1d0   : > { %2938 = vmatmul.mubr.bf16.gmra.mrb[148].mxu1 %v2615_v15 }
 0x1d1   : > { %v5896_v18 = vpop.f32.mrb[28].mxu0  ;;  %2945 = vmatprep.mubr.bf16.mxu1 %v2619_v37 }
 0x1d2   : > { %6640 = vst [vmem:[#allocation28_spill] sm:$0xff] %v5896_v18  ;;  %v1648_v12 = vpop.f32.mrb[29].mxu0 }
 0x1d3   : > { %v5898_v29 = vpop.f32.mrb[44].mxu1  ;;  %v5900_v28 = vpop.f32.mrb[30].mxu0 }
 0x1d4   : > { %6641 = vst [vmem:[#allocation29_spill] sm:$0xff] %v5898_v29  ;;  %6642 = vst [vmem:[#allocation30_spill] sm:$0xff] %v5900_v28  ;;  %v2210_v14 = vpop.f32.mrb[45].mxu1  ;;  %v1651_v0 = vpop.f32.mrb[31].mxu0 }
 0x1d5   : > { %v5902_v22 = vpop.f32.mrb[46].mxu1 }
 0x1d6   : > { %6643 = vst [vmem:[#allocation31_spill] sm:$0xff] %v5902_v22  ;;  %v2213_v8 = vpop.f32.mrb[47].mxu1  ;;  %4403 = vmatmul.mubr.bf16.gmra.mrb[136].mxu0 %v4782_v46  ;;  %v2621_v22 = vld [vmem:[#allocation2 + $0xf0] sm:$0xff] }
 0x1d7   : > { %4406 = vmatprep.mubr.bf16.mxu0 %v4783_v5  ;;  %v5915_v5 = vld [vmem:[%s5213_s10 + $0x34] ss:$12 sps:$4 sm:$0xff]  }
 0x1d8   : > { %2946 = vmatmul.mubr.bf16.gmra.mrb[152].mxu1 %v2618_v32  ;;  %v5918_v32 = vld [vmem:[%s5213_s10 + $0x38] ss:$12 sps:$4 sm:$0xff]  }
 0x1d9   : > { %v1654_v15 = vpop.f32.mrb[32].mxu0  ;;  %2953 = vmatprep.mubr.bf16.mxu1 %v2622_v19 }
 0x1da   : > { %v5905_v37 = vadd.f32 %v5759_v52, %v1654_v15  ;;  %v1656_v12 = vpop.f32.mrb[33].mxu0  ;;  %v2625_v52 = vld [vmem:[#allocation2 + $0x110] sm:$0xff]  ;;  %v5921_v15 = vld [vmem:[%s5213_s10 + $0x30] ss:$12 sps:$4 sm:$0xff]  }
 0x1db   : > { %v5907_v14 = vpop.f32.mrb[48].mxu1  ;;  %v1657_v0 = vpop.f32.mrb[34].mxu0  ;;  %v4785_v12 = vld [vmem:[#allocation2 + $0x190] sm:$0xff] }
 0x1dc   : > { %6644 = vst [vmem:[#allocation32_spill] sm:$0xff] %v5907_v14  ;;  %v5910_v8 = vadd.f32 %v5764_v3, %v1657_v0  ;;  %v2218_v46 = vpop.f32.mrb[49].mxu1  ;;  %v1659_v28 = vpop.f32.mrb[35].mxu0 }
 0x1dd   : > { %v5912_v18 = vpop.f32.mrb[50].mxu1 }
 0x1de   : > { %6645 = vst [vmem:[#allocation33_spill] sm:$0xff] %v5912_v18  ;;  %v2221_v19 = vpop.f32.mrb[51].mxu1  ;;  %4407 = vmatmul.mubr.bf16.gmra.mrb[140].mxu0 %v4784_v54 }
 0x1df   : > { %4410 = vmatprep.mubr.bf16.mxu0 %v4785_v12  ;;  %v4786_v12 = vld [vmem:[#allocation2 + $0x1a8] sm:$0xff] }
 0x1e0   : > { %2954 = vmatmul.mubr.bf16.gmra.mrb[156].mxu1 %v2621_v22  ;;  %v2628_v22 = vld [vmem:[#allocation2 + $0x128] sm:$0xff] }
 0x1e1   : > { %v1662_v3 = vpop.f32.mrb[36].mxu0  ;;  %2961 = vmatprep.mubr.bf16.mxu1 %v2625_v52  ;;  %v4787_v52 = vld [vmem:[#allocation2 + $0x1c0] sm:$0xff] }
 0x1e2   : > { %v5924_v28 = vadd.f32 %v5756_v58, %v1662_v3  ;;  %v1664_v0 = vpop.f32.mrb[37].mxu0 }
 0x1e3   : > { %v5926_v46 = vpop.f32.mrb[52].mxu1  ;;  %v1665_v18 = vpop.f32.mrb[38].mxu0 }
 0x1e4   : > { %6646 = vst [vmem:[#allocation34_spill] sm:$0xff] %v5926_v46  ;;  %v5929_v14 = vadd.f32 %v5762_v40, %v1665_v18  ;;  %v2226_v19 = vpop.f32.mrb[53].mxu1  ;;  %v1667_v54 = vpop.f32.mrb[39].mxu0 }
 0x1e5   : > { %v5931_v29 = vpop.f32.mrb[54].mxu1 }
 0x1e6   : > { %6647 = vst [vmem:[#allocation35_spill] sm:$0xff] %v5931_v29  ;;  %v2229_v13 = vpop.f32.mrb[55].mxu1  ;;  %4411 = vmatmul.mubr.bf16.gmra.mrb[144].mxu0 %v4786_v12  ;;  %v2627_v12 = vld [vmem:[#allocation2 + $0x120] sm:$0xff] }
 0x1e7   : > { %4414 = vmatprep.mubr.bf16.mxu0 %v4787_v52  ;;  %v4788_v52 = vld [vmem:[#allocation2 + $0x1d8] sm:$0xff] }
 0x1e8   : > { %2962 = vmatmul.mubr.bf16.gmra.mrb[160].mxu1 %v2624_v21  ;;  %v2631_v21 = vld [vmem:[#allocation2 + $0x140] sm:$0xff] }
 0x1e9   : > { %v1670_v58 = vpop.f32.mrb[40].mxu0  ;;  %2969 = vmatprep.mubr.bf16.mxu1 %v2628_v22  ;;  %v4789_v22 = vld [vmem:[#allocation2 + $0x1f0] sm:$0xff] }
 0x1ea   : > { %v5934_v3 = vadd.f32 %v5773_v42, %v1670_v58  ;;  %v1672_v0 = vpop.f32.mrb[41].mxu0 }
 0x1eb   : > { %v5936_v40 = vpop.f32.mrb[56].mxu1  ;;  %v1673_v18 = vpop.f32.mrb[42].mxu0 }
 0x1ec   : > { %6648 = vst [vmem:[#allocation36_spill] sm:$0xff] %v5936_v40  ;;  %v5939_v19 = vadd.f32 %v5778_v63, %v1673_v18  ;;  %v2234_v54 = vpop.f32.mrb[57].mxu1  ;;  %v1675_v13 = vpop.f32.mrb[43].mxu0 }
 0x1ed   : > { %v5941_v29 = vpop.f32.mrb[58].mxu1 }
 0x1ee   : > { %6649 = vst [vmem:[#allocation37_spill] sm:$0xff] %v5941_v29  ;;  %v2237_v46 = vpop.f32.mrb[59].mxu1  ;;  %4415 = vmatmul.mubr.bf16.gmra.mrb[148].mxu0 %v4788_v52  ;;  %v2630_v52 = vld [vmem:[#allocation2 + $0x138] sm:$0xff] }
 0x1ef   : > { %4418 = vmatprep.mubr.bf16.mxu0 %v4789_v22  ;;  %v4790_v22 = vld [vmem:[#allocation2 + $0x208] sm:$0xff] }
 0x1f0   : > { %2970 = vmatmul.mubr.bf16.gmra.mrb[164].mxu1 %v2627_v12  ;;  %v2634_v12 = vld [vmem:[#allocation2 + $0x158] sm:$0xff] }
 0x1f1   : > { %v1678_v42 = vpop.f32.mrb[44].mxu0  ;;  %2977 = vmatprep.mubr.bf16.mxu1 %v2631_v21  ;;  %v4791_v21 = vld [vmem:[#allocation2 + $0x220] sm:$0xff] }
 0x1f2   : > { %v5944_v58 = vadd.f32 %v5770_v33, %v1678_v42  ;;  %v1680_v0 = vpop.f32.mrb[45].mxu0 }
 0x1f3   : > { %v5946_v63 = vpop.f32.mrb[60].mxu1  ;;  %v1681_v18 = vpop.f32.mrb[46].mxu0 }
 0x1f4   : > { %6650 = vst [vmem:[#allocation38_spill] sm:$0xff] %v5946_v63  ;;  %v5949_v54 = vadd.f32 %v5776_v23, %v1681_v18  ;;  %v2242_v13 = vpop.f32.mrb[61].mxu1  ;;  %v1683_v46 = vpop.f32.mrb[47].mxu0  ;;  %v2633_v63 = vld [vmem:[#allocation2 + $0x150] sm:$0xff] }
 0x1f5   : > { %v5951_v29 = vpop.f32.mrb[62].mxu1 }
 0x1f6   : > { %6651 = vst [vmem:[#allocation39_spill] sm:$0xff] %v5951_v29  ;;  %v2245_v40 = vpop.f32.mrb[63].mxu1  ;;  %4419 = vmatmul.mubr.bf16.gmra.mrb[152].mxu0 %v4790_v22 }
 0x1f7   : > { %4422 = vmatprep.mubr.bf16.mxu0 %v4791_v21  ;;  %v4792_v21 = vld [vmem:[#allocation2 + $0x238] sm:$0xff] }
 0x1f8   : > { %2978 = vmatmul.mubr.bf16.gmra.mrb[168].mxu1 %v2630_v52 }
 0x1f9   : > { %v1686_v33 = vpop.f32.mrb[48].mxu0  ;;  %2985 = vmatprep.mubr.bf16.mxu1 %v2634_v12 }
 0x1fa   : > { %v5954_v42 = vadd.f32 %v5788_v56, %v1686_v33  ;;  %v1688_v0 = vpop.f32.mrb[49].mxu0  ;;  %v2637_v56 = vld [vmem:[#allocation2 + $0x170] sm:$0xff] }
 0x1fb   : > { %v2248_v23 = vpop.f32.mrb[64].mxu1  ;;  %v1689_v18 = vpop.f32.mrb[50].mxu0 }
 0x1fc   : > { %v5957_v13 = vadd.f32 %v2248_v23, %v5905_v37  ;;  %v5960_v46 = vadd.f32 %v5793_v16, %v1689_v18  ;;  %v2250_v40 = vpop.f32.mrb[65].mxu1  ;;  %v1691_v22 = vpop.f32.mrb[51].mxu0 }
 0x1fd   : > { %v2251_v29 = vpop.f32.mrb[66].mxu1 }
 0x1fe   : > { %v5963_v52 = vadd.f32 %v2251_v29, %v5910_v8  ;;  %v2253_v12 = vpop.f32.mrb[67].mxu1  ;;  %4423 = vmatmul.mubr.bf16.gmra.mrb[156].mxu0 %v4792_v21 }
 0x1ff   : > { %4442 = vmatprep.mubr.bf16.mxu0 %v5637_v41  ;;  %v2636_v12 = vld [vmem:[#allocation2 + $0x168] sm:$0xff] }
 0x200   : > { %2986 = vmatmul.mubr.bf16.gmra.mrb[172].mxu1 %v2633_v63 }
 0x201   : > { %v1694_v33 = vpop.f32.mrb[52].mxu0  ;;  %2993 = vmatprep.mubr.bf16.mxu1 %v2637_v56 }
 0x202   : > { %v5967_v37 = vadd.f32 %v5785_v17, %v1694_v33  ;;  %v1696_v16 = vpop.f32.mrb[53].mxu0  ;;  %v2640_v17 = vld [vmem:[#allocation2 + $0x188] sm:$0xff] }
 0x203   : > { %v2256_v0 = vpop.f32.mrb[68].mxu1  ;;  %v1697_v23 = vpop.f32.mrb[54].mxu0 }
 0x204   : > { %v5970_v18 = vadd.f32 %v2256_v0, %v5924_v28  ;;  %v5973_v29 = vadd.f32 %v5791_v44, %v1697_v23  ;;  %v2258_v8 = vpop.f32.mrb[69].mxu1  ;;  %v1699_v40 = vpop.f32.mrb[55].mxu0 }
 0x205   : > { %v2259_v22 = vpop.f32.mrb[70].mxu1  ;;  %v2639_v8 = vld [vmem:[#allocation2 + $0x180] sm:$0xff] }
 0x206   : > { %v5976_v41 = vadd.f32 %v2259_v22, %v5929_v14  ;;  %v2261_v63 = vpop.f32.mrb[71].mxu1  ;;  %4443 = vmatmul.mubr.bf16.vlgmr.msra.gmra.mrb[160].mxu0 %v5650_v51 }
 0x207   : > { %4446 = vmatprep.mubr.bf16.mxu0 %v5654_v6 }
 0x208   : > { %2994 = vmatmul.mubr.bf16.gmra.mrb[176].mxu1 %v2636_v12 }
 0x209   : > { %v1702_v21 = vpop.f32.mrb[56].mxu0  ;;  %3001 = vmatprep.mubr.bf16.mxu1 %v2640_v17 }
 0x20a   : > { %v5981_v28 = vadd.f32 %v5802_v9, %v1702_v21  ;;  %v1704_v44 = vpop.f32.mrb[57].mxu0  ;;  %v2643_v9 = vld [vmem:[#allocation2 + $0x1a0] sm:$0xff] }
 0x20b   : > { %v2264_v56 = vpop.f32.mrb[72].mxu1  ;;  %v1705_v33 = vpop.f32.mrb[58].mxu0  ;;  %v2620_v44 = vld [vmem:[#allocation2 + $0xe8] sm:$0xff] }
 0x20c   : > { %v5984_v16 = vadd.f32 %v2264_v56, %v5934_v3  ;;  %v5987_v14 = vadd.f32 %v5807_v7, %v1705_v33  ;;  %v2266_v0 = vpop.f32.mrb[73].mxu1  ;;  %v1707_v51 = vpop.f32.mrb[59].mxu0 }
 0x20d   : > { %v2267_v23 = vpop.f32.mrb[74].mxu1 }
 0x20e   : > { %v5990_v6 = vadd.f32 %v2267_v23, %v5939_v19  ;;  %v2269_v40 = vpop.f32.mrb[75].mxu1  ;;  %4447 = vmatmul.mubr.bf16.gmra.mrb[164].mxu0 %v5664_v31 }
 0x20f   : > { %4450 = vmatprep.mubr.bf16.mxu0 %v5668_v24  ;;  %v2642_v24 = vld [vmem:[#allocation2 + $0x198] sm:$0xff]  ;;  %v2623_v40 = vld [vmem:[#allocation2 + $0x100] sm:$0xff] }
 0x210   : > { %3002 = vmatmul.mubr.bf16.gmra.mrb[180].mxu1 %v2639_v8 }
 0x211   : > { %v1710_v22 = vpop.f32.mrb[60].mxu0  ;;  %3009 = vmatprep.mubr.bf16.mxu1 %v2643_v9 }
 0x212   : > { %v5995_v3 = vadd.f32 %v5799_v35, %v1710_v22  ;;  %v1712_v7 = vpop.f32.mrb[61].mxu0  ;;  %v2646_v35 = vld [vmem:[#allocation2 + $0x1b8] sm:$0xff] }
 0x213   : > { %v2272_v12 = vpop.f32.mrb[76].mxu1  ;;  %v1713_v63 = vpop.f32.mrb[62].mxu0  ;;  %v2626_v7 = vld [vmem:[#allocation2 + $0x118] sm:$0xff] }
 0x214   : > { %v5998_v17 = vadd.f32 %v2272_v12, %v5944_v58  ;;  %v6001_v19 = vadd.f32 %v5805_v20, %v1713_v63  ;;  %v2274_v21 = vpop.f32.mrb[77].mxu1  ;;  %v1715_v31 = vpop.f32.mrb[63].mxu0  ;;  %v2645_v63 = vld [vmem:[#allocation2 + $0x1b0] sm:$0xff] }
 0x215   : > { %v2275_v56 = vpop.f32.mrb[78].mxu1  ;;  %v2649_v31 = vld [vmem:[#allocation2 + $0x1d0] sm:$0xff] }
 0x216   : > { %v6004_v33 = vadd.f32 %v2275_v56, %v5949_v54  ;;  %v2277_v0 = vpop.f32.mrb[79].mxu1  ;;  %4451 = vmatmul.mubr.bf16.gmra.mrb[168].mxu0 %v5678_v48 }
 0x217   : > { %4454 = vmatprep.mubr.bf16.mxu0 %v2620_v44  ;;  %v2629_v0 = vld [vmem:[#allocation2 + $0x130] sm:$0xff] }
 0x218   : > { %3010 = vmatmul.mubr.bf16.gmra.mrb[184].mxu1 %v2642_v24 }
 0x219   : > { %v1718_v51 = vpop.f32.mrb[64].mxu0  ;;  %3017 = vmatprep.mubr.bf16.mxu1 %v2646_v35 }
 0x21a   : > { %v6008_v58 = vadd.f32 %v5820_v11, %v1718_v51  ;;  %v1720_v20 = vpop.f32.mrb[65].mxu0 }
 0x21b   : > { %v2280_v23 = vpop.f32.mrb[80].mxu1  ;;  %v1721_v8 = vpop.f32.mrb[66].mxu0 }
 0x21c   : > { %v6011_v9 = vadd.f32 %v2280_v23, %v5954_v42  ;;  %v6014_v54 = vadd.f32 %v5824_v45, %v1721_v8  ;;  %v2282_v22 = vpop.f32.mrb[81].mxu1  ;;  %v1723_v48 = vpop.f32.mrb[67].mxu0  ;;  %v2632_v23 = vld [vmem:[#allocation2 + $0x148] sm:$0xff] }
 0x21d   : > { %v2283_v12 = vpop.f32.mrb[82].mxu1  ;;  %v2652_v48 = vld [vmem:[#allocation2 + $0x1e8] sm:$0xff] }
 0x21e   : > { %v6017_v21 = vadd.f32 %v2283_v12, %v5960_v46  ;;  %v2285_v11 = vpop.f32.mrb[83].mxu1  ;;  %4455 = vmatmul.mubr.bf16.gmra.mrb[172].mxu0 %v2623_v40  ;;  %v2648_v40 = vld [vmem:[#allocation2 + $0x1c8] sm:$0xff] }
 0x21f   : > { %4458 = vmatprep.mubr.bf16.mxu0 %v2626_v7  ;;  %v2635_v11 = vld [vmem:[#allocation2 + $0x160] sm:$0xff] }
 0x220   : > { %3018 = vmatmul.mubr.bf16.gmra.mrb[188].mxu1 %v2645_v63 }
 0x221   : > { %v1726_v44 = vpop.f32.mrb[68].mxu0  ;;  %3025 = vmatprep.mubr.bf16.mxu1 %v2649_v31 }
 0x222   : > { %v6020_v42 = vadd.f32 %v5813_v43, %v1726_v44  ;;  %v1728_v45 = vpop.f32.mrb[69].mxu0 }
 0x223   : > { %v2288_v56 = vpop.f32.mrb[84].mxu1  ;;  %v1729_v24 = vpop.f32.mrb[70].mxu0 }
 0x224   : > { %v6023_v35 = vadd.f32 %v2288_v56, %v5967_v37  ;;  %v6026_v46 = vadd.f32 %v5822_v50, %v1729_v24  ;;  %v2290_v51 = vpop.f32.mrb[85].mxu1  ;;  %v1731_v20 = vpop.f32.mrb[71].mxu0  ;;  %v2638_v56 = vld [vmem:[#allocation2 + $0x178] sm:$0xff] }
 0x225   : > { %v2291_v8 = vpop.f32.mrb[86].mxu1  ;;  %v2655_v20 = vld [vmem:[#allocation2 + $0x200] sm:$0xff] }
 0x226   : > { %v6029_v22 = vadd.f32 %v2291_v8, %v5973_v29  ;;  %v2293_v43 = vpop.f32.mrb[87].mxu1  ;;  %4459 = vmatmul.mubr.bf16.gmra.mrb[176].mxu0 %v2629_v0  ;;  %v2651_v0 = vld [vmem:[#allocation2 + $0x1e0] sm:$0xff] }
 0x227   : > { %4462 = vmatprep.mubr.bf16.mxu0 %v2632_v23  ;;  %v2641_v43 = vld [vmem:[#allocation2 + $0x190] sm:$0xff] }
 0x228   : > { %3026 = vmatmul.mubr.bf16.gmra.mrb[192].mxu1 %v2648_v40 }
 0x229   : > { %v1734_v7 = vpop.f32.mrb[72].mxu0  ;;  %3033 = vmatprep.mubr.bf16.mxu1 %v2652_v48 }
 0x22a   : > { %v6032_v37 = vadd.f32 %v5834_v62, %v1734_v7  ;;  %v1736_v50 = vpop.f32.mrb[73].mxu0 }
 0x22b   : > { %v2296_v12 = vpop.f32.mrb[88].mxu1  ;;  %v1737_v63 = vpop.f32.mrb[74].mxu0 }
 0x22c   : > { %v6035_v31 = vadd.f32 %v2296_v12, %v5981_v28  ;;  %v6038_v29 = vadd.f32 %v5838_v36, %v1737_v63  ;;  %v2298_v44 = vpop.f32.mrb[89].mxu1  ;;  %v1739_v45 = vpop.f32.mrb[75].mxu0  ;;  %v2644_v12 = vld [vmem:[#allocation2 + $0x1a8] sm:$0xff] }
 0x22d   : > { %v2299_v24 = vpop.f32.mrb[90].mxu1  ;;  %v2658_v45 = vld [vmem:[#allocation2 + $0x218] sm:$0xff] }
 0x22e   : > { %v6041_v51 = vadd.f32 %v2299_v24, %v5987_v14  ;;  %v2301_v62 = vpop.f32.mrb[91].mxu1  ;;  %4463 = vmatmul.mubr.bf16.gmra.mrb[180].mxu0 %v2635_v11  ;;  %v2654_v11 = vld [vmem:[#allocation2 + $0x1f8] sm:$0xff] }
 0x22f   : > { %4466 = vmatprep.mubr.bf16.mxu0 %v2638_v56  ;;  %v2647_v62 = vld [vmem:[#allocation2 + $0x1c0] sm:$0xff] }
 0x230   : > { %3034 = vmatmul.mubr.bf16.gmra.mrb[196].mxu1 %v2651_v0 }
 0x231   : > { %v1742_v23 = vpop.f32.mrb[76].mxu0  ;;  %3041 = vmatprep.mubr.bf16.mxu1 %v2655_v20 }
 0x232   : > { %v6044_v28 = vadd.f32 %v5830_v57, %v1742_v23  ;;  %v1744_v36 = vpop.f32.mrb[77].mxu0 }
 0x233   : > { %v2304_v8 = vpop.f32.mrb[92].mxu1  ;;  %v1745_v40 = vpop.f32.mrb[78].mxu0 }
 0x234   : > { %v6047_v48 = vadd.f32 %v2304_v8, %v5995_v3  ;;  %v6050_v14 = vadd.f32 %v5836_v1, %v1745_v40  ;;  %v2306_v7 = vpop.f32.mrb[93].mxu1  ;;  %v1747_v50 = vpop.f32.mrb[79].mxu0  ;;  %v2650_v8 = vld [vmem:[#allocation2 + $0x1d8] sm:$0xff] }
 0x235   : > { %v2307_v63 = vpop.f32.mrb[94].mxu1  ;;  %v2661_v50 = vld [vmem:[#allocation2 + $0x230] sm:$0xff] }
 0x236   : > { %v6053_v44 = vadd.f32 %v2307_v63, %v6001_v19  ;;  %v2309_v57 = vpop.f32.mrb[95].mxu1  ;;  %4467 = vmatmul.mubr.bf16.gmra.mrb[184].mxu0 %v2641_v43  ;;  %v2657_v43 = vld [vmem:[#allocation2 + $0x210] sm:$0xff] }
 0x237   : > { %4470 = vmatprep.mubr.bf16.mxu0 %v2644_v12  ;;  %v2653_v57 = vld [vmem:[#allocation2 + $0x1f0] sm:$0xff] }
 0x238   : > { %3042 = vmatmul.mubr.bf16.gmra.mrb[200].mxu1 %v2654_v11 }
 0x239   : > { %v1750_v56 = vpop.f32.mrb[80].mxu0  ;;  %3049 = vmatprep.mubr.bf16.mxu1 %v2658_v45 }
 0x23a   : > { %v6056_v3 = vadd.f32 %v5848_v10, %v1750_v56  ;;  %v1752_v1 = vpop.f32.mrb[81].mxu0 }
 0x23b   : > { %v2312_v24 = vpop.f32.mrb[96].mxu1  ;;  %v1753_v0 = vpop.f32.mrb[82].mxu0 }
 0x23c   : > { %v6059_v20 = vadd.f32 %v2312_v24, %v6008_v58  ;;  %v6062_v19 = vadd.f32 %v5852_v60, %v1753_v0  ;;  %v2314_v23 = vpop.f32.mrb[97].mxu1  ;;  %v1755_v36 = vpop.f32.mrb[83].mxu0  ;;  %v2656_v24 = vld [vmem:[#allocation2 + $0x208] sm:$0xff] }
 0x23d   : > { %v2315_v40 = vpop.f32.mrb[98].mxu1  ;;  %v2664_v36 = vld [vmem:[#allocation2 + $0x248] sm:$0xff] }
 0x23e   : > { %v6065_v7 = vadd.f32 %v2315_v40, %v6014_v54  ;;  %v2317_v10 = vpop.f32.mrb[99].mxu1  ;;  %4471 = vmatmul.mubr.bf16.gmra.mrb[188].mxu0 %v2647_v62  ;;  %v2660_v62 = vld [vmem:[#allocation2 + $0x228] sm:$0xff] }
 0x23f   : > { %4474 = vmatprep.mubr.bf16.mxu0 %v2650_v8  ;;  %v2659_v10 = vld [vmem:[#allocation2 + $0x220] sm:$0xff] }
 0x240   : > { %3050 = vmatmul.mubr.bf16.gmra.mrb[204].mxu1 %v2657_v43 }
 0x241   : > { %v1758_v12 = vpop.f32.mrb[84].mxu0  ;;  %3057 = vmatprep.mubr.bf16.mxu1 %v2661_v50 }
 0x242   : > { %v6068_v58 = vadd.f32 %v5844_v53, %v1758_v12  ;;  %v1760_v60 = vpop.f32.mrb[85].mxu0 }
 0x243   : > { %v2320_v63 = vpop.f32.mrb[100].mxu1  ;;  %v1761_v11 = vpop.f32.mrb[86].mxu0 }
 0x244   : > { %v6071_v45 = vadd.f32 %v2320_v63, %v6020_v42  ;;  %v6074_v54 = vadd.f32 %v5850_v26, %v1761_v11  ;;  %v2322_v56 = vpop.f32.mrb[101].mxu1  ;;  %v1763_v1 = vpop.f32.mrb[87].mxu0  ;;  %v2662_v63 = vld [vmem:[#allocation2 + $0x238] sm:$0xff] }
 0x245   : > { %v2323_v0 = vpop.f32.mrb[102].mxu1  ;;  %v2667_v1 = vld [vmem:[#allocation2 + $0x260] sm:$0xff] }
 0x246   : > { %v6077_v23 = vadd.f32 %v2323_v0, %v6026_v46  ;;  %v2325_v53 = vpop.f32.mrb[103].mxu1  ;;  %4475 = vmatmul.mubr.bf16.gmra.mrb[192].mxu0 %v2653_v57  ;;  %v2663_v57 = vld [vmem:[#allocation2 + $0x240] sm:$0xff] }
 0x247   : > { %4478 = vmatprep.mubr.bf16.mxu0 %v2656_v24  ;;  %v2665_v53 = vld [vmem:[#allocation2 + $0x250] sm:$0xff] }
 0x248   : > { %3058 = vmatmul.mubr.bf16.gmra.mrb[208].mxu1 %v2660_v62 }
 0x249   : > { %v1766_v8 = vpop.f32.mrb[88].mxu0  ;;  %3065 = vmatprep.mubr.bf16.mxu1 %v2664_v36 }
 0x24a   : > { %v6080_v42 = vadd.f32 %v5862_v38, %v1766_v8  ;;  %v1768_v26 = vpop.f32.mrb[89].mxu0 }
 0x24b   : > { %v2328_v40 = vpop.f32.mrb[104].mxu1  ;;  %v1769_v43 = vpop.f32.mrb[90].mxu0 }
 0x24c   : > { %v6083_v50 = vadd.f32 %v2328_v40, %v6032_v37  ;;  %v6086_v46 = vadd.f32 %v5866_v27, %v1769_v43  ;;  %v2330_v12 = vpop.f32.mrb[105].mxu1  ;;  %v1771_v60 = vpop.f32.mrb[91].mxu0  ;;  %v2668_v40 = vld [vmem:[#allocation2 + $0x268] sm:$0xff] }
 0x24d   : > { %v2331_v11 = vpop.f32.mrb[106].mxu1 }
 0x24e   : > { %v6089_v56 = vadd.f32 %v2331_v11, %v6038_v29  ;;  %v2333_v38 = vpop.f32.mrb[107].mxu1  ;;  %4479 = vmatmul.mubr.bf16.gmra.mrb[196].mxu0 %v2659_v10  ;;  %v2666_v10 = vld [vmem:[#allocation2 + $0x258] sm:$0xff] }
 0x24f   : > { %4482 = vmatprep.mubr.bf16.mxu0 %v2662_v63 }
 0x250   : > { %3066 = vmatmul.mubr.bf16.gmra.mrb[212].mxu1 %v2663_v57 }
 0x251   : > { %v1774_v24 = vpop.f32.mrb[92].mxu0  ;;  %3073 = vmatprep.mubr.bf16.mxu1 %v2667_v1 }
 0x252   : > { %v6092_v37 = vadd.f32 %v5858_v47, %v1774_v24  ;;  %v1776_v27 = vpop.f32.mrb[93].mxu0 }
 0x253   : > { %v2336_v0 = vpop.f32.mrb[108].mxu1  ;;  %v1777_v62 = vpop.f32.mrb[94].mxu0 }
 0x254   : > { %v6095_v36 = vadd.f32 %v2336_v0, %v6044_v28  ;;  %v6098_v29 = vadd.f32 %v5864_v61, %v1777_v62  ;;  %v2338_v8 = vpop.f32.mrb[109].mxu1  ;;  %v1779_v26 = vpop.f32.mrb[95].mxu0 }
 0x255   : > { %v2339_v43 = vpop.f32.mrb[110].mxu1 }
 0x256   : > { %v6101_v12 = vadd.f32 %v2339_v43, %v6050_v14  ;;  %v2341_v47 = vpop.f32.mrb[111].mxu1  ;;  %4483 = vmatmul.mubr.bf16.gmra.mrb[200].mxu0 %v2665_v53 }
 0x257   : > { %4486 = vmatprep.mubr.bf16.mxu0 %v2668_v40  ;;  %v6654_v47 = vld [vmem:[#allocation29_spill] sm:$0xff] }
 0x258   : > { %3074 = vmatmul.mubr.bf16.gmra.mrb[216].mxu1 %v2666_v10 }
 0x259   : > { %v4316_v60 = vpop.f32.mrb[96].mxu0  ;;  %3081 = vmatprep.mubr.bf16.mxu1 %v5915_v5 }
 0x25a   : > { %v1824_v28 = vadd.f32 %v4316_v60, %v5828_v49  ;;  %v1815_v63 = vpop.f32.mrb[97].mxu0  ;;  %v6655_v60 = vld [vmem:[#allocation18_spill] sm:$0xff] }
 0x25b   : > { %v1816_v61 = vadd.f32 %v1815_v63, %v5810_v39  ;;  %v2344_v11 = vpop.f32.mrb[112].mxu1  ;;  %v4317_v57 = vpop.f32.mrb[98].mxu0  ;;  %v6656_v63 = vld [vmem:[#allocation25_spill] sm:$0xff] }
 0x25c   : > { %v6107_v38 = vadd.f32 %v2344_v11, %v6056_v3  ;;  %v1827_v14 = vadd.f32 %v4317_v57, %v5832_v30  ;;  %v2346_v1 = vpop.f32.mrb[113].mxu1  ;;  %v1818_v24 = vpop.f32.mrb[99].mxu0  ;;  %v6111_v27 = vadd.f32 %v5882_v2, %v1824_v28  ;;  %v6657_v57 = vld [vmem:[#allocation31_spill] sm:$0xff] }
 0x25d   : > { %v1819_v0 = vadd.f32 %v1818_v24, %v5815_v55  ;;  %v2347_v5 = vpop.f32.mrb[114].mxu1  ;;  %v6115_v49 = vadd.f32 %v5872_v4, %v1816_v61  ;;  %v6652_v4 = vld [vmem:[#allocation17_spill] sm:$0xff]  ;;  %v6658_v1 = vld [vmem:[#allocation27_spill] sm:$0xff] }
 0x25e   : > { %v6118_v39 = vadd.f32 %v2347_v5, %v6062_v19  ;;  %v2349_v62 = vpop.f32.mrb[115].mxu1  ;;  %4487 = vmatmul.mubr.bf16.gmra.mrb[204].mxu0 %v5918_v32  ;;  %v6122_v3 = vadd.f32 %v5886_v59, %v1827_v14  ;;  %v6653_v32 = vld [vmem:[#allocation19_spill] sm:$0xff] }
 0x25f   : > { %v6125_v30 = vadd.f32 %v5876_v25, %v1819_v0  ;;  %v6659_v0 = vld [vmem:[#allocation22_spill] sm:$0xff] }
 0x260   : > { %3082 = vmatmul.mubr.bf16.gmra.mrb[220].mxu1 %v5921_v15 }
 0x261   : > { %v4320_v2 = vpop.f32.mrb[100].mxu0 }
 0x262   : > { %v1840_v55 = vadd.f32 %v4320_v2, %v5856_v34  ;;  %v1831_v53 = vpop.f32.mrb[101].mxu0  ;;  %v6660_v2 = vld [vmem:[#allocation20_spill] sm:$0xff] }
 0x263   : > { %v1832_v8 = vadd.f32 %v1831_v53, %v6652_v4  ;;  %v2352_v26 = vpop.f32.mrb[116].mxu1  ;;  %v4321_v19 = vpop.f32.mrb[102].mxu0 }
 0x264   : > { %v6131_v40 = vadd.f32 %v2352_v26, %v6068_v58  ;;  %v1843_v43 = vadd.f32 %v4321_v19, %v6653_v32  ;;  %v2354_v59 = vpop.f32.mrb[117].mxu1  ;;  %v1834_v10 = vpop.f32.mrb[103].mxu0  ;;  %v2209_v25 = vadd.f32 %v6654_v47, %v1840_v55 }
 0x265   : > { %v1835_v28 = vadd.f32 %v1834_v10, %v6655_v60  ;;  %v2355_v15 = vpop.f32.mrb[118].mxu1  ;;  %v2201_v61 = vadd.f32 %v6656_v63, %v1832_v8  ;;  %v6661_v8 = vld [vmem:[#allocation23_spill] sm:$0xff]  ;;  %v6662_v59 = vld [vmem:[#allocation34_spill] sm:$0xff] }
 0x266   : > { %v6138_v34 = vadd.f32 %v2355_v15, %v6074_v54  ;;  %v2357_v11 = vpop.f32.mrb[119].mxu1  ;;  %v2212_v14 = vadd.f32 %v6657_v57, %v1843_v43  ;;  %v6663_v43 = vld [vmem:[#allocation21_spill] sm:$0xff]  ;;  %v6666_v57 = vld [vmem:[#allocation35_spill] sm:$0xff] }
 0x267   : > { %v2204_v58 = vadd.f32 %v6658_v1, %v1835_v28  ;;  %v6664_v28 = vld [vmem:[#allocation32_spill] sm:$0xff] }
 0x269   : > { %v4324_v24 = vpop.f32.mrb[104].mxu0 }
 0x26a   : > { %v1856_v5 = vadd.f32 %v4324_v24, %v6659_v0  ;;  %v1847_v62 = vpop.f32.mrb[105].mxu0  ;;  %v6667_v24 = vld [vmem:[#allocation33_spill] sm:$0xff] }
 0x26b   : > { %v1848_v53 = vadd.f32 %v1847_v62, %v6660_v2  ;;  %v2360_v55 = vpop.f32.mrb[120].mxu1  ;;  %v4325_v4 = vpop.f32.mrb[106].mxu0  ;;  %v6668_v62 = vld [vmem:[#allocation28_spill] sm:$0xff] }
 0x26c   : > { %v6145_v26 = vadd.f32 %v2360_v55, %v6080_v42  ;;  %v1859_v19 = vadd.f32 %v4325_v4, %v6661_v8  ;;  %v2362_v54 = vpop.f32.mrb[121].mxu1  ;;  %v1850_v32 = vpop.f32.mrb[107].mxu0  ;;  %v2225_v10 = vadd.f32 %v6662_v59, %v1856_v5  ;;  %v6669_v4 = vld [vmem:[#allocation24_spill] sm:$0xff] }
 0x26d   : > { %v1851_v47 = vadd.f32 %v1850_v32, %v6663_v43  ;;  %v2363_v60 = vpop.f32.mrb[122].mxu1  ;;  %v2217_v15 = vadd.f32 %v6664_v28, %v1848_v53  ;;  %v6670_v53 = vld [vmem:[#allocation30_spill] sm:$0xff] }
 0x26e   : > { %v6152_v63 = vadd.f32 %v2363_v60, %v6086_v46  ;;  %v2365_v11 = vpop.f32.mrb[123].mxu1  ;;  %v2228_v1 = vadd.f32 %v6666_v57, %v1859_v19  ;;  %v6671_v60 = vld [vmem:[#allocation38_spill] sm:$0xff]  ;;  %v6673_v57 = vld [vmem:[#allocation36_spill] sm:$0xff] }
 0x26f   : > { %v2220_v42 = vadd.f32 %v6667_v24, %v1851_v47  ;;  %v6672_v19 = vld [vmem:[#allocation26_spill] sm:$0xff] }
 0x270   : > { %6665 = vst [vmem:[#allocation17_spill] sm:$0xff] %v6152_v63  ;;  %v6675_v63 = vld [vmem:[#allocation37_spill] sm:$0xff] }
 0x271   : > { %v4328_v0 = vpop.f32.mrb[108].mxu0 }
 0x272   : > { %v1872_v2 = vadd.f32 %v4328_v0, %v6668_v62  ;;  %v1863_v55 = vpop.f32.mrb[109].mxu0 }
 0x273   : > { %v1864_v8 = vadd.f32 %v1863_v55, %v6669_v4  ;;  %v2368_v5 = vpop.f32.mrb[124].mxu1  ;;  %v4329_v54 = vpop.f32.mrb[110].mxu0  ;;  %v6674_v55 = vld [vmem:[#allocation39_spill] sm:$0xff] }
 0x274   : > { %v6159_v32 = vadd.f32 %v2368_v5, %v6092_v37  ;;  %v1875_v59 = vadd.f32 %v4329_v54, %v6670_v53  ;;  %v2370_v46 = vpop.f32.mrb[125].mxu1  ;;  %v1866_v43 = vpop.f32.mrb[111].mxu0  ;;  %v2241_v28 = vadd.f32 %v6671_v60, %v1872_v2 }
 0x275   : > { %v1867_v11 = vadd.f32 %v1866_v43, %v6672_v19  ;;  %v2371_v47 = vpop.f32.mrb[126].mxu1  ;;  %v2233_v24 = vadd.f32 %v6673_v57, %v1864_v8 }
 0x276   : > { %v6166_v0 = vadd.f32 %v2371_v47, %v6098_v29  ;;  %v2373_v62 = vpop.f32.mrb[127].mxu1  ;;  %v2244_v4 = vadd.f32 %v6674_v55, %v1875_v59 }
 0x277   : > { %v2236_v37 = vadd.f32 %v6675_v63, %v1867_v11 }
 0x279   : > { %v4380_v5 = vpop.f32.mrb[112].mxu0 }
 0x27a   : > { %v6171_v54 = vadd.f32 %v4380_v5, %v6111_v27  ;;  %v2409_v53 = vpop.f32.mrb[113].mxu0 }
 0x27b   : > { %v6174_v2 = vadd.f32 %v2409_v53, %v6115_v49  ;;  %v6176_v46 = vpop.f32.mrb[128].mxu1  ;;  %v4381_v43 = vpop.f32.mrb[114].mxu0 }
 0x27c   : > { %v6179_v8 = vadd.f32 %v4381_v43, %v6122_v3  ;;  %v2901_v29 = vpop.f32.mrb[129].mxu1  ;;  %v2412_v60 = vpop.f32.mrb[115].mxu0 }
 0x27d   : > { %v6182_v59 = vadd.f32 %v2412_v60, %v6125_v30  ;;  %v6184_v63 = vpop.f32.mrb[130].mxu1 }
 0x27e   : > { %v2904_v19 = vpop.f32.mrb[131].mxu1 }
 0x281   : > { %v4384_v27 = vpop.f32.mrb[116].mxu0 }
 0x282   : > { %v6186_v11 = vadd.f32 %v4384_v27, %v2209_v25  ;;  %v2425_v47 = vpop.f32.mrb[117].mxu0 }
 0x283   : > { %v6188_v49 = vadd.f32 %v2425_v47, %v2201_v61  ;;  %v6190_v57 = vpop.f32.mrb[132].mxu1  ;;  %v4385_v62 = vpop.f32.mrb[118].mxu0 }
 0x284   : > { %v6192_v55 = vadd.f32 %v4385_v62, %v2212_v14  ;;  %v2909_v3 = vpop.f32.mrb[133].mxu1  ;;  %v2428_v5 = vpop.f32.mrb[119].mxu0 }
 0x285   : > { %v6194_v53 = vadd.f32 %v2428_v5, %v2204_v58  ;;  %v6196_v30 = vpop.f32.mrb[134].mxu1 }
 0x286   : > { %v2912_v43 = vpop.f32.mrb[135].mxu1 }
 0x287   : > { %6676 = vst [vmem:[#allocation19_spill] sm:$0xff] %v6194_v53 }
 0x289   : > { %v4388_v29 = vpop.f32.mrb[120].mxu0 }
 0x28a   : > { %v6198_v60 = vadd.f32 %v4388_v29, %v2225_v10  ;;  %v2441_v25 = vpop.f32.mrb[121].mxu0 }
 0x28b   : > { %v6200_v19 = vadd.f32 %v2441_v25, %v2217_v15  ;;  %v6202_v61 = vpop.f32.mrb[136].mxu1  ;;  %v4389_v27 = vpop.f32.mrb[122].mxu0 }
 0x28c   : > { %v6204_v47 = vadd.f32 %v4389_v27, %v2228_v1  ;;  %v2917_v14 = vpop.f32.mrb[137].mxu1  ;;  %v2444_v62 = vpop.f32.mrb[123].mxu0 }
 0x28d   : > { %6677 = vst [vmem:[#allocation29_spill] sm:$0xff] %v6200_v19  ;;  %v6206_v3 = vadd.f32 %v2444_v62, %v2220_v42  ;;  %v6208_v58 = vpop.f32.mrb[138].mxu1 }
 0x28e   : > { %v2920_v5 = vpop.f32.mrb[139].mxu1 }
 0x28f   : > { %6678 = vst [vmem:[#allocation18_spill] sm:$0xff] %v6206_v3 }
 0x291   : > { %v4392_v53 = vpop.f32.mrb[124].mxu0 }
 0x292   : > { %v6210_v43 = vadd.f32 %v4392_v53, %v2241_v28  ;;  %v2457_v10 = vpop.f32.mrb[125].mxu0 }
 0x293   : > { %v6212_v29 = vadd.f32 %v2457_v10, %v2233_v24  ;;  %v6214_v15 = vpop.f32.mrb[140].mxu1  ;;  %v4393_v25 = vpop.f32.mrb[126].mxu0 }
 0x294   : > { %v6216_v19 = vadd.f32 %v4393_v25, %v2244_v4  ;;  %v2925_v1 = vpop.f32.mrb[141].mxu1  ;;  %v2460_v27 = vpop.f32.mrb[127].mxu0 }
 0x295   : > { %v6218_v14 = vadd.f32 %v2460_v27, %v2236_v37  ;;  %v6220_v42 = vpop.f32.mrb[142].mxu1 }
 0x296   : > { %v2928_v62 = vpop.f32.mrb[143].mxu1 }
 0x299   : > { %v4396_v3 = vpop.f32.mrb[128].mxu0 }
 0x29a   : > { %v6223_v5 = vadd.f32 %v4396_v3, %v5970_v18  ;;  %v2473_v28 = vpop.f32.mrb[129].mxu0 }
 0x29b   : > { %v6226_v24 = vadd.f32 %v2473_v28, %v5957_v13  ;;  %v6228_v53 = vpop.f32.mrb[144].mxu1  ;;  %v4397_v10 = vpop.f32.mrb[130].mxu0 }
 0x29c   : > { %v6231_v4 = vadd.f32 %v4397_v10, %v5976_v41  ;;  %v2933_v25 = vpop.f32.mrb[145].mxu1  ;;  %v2476_v37 = vpop.f32.mrb[131].mxu0 }
 0x29d   : > { %6679 = vst [vmem:[#allocation25_spill] sm:$0xff] %v6226_v24  ;;  %v6234_v1 = vadd.f32 %v2476_v37, %v5963_v52  ;;  %v6236_v27 = vpop.f32.mrb[146].mxu1 }
 0x29e   : > { %v2936_v62 = vpop.f32.mrb[147].mxu1 }
 0x29f   : > { %6680 = vst [vmem:[#allocation31_spill] sm:$0xff] %v6234_v1 }
 0x2a1   : > { %v4400_v18 = vpop.f32.mrb[132].mxu0 }
 0x2a2   : > { %v6239_v3 = vadd.f32 %v4400_v18, %v5998_v17  ;;  %v2489_v13 = vpop.f32.mrb[133].mxu0 }
 0x2a3   : > { %v6242_v28 = vadd.f32 %v2489_v13, %v5984_v16  ;;  %v6244_v24 = vpop.f32.mrb[148].mxu1  ;;  %v4401_v41 = vpop.f32.mrb[134].mxu0 }
 0x2a4   : > { %v6247_v10 = vadd.f32 %v4401_v41, %v6004_v33  ;;  %v2941_v25 = vpop.f32.mrb[149].mxu1  ;;  %v2492_v52 = vpop.f32.mrb[135].mxu0 }
 0x2a5   : > { %6681 = vst [vmem:[#allocation27_spill] sm:$0xff] %v6242_v28  ;;  %v6250_v37 = vadd.f32 %v2492_v52, %v5990_v6  ;;  %v6252_v62 = vpop.f32.mrb[150].mxu1 }
 0x2a6   : > { %v2944_v1 = vpop.f32.mrb[151].mxu1 }
 0x2a7   : > { %6682 = vst [vmem:[#allocation22_spill] sm:$0xff] %v6250_v37 }
 0x2a9   : > { %v4404_v17 = vpop.f32.mrb[136].mxu0 }
 0x2aa   : > { %v6255_v18 = vadd.f32 %v4404_v17, %v6023_v35  ;;  %v2505_v16 = vpop.f32.mrb[137].mxu0 }
 0x2ab   : > { %v6258_v13 = vadd.f32 %v2505_v16, %v6011_v9  ;;  %v6260_v28 = vpop.f32.mrb[152].mxu1  ;;  %v4405_v33 = vpop.f32.mrb[138].mxu0 }
 0x2ac   : > { %v6263_v41 = vadd.f32 %v4405_v33, %v6029_v22  ;;  %v2949_v25 = vpop.f32.mrb[153].mxu1  ;;  %v2508_v6 = vpop.f32.mrb[139].mxu0 }
 0x2ad   : > { %6683 = vst [vmem:[#allocation20_spill] sm:$0xff] %v6258_v13  ;;  %v6266_v52 = vadd.f32 %v2508_v6, %v6017_v21  ;;  %v6268_v1 = vpop.f32.mrb[154].mxu1 }
 0x2ae   : > { %v2952_v37 = vpop.f32.mrb[155].mxu1 }
 0x2af   : > { %6684 = vst [vmem:[#allocation23_spill] sm:$0xff] %v6266_v52 }
 0x2b1   : > { %v4408_v35 = vpop.f32.mrb[140].mxu0 }
 0x2b2   : > { %v6271_v17 = vadd.f32 %v4408_v35, %v6047_v48  ;;  %v2521_v9 = vpop.f32.mrb[141].mxu0 }
 0x2b3   : > { %v6274_v16 = vadd.f32 %v2521_v9, %v6035_v31  ;;  %v6276_v13 = vpop.f32.mrb[156].mxu1  ;;  %v4409_v22 = vpop.f32.mrb[142].mxu0 }
 0x2b4   : > { %v6279_v33 = vadd.f32 %v4409_v22, %v6053_v44  ;;  %v2957_v25 = vpop.f32.mrb[157].mxu1  ;;  %v2524_v21 = vpop.f32.mrb[143].mxu0 }
 0x2b5   : > { %6685 = vst [vmem:[#allocation34_spill] sm:$0xff] %v6274_v16  ;;  %v6282_v6 = vadd.f32 %v2524_v21, %v6041_v51  ;;  %v6284_v37 = vpop.f32.mrb[158].mxu1 }
 0x2b6   : > { %v2960_v52 = vpop.f32.mrb[159].mxu1 }
 0x2b7   : > { %6686 = vst [vmem:[#allocation21_spill] sm:$0xff] %v6282_v6 }
 0x2b9   : > { %v4412_v48 = vpop.f32.mrb[144].mxu0 }
 0x2ba   : > { %v6287_v35 = vadd.f32 %v4412_v48, %v6071_v45  ;;  %v2537_v31 = vpop.f32.mrb[145].mxu0 }
 0x2bb   : > { %v6290_v9 = vadd.f32 %v2537_v31, %v6059_v20  ;;  %v6292_v16 = vpop.f32.mrb[160].mxu1  ;;  %v4413_v44 = vpop.f32.mrb[146].mxu0 }
 0x2bc   : > { %v6295_v22 = vadd.f32 %v4413_v44, %v6077_v23  ;;  %v2965_v25 = vpop.f32.mrb[161].mxu1  ;;  %v2540_v51 = vpop.f32.mrb[147].mxu0 }
 0x2bd   : > { %6687 = vst [vmem:[#allocation32_spill] sm:$0xff] %v6290_v9  ;;  %v6298_v21 = vadd.f32 %v2540_v51, %v6065_v7  ;;  %v6300_v52 = vpop.f32.mrb[162].mxu1 }
 0x2be   : > { %v2968_v6 = vpop.f32.mrb[163].mxu1 }
 0x2bf   : > { %6688 = vst [vmem:[#allocation35_spill] sm:$0xff] %v6298_v21 }
 0x2c1   : > { %v4416_v45 = vpop.f32.mrb[148].mxu0 }
 0x2c2   : > { %v6303_v48 = vadd.f32 %v4416_v45, %v6095_v36  ;;  %v2553_v20 = vpop.f32.mrb[149].mxu0 }
 0x2c3   : > { %v6306_v31 = vadd.f32 %v2553_v20, %v6083_v50  ;;  %v6308_v9 = vpop.f32.mrb[164].mxu1  ;;  %v4417_v23 = vpop.f32.mrb[150].mxu0 }
 0x2c4   : > { %v6311_v44 = vadd.f32 %v4417_v23, %v6101_v12  ;;  %v2973_v25 = vpop.f32.mrb[165].mxu1  ;;  %v2556_v7 = vpop.f32.mrb[151].mxu0 }
 0x2c5   : > { %6689 = vst [vmem:[#allocation33_spill] sm:$0xff] %v6306_v31  ;;  %v6314_v51 = vadd.f32 %v2556_v7, %v6089_v56  ;;  %v6316_v6 = vpop.f32.mrb[166].mxu1 }
 0x2c6   : > { %v2976_v21 = vpop.f32.mrb[167].mxu1 }
 0x2c7   : > { %6690 = vst [vmem:[#allocation28_spill] sm:$0xff] %v6314_v51 }
 0x2c9   : > { %v4420_v36 = vpop.f32.mrb[152].mxu0 }
 0x2ca   : > { %v6319_v45 = vadd.f32 %v4420_v36, %v6131_v40  ;;  %v2569_v50 = vpop.f32.mrb[153].mxu0 }
 0x2cb   : > { %v6322_v20 = vadd.f32 %v2569_v50, %v6107_v38  ;;  %v6324_v31 = vpop.f32.mrb[168].mxu1  ;;  %v4421_v12 = vpop.f32.mrb[154].mxu0 }
 0x2cc   : > { %6691 = vst [vmem:[#allocation24_spill] sm:$0xff] %v6319_v45  ;;  %v6327_v23 = vadd.f32 %v4421_v12, %v6138_v34  ;;  %v2981_v25 = vpop.f32.mrb[169].mxu1  ;;  %v2572_v56 = vpop.f32.mrb[155].mxu0 }
 0x2cd   : > { %6692 = vst [vmem:[#allocation30_spill] sm:$0xff] %v6322_v20  ;;  %v6330_v7 = vadd.f32 %v2572_v56, %v6118_v39  ;;  %v6332_v21 = vpop.f32.mrb[170].mxu1  ;;  %v6698_v56 = vld [vmem:[#allocation17_spill] sm:$0xff] }
 0x2ce   : > { %6693 = vst [vmem:[#allocation38_spill] sm:$0xff] %v6327_v23  ;;  %v2984_v51 = vpop.f32.mrb[171].mxu1 }
 0x2cf   : > { %6694 = vst [vmem:[#allocation26_spill] sm:$0xff] %v6330_v7 }
 0x2d1   : > { %v4424_v40 = vpop.f32.mrb[156].mxu0 }
 0x2d2   : > { %v6335_v36 = vadd.f32 %v4424_v40, %v6159_v32  ;;  %v2585_v38 = vpop.f32.mrb[157].mxu0 }
 0x2d3   : > { %v6338_v50 = vadd.f32 %v2585_v38, %v6145_v26  ;;  %v6340_v20 = vpop.f32.mrb[172].mxu1  ;;  %v4425_v34 = vpop.f32.mrb[158].mxu0 }
 0x2d4   : > { %6695 = vst [vmem:[#allocation36_spill] sm:$0xff] %v6335_v36  ;;  %v6343_v12 = vadd.f32 %v4425_v34, %v6166_v0  ;;  %v2989_v25 = vpop.f32.mrb[173].mxu1  ;;  %v2588_v39 = vpop.f32.mrb[159].mxu0 }
 0x2d5   : > { %6696 = vst [vmem:[#allocation39_spill] sm:$0xff] %v6338_v50  ;;  %v6346_v7 = vadd.f32 %v2588_v39, %v6698_v56  ;;  %v6348_v51 = vpop.f32.mrb[174].mxu1  ;;  %v6359_v39 = vld [vmem:[%s6603_s3] ss:$0 sm:$0xff] }
 0x2d6   : > { %6697 = vst [vmem:[#allocation37_spill] sm:$0xff] %v6343_v12  ;;  %v2992_v32 = vpop.f32.mrb[175].mxu1 }
 0x2d7   : > { %6699 = vst [vmem:[#allocation17_spill] sm:$0xff] %v6346_v7 }
 0x2d9   : > { %v4444_v40 = vpop.f32.mrb[160].mxu0 }
 0x2da   : > { %v3133_v36 = vadd.f32 %v4444_v40, %v6190_v57  ;;  %v3124_v26 = vpop.f32.mrb[161].mxu0 }
 0x2db   : > { %v6351_v38 = vpop.f32.mrb[176].mxu1  ;;  %v3125_v50 = vadd.f32 %v3124_v26, %v6176_v46  ;;  %v4445_v23 = vpop.f32.mrb[162].mxu0 }
 0x2dc   : > { %v3317_v0 = vadd.f32 %v3133_v36, %v6171_v54  ;;  %v2997_v34 = vpop.f32.mrb[177].mxu1  ;;  %v3136_v25 = vadd.f32 %v4445_v23, %v6196_v30  ;;  %v3127_v12 = vpop.f32.mrb[163].mxu0 }
 0x2dd   : > { %v3315_v56 = vadd.f32 %v3125_v50, %v6174_v2  ;;  %v6363_v57 = vpop.f32.mrb[178].mxu1  ;;  %v3128_v32 = vadd.f32 %v3127_v12, %v6184_v63 }
 0x2de   : > { %v3318_v46 = vadd.f32 %v3136_v25, %v6179_v8  ;;  %v3000_v40 = vpop.f32.mrb[179].mxu1  ;;  %v3372_v30 = vadd.f32 %v6359_v39, %v3317_v0 }
 0x2df   : > { %v3316_v54 = vadd.f32 %v3128_v32, %v6182_v59  ;;  %v3370_v36 = vadd.f32 %v6359_v39, %v3315_v56  ;;  %v6700_v40 = vld [vmem:[#allocation19_spill] sm:$0xff] }
 0x2e0   : > { %v3373_v23 = vadd.f32 %v6359_v39, %v3318_v46 }
 0x2e1   : > { %v3371_v26 = vadd.f32 %v6359_v39, %v3316_v54  ;;  %v4448_v34 = vpop.f32.mrb[164].mxu0 }
 0x2e2   : > { %v4067_v2 = vpack.c.bf16 %v3373_v23, %v3372_v30  ;;  %v3149_v50 = vadd.f32 %v4448_v34, %v6214_v15  ;;  %v3140_v7 = vpop.f32.mrb[165].mxu0 }
 0x2e3   : > { %v4062_v45 = vpack.c.bf16 %v3371_v26, %v3370_v36  ;;  %v6373_v63 = vpop.f32.mrb[180].mxu1  ;;  %v3141_v8 = vadd.f32 %v3140_v7, %v6202_v61  ;;  %v4449_v12 = vpop.f32.mrb[166].mxu0 }
 0x2e4   : > { %4179 = vst [vmem:[%s6376_s8 + $0x8] sm:$0xff] %v4067_v2   ;;  %v3321_v59 = vadd.f32 %v3149_v50, %v6186_v11  ;;  %v3005_v0 = vpop.f32.mrb[181].mxu1  ;;  %v3152_v25 = vadd.f32 %v4449_v12, %v6220_v42  ;;  %v3143_v56 = vpop.f32.mrb[167].mxu0 }
 0x2e5   : > { %4063 = vst [vmem:[%s6376_s8] sm:$0xff] %v4062_v45   ;;  %v3319_v15 = vadd.f32 %v3141_v8, %v6188_v49  ;;  %v6383_v32 = vpop.f32.mrb[182].mxu1  ;;  %v3144_v46 = vadd.f32 %v3143_v56, %v6208_v58  ;;  %v6701_v0 = vld [vmem:[#allocation29_spill] sm:$0xff] }
 0x2e6   : > { %v3322_v61 = vadd.f32 %v3152_v25, %v6192_v55  ;;  %v3008_v7 = vpop.f32.mrb[183].mxu1  ;;  %v3376_v30 = vadd.f32 %v6359_v39, %v3321_v59 }
 0x2e7   : > { %v3320_v54 = vadd.f32 %v3144_v46, %v6700_v40  ;;  %v3374_v42 = vadd.f32 %v6359_v39, %v3319_v15 }
 0x2e8   : > { %v3377_v11 = vadd.f32 %v6359_v39, %v3322_v61 }
 0x2e9   : > { %v3375_v45 = vadd.f32 %v6359_v39, %v3320_v54  ;;  %v4452_v49 = vpop.f32.mrb[168].mxu0 }
 0x2ea   : > { %v4077_v23 = vpack.c.bf16 %v3377_v11, %v3376_v30  ;;  %v3165_v36 = vadd.f32 %v4452_v49, %v6244_v24  ;;  %v3156_v58 = vpop.f32.mrb[169].mxu0 }
 0x2eb   : > { %v4072_v26 = vpack.c.bf16 %v3375_v45, %v3374_v42  ;;  %v6393_v34 = vpop.f32.mrb[184].mxu1  ;;  %v3157_v55 = vadd.f32 %v3156_v58, %v6228_v53  ;;  %v4453_v2 = vpop.f32.mrb[170].mxu0  ;;  %v6702_v53 = vld [vmem:[#allocation18_spill] sm:$0xff] }
 0x2ec   : > { %4181 = vst [vmem:[%s6376_s8 + $0x18] sm:$0xff] %v4077_v23   ;;  %v3325_v50 = vadd.f32 %v3165_v36, %v6198_v60  ;;  %v3013_v8 = vpop.f32.mrb[185].mxu1  ;;  %v3168_v12 = vadd.f32 %v4453_v2, %v6252_v62  ;;  %v3159_v59 = vpop.f32.mrb[171].mxu0 }
 0x2ed   : > { %4180 = vst [vmem:[%s6376_s8 + $0x10] sm:$0xff] %v4072_v26   ;;  %v3323_v25 = vadd.f32 %v3157_v55, %v6701_v0  ;;  %v6401_v56 = vpop.f32.mrb[186].mxu1  ;;  %v3160_v24 = vadd.f32 %v3159_v59, %v6236_v27 }
 0x2ee   : > { %v3326_v15 = vadd.f32 %v3168_v12, %v6204_v47  ;;  %v3016_v46 = vpop.f32.mrb[187].mxu1  ;;  %v3380_v7 = vadd.f32 %v6359_v39, %v3325_v50 }
 0x2ef   : > { %v3324_v61 = vadd.f32 %v3160_v24, %v6702_v53  ;;  %v3378_v62 = vadd.f32 %v6359_v39, %v3323_v25 }
 0x2f0   : > { %v3381_v60 = vadd.f32 %v6359_v39, %v3326_v15 }
 0x2f1   : > { %v3379_v40 = vadd.f32 %v6359_v39, %v3324_v61  ;;  %v4456_v54 = vpop.f32.mrb[172].mxu0 }
 0x2f2   : > { %v4087_v30 = vpack.c.bf16 %v3381_v60, %v3380_v7  ;;  %v3181_v11 = vadd.f32 %v4456_v54, %v6276_v13  ;;  %v3172_v27 = vpop.f32.mrb[173].mxu0  ;;  %v6703_v60 = vld [vmem:[#allocation25_spill] sm:$0xff] }
 0x2f3   : > { %v4082_v42 = vpack.c.bf16 %v3379_v40, %v3378_v62  ;;  %v6411_v45 = vpop.f32.mrb[188].mxu1  ;;  %v3173_v47 = vadd.f32 %v3172_v27, %v6260_v28  ;;  %v4457_v49 = vpop.f32.mrb[174].mxu0 }
 0x2f4   : > { %4183 = vst [vmem:[%s6376_s8 + $0x28] sm:$0xff] %v4087_v30   ;;  %v3329_v23 = vadd.f32 %v3181_v11, %v6210_v43  ;;  %v3021_v36 = vpop.f32.mrb[189].mxu1  ;;  %v3184_v58 = vadd.f32 %v4457_v49, %v6284_v37  ;;  %v3175_v26 = vpop.f32.mrb[175].mxu0 }
 0x2f5   : > { %4182 = vst [vmem:[%s6376_s8 + $0x20] sm:$0xff] %v4082_v42   ;;  %v3327_v55 = vadd.f32 %v3173_v47, %v6212_v29  ;;  %v6419_v2 = vpop.f32.mrb[190].mxu1  ;;  %v3176_v13 = vadd.f32 %v3175_v26, %v6268_v1 }
 0x2f6   : > { %v3330_v50 = vadd.f32 %v3184_v58, %v6216_v19  ;;  %v3024_v8 = vpop.f32.mrb[191].mxu1  ;;  %v3384_v12 = vadd.f32 %v6359_v39, %v3329_v23 }
 0x2f7   : > { %v3328_v28 = vadd.f32 %v3176_v13, %v6218_v14  ;;  %v3382_v37 = vadd.f32 %v6359_v39, %v3327_v55 }
 0x2f8   : > { %v3385_v43 = vadd.f32 %v6359_v39, %v3330_v50 }
 0x2f9   : > { %v3383_v59 = vadd.f32 %v6359_v39, %v3328_v28  ;;  %v4460_v29 = vpop.f32.mrb[176].mxu0  ;;  %v6705_v28 = vld [vmem:[#allocation27_spill] sm:$0xff] }
 0x2fa   : > { %v4097_v0 = vpack.c.bf16 %v3385_v43, %v3384_v12  ;;  %v3197_v25 = vadd.f32 %v4460_v29, %v6308_v9  ;;  %v3188_v1 = vpop.f32.mrb[177].mxu0 }
 0x2fb   : > { %v4092_v24 = vpack.c.bf16 %v3383_v59, %v3382_v37  ;;  %v6429_v15 = vpop.f32.mrb[192].mxu1  ;;  %v3189_v19 = vadd.f32 %v3188_v1, %v6292_v16  ;;  %v4461_v14 = vpop.f32.mrb[178].mxu0  ;;  %v6704_v16 = vld [vmem:[#allocation31_spill] sm:$0xff] }
 0x2fc   : > { %4185 = vst [vmem:[%s6376_s8 + $0x38] sm:$0xff] %v4097_v0   ;;  %v3333_v46 = vadd.f32 %v3197_v25, %v6223_v5  ;;  %v3029_v53 = vpop.f32.mrb[193].mxu1  ;;  %v3200_v61 = vadd.f32 %v4461_v14, %v6316_v6  ;;  %v3191_v7 = vpop.f32.mrb[179].mxu0 }
 0x2fd   : > { %4184 = vst [vmem:[%s6376_s8 + $0x30] sm:$0xff] %v4092_v24   ;;  %v3331_v62 = vadd.f32 %v3189_v19, %v6703_v60  ;;  %v6437_v40 = vpop.f32.mrb[194].mxu1  ;;  %v3192_v9 = vadd.f32 %v3191_v7, %v6300_v52 }
 0x2fe   : > { %v3334_v54 = vadd.f32 %v3200_v61, %v6231_v4  ;;  %v3032_v30 = vpop.f32.mrb[195].mxu1  ;;  %v3388_v27 = vadd.f32 %v6359_v39, %v3333_v46 }
 0x2ff   : > { %v3332_v11 = vadd.f32 %v3192_v9, %v6704_v16  ;;  %v3386_v6 = vadd.f32 %v6359_v39, %v3331_v62  ;;  %v6707_v9 = vld [vmem:[#allocation20_spill] sm:$0xff] }
 0x300   : > { %v3389_v5 = vadd.f32 %v6359_v39, %v3334_v54 }
 0x301   : > { %v3387_v42 = vadd.f32 %v6359_v39, %v3332_v11  ;;  %v4464_v47 = vpop.f32.mrb[180].mxu0 }
 0x302   : > { %v4107_v49 = vpack.c.bf16 %v3389_v5, %v3388_v27  ;;  %v3213_v23 = vadd.f32 %v4464_v47, %v6340_v20  ;;  %v3204_v52 = vpop.f32.mrb[181].mxu0 }
 0x303   : > { %v4102_v36 = vpack.c.bf16 %v3387_v42, %v3386_v6  ;;  %v6447_v58 = vpop.f32.mrb[196].mxu1  ;;  %v3205_v4 = vadd.f32 %v3204_v52, %v6324_v31  ;;  %v4465_v26 = vpop.f32.mrb[182].mxu0  ;;  %v6706_v31 = vld [vmem:[#allocation22_spill] sm:$0xff] }
 0x304   : > { %4187 = vst [vmem:[%s6376_s8 + $0x48] sm:$0xff] %v4107_v49   ;;  %v3337_v55 = vadd.f32 %v3213_v23, %v6239_v3  ;;  %v3037_v13 = vpop.f32.mrb[197].mxu1  ;;  %v3216_v50 = vadd.f32 %v4465_v26, %v6348_v51  ;;  %v3207_v8 = vpop.f32.mrb[183].mxu0 }
 0x305   : > { %4186 = vst [vmem:[%s6376_s8 + $0x40] sm:$0xff] %v4102_v36   ;;  %v3335_v12 = vadd.f32 %v3205_v4, %v6705_v28  ;;  %v6455_v43 = vpop.f32.mrb[198].mxu1  ;;  %v3208_v20 = vadd.f32 %v3207_v8, %v6332_v21 }
 0x306   : > { %v3338_v37 = vadd.f32 %v3216_v50, %v6247_v10  ;;  %v3040_v59 = vpop.f32.mrb[199].mxu1  ;;  %v3392_v0 = vadd.f32 %v6359_v39, %v3337_v55  ;;  %v6709_v50 = vld [vmem:[#allocation34_spill] sm:$0xff] }
 0x307   : > { %v3336_v29 = vadd.f32 %v3208_v20, %v6706_v31  ;;  %v3390_v51 = vadd.f32 %v6359_v39, %v3335_v12 }
 0x308   : > { %v3393_v3 = vadd.f32 %v6359_v39, %v3338_v37  ;;  %v6710_v37 = vld [vmem:[#allocation21_spill] sm:$0xff] }
 0x309   : > { %v3391_v25 = vadd.f32 %v6359_v39, %v3336_v29  ;;  %v4468_v1 = vpop.f32.mrb[184].mxu0 }
 0x30a   : > { %v4117_v24 = vpack.c.bf16 %v3393_v3, %v3392_v0  ;;  %v3229_v19 = vadd.f32 %v4468_v1, %v6373_v63  ;;  %v3220_v21 = vpop.f32.mrb[185].mxu0 }
 0x30b   : > { %v4112_v14 = vpack.c.bf16 %v3391_v25, %v3390_v51  ;;  %v6465_v46 = vpop.f32.mrb[200].mxu1  ;;  %v3221_v10 = vadd.f32 %v3220_v21, %v6351_v38  ;;  %v4469_v53 = vpop.f32.mrb[186].mxu0  ;;  %v6708_v38 = vld [vmem:[#allocation23_spill] sm:$0xff] }
 0x30c   : > { %4189 = vst [vmem:[%s6376_s8 + $0x58] sm:$0xff] %v4117_v24   ;;  %v3341_v61 = vadd.f32 %v3229_v19, %v6255_v18  ;;  %v3045_v7 = vpop.f32.mrb[201].mxu1  ;;  %v3232_v60 = vadd.f32 %v4469_v53, %v6383_v32  ;;  %v3223_v62 = vpop.f32.mrb[187].mxu0 }
 0x30d   : > { %4188 = vst [vmem:[%s6376_s8 + $0x50] sm:$0xff] %v4112_v14   ;;  %v3339_v54 = vadd.f32 %v3221_v10, %v6707_v9  ;;  %v6473_v30 = vpop.f32.mrb[202].mxu1  ;;  %v3224_v63 = vadd.f32 %v3223_v62, %v6363_v57  ;;  %v6711_v10 = vld [vmem:[#allocation32_spill] sm:$0xff]  ;;  %v6712_v62 = vld [vmem:[#allocation35_spill] sm:$0xff] }
 0x30e   : > { %v3342_v16 = vadd.f32 %v3232_v60, %v6263_v41  ;;  %v3048_v11 = vpop.f32.mrb[203].mxu1  ;;  %v3396_v5 = vadd.f32 %v6359_v39, %v3341_v61 }
 0x30f   : > { %v3340_v27 = vadd.f32 %v3224_v63, %v6708_v38  ;;  %v3394_v32 = vadd.f32 %v6359_v39, %v3339_v54 }
 0x310   : > { %v3397_v18 = vadd.f32 %v6359_v39, %v3342_v16 }
 0x311   : > { %v3395_v6 = vadd.f32 %v6359_v39, %v3340_v27  ;;  %v4472_v42 = vpop.f32.mrb[188].mxu0 }
 0x312   : > { %v4127_v47 = vpack.c.bf16 %v3397_v18, %v3396_v5  ;;  %v3245_v49 = vadd.f32 %v4472_v42, %v6411_v45  ;;  %v3236_v57 = vpop.f32.mrb[189].mxu0 }
 0x313   : > { %v4122_v23 = vpack.c.bf16 %v3395_v6, %v3394_v32  ;;  %v3051_v52 = vpop.f32.mrb[204].mxu1  ;;  %v3237_v41 = vadd.f32 %v3236_v57, %v6393_v34  ;;  %v4473_v36 = vpop.f32.mrb[190].mxu0 }
 0x314   : > { %4191 = vst [vmem:[%s6376_s8 + $0x68] sm:$0xff] %v4127_v47   ;;  %v3345_v4 = vadd.f32 %v3245_v49, %v6271_v17  ;;  %v3053_v26 = vpop.f32.mrb[205].mxu1  ;;  %v3248_v55 = vadd.f32 %v4473_v36, %v6419_v2  ;;  %v3239_v13 = vpop.f32.mrb[191].mxu0  ;;  %v6713_v47 = vld [vmem:[#allocation33_spill] sm:$0xff]  ;;  %v6714_v36 = vld [vmem:[#allocation28_spill] sm:$0xff] }
 0x315   : > { %4190 = vst [vmem:[%s6376_s8 + $0x60] sm:$0xff] %v4122_v23   ;;  %v3343_v8 = vadd.f32 %v3237_v41, %v6709_v50  ;;  %v3054_v28 = vpop.f32.mrb[206].mxu1  ;;  %v3240_v12 = vadd.f32 %v3239_v13, %v6401_v56 }
 0x316   : > { %v3346_v45 = vadd.f32 %v3248_v55, %v6279_v33  ;;  %v3056_v20 = vpop.f32.mrb[207].mxu1  ;;  %v3400_v59 = vadd.f32 %v6359_v39, %v3345_v4 }
 0x317   : > { %v3344_v34 = vadd.f32 %v3240_v12, %v6710_v37  ;;  %v3398_v2 = vadd.f32 %v6359_v39, %v3343_v8  ;;  %v6715_v20 = vld [vmem:[#allocation24_spill] sm:$0xff] }
 0x318   : > { %v3401_v17 = vadd.f32 %v6359_v39, %v3346_v45 }
 0x319   : > { %v3399_v31 = vadd.f32 %v6359_v39, %v3344_v34  ;;  %v4476_v29 = vpop.f32.mrb[192].mxu0 }
 0x31a   : > { %v4137_v0 = vpack.c.bf16 %v3401_v17, %v3400_v59  ;;  %v3261_v3 = vadd.f32 %v4476_v29, %v6447_v58  ;;  %v3252_v56 = vpop.f32.mrb[193].mxu0 }
 0x31b   : > { %v4132_v51 = vpack.c.bf16 %v3399_v31, %v3398_v2  ;;  %v3059_v25 = vpop.f32.mrb[208].mxu1  ;;  %v3253_v33 = vadd.f32 %v3252_v56, %v6429_v15  ;;  %v4477_v1 = vpop.f32.mrb[194].mxu0  ;;  %v6716_v2 = vld [vmem:[#allocation30_spill] sm:$0xff] }
 0x31c   : > { %4193 = vst [vmem:[%s6376_s8 + $0x78] sm:$0xff] %v4137_v0   ;;  %v3349_v24 = vadd.f32 %v3261_v3, %v6287_v35  ;;  %v3061_v19 = vpop.f32.mrb[209].mxu1  ;;  %v3264_v21 = vadd.f32 %v4477_v1, %v6455_v43  ;;  %v3255_v14 = vpop.f32.mrb[195].mxu0  ;;  %v6717_v3 = vld [vmem:[#allocation38_spill] sm:$0xff] }
 0x31d   : > { %4192 = vst [vmem:[%s6376_s8 + $0x70] sm:$0xff] %v4132_v51   ;;  %v3347_v53 = vadd.f32 %v3253_v33, %v6711_v10  ;;  %v3062_v61 = vpop.f32.mrb[210].mxu1  ;;  %v3256_v7 = vadd.f32 %v3255_v14, %v6437_v40  ;;  %v6718_v33 = vld [vmem:[#allocation26_spill] sm:$0xff] }
 0x31e   : > { %v3350_v58 = vadd.f32 %v3264_v21, %v6295_v22  ;;  %v3064_v60 = vpop.f32.mrb[211].mxu1  ;;  %v3404_v9 = vadd.f32 %v6359_v39, %v3349_v24 }
 0x31f   : > { %v3348_v15 = vadd.f32 %v3256_v7, %v6712_v62  ;;  %v3402_v43 = vadd.f32 %v6359_v39, %v3347_v53 }
 0x320   : > { %v3405_v35 = vadd.f32 %v6359_v39, %v3350_v58 }
 0x321   : > { %v3403_v54 = vadd.f32 %v6359_v39, %v3348_v15  ;;  %v4480_v63 = vpop.f32.mrb[196].mxu0 }
 0x322   : > { %v4147_v16 = vpack.c.bf16 %v3405_v35, %v3404_v9  ;;  %v3277_v11 = vadd.f32 %v4480_v63, %v3051_v52  ;;  %v3268_v38 = vpop.f32.mrb[197].mxu0  ;;  %v6719_v35 = vld [vmem:[#allocation39_spill] sm:$0xff] }
 0x323   : > { %v4142_v40 = vpack.c.bf16 %v3403_v54, %v3402_v43  ;;  %v3067_v27 = vpop.f32.mrb[212].mxu1  ;;  %v3269_v22 = vadd.f32 %v3268_v38, %v6465_v46  ;;  %v4481_v5 = vpop.f32.mrb[198].mxu0 }
 0x324   : > { %4195 = vst [vmem:[%s6376_s8 + $0x88] sm:$0xff] %v4147_v16   ;;  %v3353_v18 = vadd.f32 %v3277_v11, %v6303_v48  ;;  %v3069_v32 = vpop.f32.mrb[213].mxu1  ;;  %v3280_v6 = vadd.f32 %v4481_v5, %v3054_v28  ;;  %v3271_v42 = vpop.f32.mrb[199].mxu0  ;;  %v6720_v16 = vld [vmem:[#allocation36_spill] sm:$0xff]  ;;  %v6722_v5 = vld [vmem:[#allocation37_spill] sm:$0xff] }
 0x325   : > { %4194 = vst [vmem:[%s6376_s8 + $0x80] sm:$0xff] %v4142_v40   ;;  %v3351_v49 = vadd.f32 %v3269_v22, %v6713_v47  ;;  %v3070_v57 = vpop.f32.mrb[214].mxu1  ;;  %v3272_v23 = vadd.f32 %v3271_v42, %v6473_v30 }
 0x326   : > { %v3354_v52 = vadd.f32 %v3280_v6, %v6311_v44  ;;  %v3072_v41 = vpop.f32.mrb[215].mxu1  ;;  %v3408_v46 = vadd.f32 %v6359_v39, %v3353_v18 }
 0x327   : > { %v3352_v4 = vadd.f32 %v3272_v23, %v6714_v36  ;;  %v3406_v48 = vadd.f32 %v6359_v39, %v3351_v49 }
 0x328   : > { %v3409_v26 = vadd.f32 %v6359_v39, %v3354_v52 }
 0x329   : > { %v3407_v55 = vadd.f32 %v6359_v39, %v3352_v4  ;;  %v4484_v13 = vpop.f32.mrb[200].mxu0 }
 0x32a   : > { %v4157_v50 = vpack.c.bf16 %v3409_v26, %v3408_v46  ;;  %v3293_v8 = vadd.f32 %v4484_v13, %v3067_v27  ;;  %v3284_v28 = vpop.f32.mrb[201].mxu0  ;;  %v6721_v27 = vld [vmem:[#allocation17_spill] sm:$0xff] }
 0x32b   : > { %v4152_v30 = vpack.c.bf16 %v3407_v55, %v3406_v48  ;;  %v3075_v12 = vpop.f32.mrb[216].mxu1  ;;  %v3285_v45 = vadd.f32 %v3284_v28, %v3059_v25  ;;  %v4485_v44 = vpop.f32.mrb[202].mxu0 }
 0x32c   : > { %4197 = vst [vmem:[%s6376_s8 + $0x98] sm:$0xff] %v4157_v50   ;;  %v3357_v37 = vadd.f32 %v3293_v8, %v6715_v20  ;;  %v3077_v34 = vpop.f32.mrb[217].mxu1  ;;  %v3296_v59 = vadd.f32 %v4485_v44, %v3070_v57  ;;  %v3287_v17 = vpop.f32.mrb[203].mxu0 }
 0x32d   : > { %4196 = vst [vmem:[%s6376_s8 + $0x90] sm:$0xff] %v4152_v30   ;;  %v3355_v31 = vadd.f32 %v3285_v45, %v6716_v2  ;;  %v3078_v29 = vpop.f32.mrb[218].mxu1  ;;  %v3288_v0 = vadd.f32 %v3287_v17, %v3062_v61 }
 0x32e   : > { %v3358_v56 = vadd.f32 %v3296_v59, %v6717_v3  ;;  %v3080_v51 = vpop.f32.mrb[219].mxu1  ;;  %v3412_v25 = vadd.f32 %v6359_v39, %v3357_v37 }
 0x32f   : > { %v3356_v1 = vadd.f32 %v3288_v0, %v6718_v33  ;;  %v3410_v19 = vadd.f32 %v6359_v39, %v3355_v31 }
 0x330   : > { %v3413_v24 = vadd.f32 %v6359_v39, %v3358_v56 }
 0x331   : > { %v3411_v21 = vadd.f32 %v6359_v39, %v3356_v1  ;;  %v4488_v14 = vpop.f32.mrb[204].mxu0 }
 0x332   : > { %v4167_v10 = vpack.c.bf16 %v3413_v24, %v3412_v25  ;;  %v3300_v53 = vpop.f32.mrb[205].mxu0 }
 0x333   : > { %v4162_v7 = vpack.c.bf16 %v3411_v21, %v3410_v19  ;;  %v3083_v61 = vpop.f32.mrb[220].mxu1  ;;  %v3301_v58 = vadd.f32 %v3300_v53, %v3075_v12  ;;  %v4489_v60 = vpop.f32.mrb[206].mxu0 }
 0x334   : > { %4199 = vst [vmem:[%s6376_s8 + $0xa8] sm:$0xff] %v4167_v10   ;;  %v3309_v62 = vadd.f32 %v4488_v14, %v3083_v61  ;;  %v3085_v15 = vpop.f32.mrb[221].mxu1  ;;  %v3303_v9 = vpop.f32.mrb[207].mxu0 }
 0x335   : > { %4198 = vst [vmem:[%s6376_s8 + $0xa0] sm:$0xff] %v4162_v7   ;;  %v3359_v43 = vadd.f32 %v3301_v58, %v6719_v35  ;;  %v3086_v54 = vpop.f32.mrb[222].mxu1  ;;  %v3304_v63 = vadd.f32 %v3303_v9, %v3078_v29 }
 0x336   : > { %v3361_v11 = vadd.f32 %v3309_v62, %v6720_v16  ;;  %v3312_v38 = vadd.f32 %v4489_v60, %v3086_v54  ;;  %v3088_v40 = vpop.f32.mrb[223].mxu1 }
 0x337   : > { %v3360_v22 = vadd.f32 %v3304_v63, %v6721_v27  ;;  %v3414_v32 = vadd.f32 %v6359_v39, %v3359_v43 }
 0x338   : > { %v3362_v18 = vadd.f32 %v3312_v38, %v6722_v5  ;;  %v3416_v42 = vadd.f32 %v6359_v39, %v3361_v11 }
 0x339   : > { %v3415_v6 = vadd.f32 %v6359_v39, %v3360_v22 }
 0x33a   : > { %v3417_v47 = vadd.f32 %v6359_v39, %v3362_v18 }
 0x33b   : > { %v4172_v49 = vpack.c.bf16 %v3415_v6, %v3414_v32 }
 0x33c   : > { %v4177_v57 = vpack.c.bf16 %v3417_v47, %v3416_v42 }
 0x33d   : > { %4200 = vst [vmem:[%s6376_s8 + $0xb0] sm:$0xff] %v4172_v49  }
 0x33e   : > { %4201 = vst [vmem:[%s6376_s8 + $0xb8] sm:$0xff] %v4177_v57  }
 0x33f   : > { %4895 = shalt.err (!%p4892_p8)
}
 0x340   : > { %s4896_s28 = scalar_lea.hbm %s6547_s22, 3072  ;;  %s4900_s2 = scalar_lea.hbm %s6604_s4, 6144 }
 0x341   : > { %p4897_p12 = scmp.ne.s32.totalorder %s6547_s22, %s4896_s28  ;;  %p4901_p6 = scmp.lt.u32.totalorder %s6547_s22, %s6604_s4 }
 0x342   : > { %p4902_p11 = scmp.lt.u32.totalorder %s4900_s2, %s4896_s28  ;;  %p4904_p5 = scmp.lt.u32.totalorder %s4896_s28, %s6547_s22 }
 0x343   : > { %p4898_p13 = pnand %p4897_p12, %p5098_p10 }
 0x344   : > { %p4903_p0 = por %p4902_p11, %p4901_p6 }
 0x345   : > { %p4899_p3 = pneg %p4898_p13 }
 0x346   : > { %p4905_p9 = por %p4904_p5, %p4903_p0 }
 0x348   : > { %p4906_p1 = pnand %p4905_p9, %p4899_p3 }
 0x34a   : > { %4909 = shalt.err (!%p4906_p1)
}
 0x34b   : > { %s4983_s10 = smov 64   ;;  %s4984_s21 = smov 4  }
 0x34c   : > { %4521 = dma.vmem_to_hbm [thread:$0]  (%p5098_p10), %s6549_s7, 3072, %s6547_s22, %s3659_s18, %s4983_s10, %s4983_s10, %s4984_s21  }
 0x34d PF: > { %s3689_s23 = sand.u32 1, %s4952_s15   ;;  %p6723_p2 = scmp.ne.s32.totalorder %s6614_s24, 0 }
 0x34e   : > { %p6724_p7 = scmp.ge.s32.totalorder %s4972_s20, 2  ;;  %s3690_s26 = scalar_lea.sflag [#allocation5], %s3689_s23 }
 0x350   : > { %p4535_p4 = pnand %p6724_p7, %p6723_p2 }
 0x352   : > { %4947 = dma.done.wait (!%p4535_p4), %s3690_s26, 3072  }
 0x353   : > { %4949 = vsyncadd (!%p4535_p4), %s3690_s26, 4294964224  ;;  %s23_s20 = sadd.s32 1, %s4972_s20   ;;  %s6725_s8 = sld [smem:[#allocation14_spill]] }
 0x354   : > { %p20_p8 = scmp.ge.s32.totalorder %s23_s20, 4   ;;  %s6726_s17 = sld [smem:[#allocation16_spill]] }
 0x355   : > { %s6727_s30 = sld [smem:[#allocation15_spill]]  ;;  %s6728_s15 = smov %s4956_s16 }
 0x356   : > { %s6730_s18 = smov %s4968_s19  ;;  %22 = sbr.rel (!%p20_p8) target bundleno = 11 (0xb), region = 100 }
 0x359   : > { %s6729_s16 = smov %s6725_s8 }
 0x35b   : > { %s6731_s19 = smov %s6727_s30 }
 0x35d   :  { %3695 = vsyncpa [#allocation4], 1 }
 0x35e   :  { %3697 = vsyncpa [#allocation4 + $0x1], 1 }
 0x35f   :  { %3698 = vsyncpa [#allocation7], 1 }
 0x360   :  { %3700 = vsyncpa [#allocation7 + $0x1], 1 }
 0x361   :  { %3701 = vsyncpa [#allocation5], 1 }
 0x362   :  { %3703 = vsyncpa [#allocation5 + $0x1], 1 }

</bundles_post_ra>
